<compile_context>
chip_gen: v5e
topology: v5e:2x2
jax: 0.10.0
libtpu: 0.0.40
codegen_flags: <defaults>
</compile_context>

<pallas_src>
import functools

import jax
import jax.numpy as jnp
import numpy as np
from jax.experimental import pallas as pl
from jax.experimental.pallas import tpu as pltpu

EPS = 1e-5                      # PyTorch BatchNorm2d default
LANE = 128                      # lane width: channel dims padded to this
COMPUTE_DTYPE = jnp.bfloat16    # activations / weights; accumulation is f32


def _vmem_capacity_bytes():
    try:
        return int(pltpu.get_tpu_info().vmem_capacity_bytes)
    except Exception:           # unknown chip / older API -> v7x-safe defaults
        return 64 * 1024 * 1024


_VMEM_BYTES = _vmem_capacity_bytes()
if _VMEM_BYTES >= 96 * 1024 * 1024:       # v5e / v6e class (128 MiB VMEM)
    TILE_M, TILE_N = 1024, 512
    _VMEM_LIMIT = 80 * 1024 * 1024
else:                                      # v7x class (64 MiB VMEM)
    TILE_M, TILE_N = 512, 256
    _VMEM_LIMIT = 32 * 1024 * 1024


def _cparams(n_axes):
    return pltpu.CompilerParams(
        dimension_semantics=("parallel",) * n_axes,
        vmem_limit_bytes=_VMEM_LIMIT)


# ------------------------------ small helpers ------------------------------ #

def _rup(n, m):
    return ((n + m - 1) // m) * m


def _pad_to(x, shape):
    pads = [(0, t - s) for s, t in zip(x.shape, shape)]
    if all(p == (0, 0) for p in pads):
        return x
    return jnp.pad(x, pads)


def _fold_bn(bn):
    scale = bn["gamma"] * jax.lax.rsqrt(bn["var"] + EPS)
    bias = bn["beta"] - bn["mean"] * scale
    return scale, bias


# ----------------------------- Pallas kernels ------------------------------ #

def _c1_c2_s1_kernel(x_ref, w1_ref, b1_ref, w2_ref, b2_ref, o_ref,
                     ypad_ref, acc_ref):
    """Fused conv1(1x1)+bn1+relu + conv2(3x3, stride=1, pad=1)+bn2+relu.

    One image per grid step; weight block indices are constant -> resident.
      x_ref   : (1, H, W, Cin)     bf16
      w1_ref  : (Cin, Cm)          bf16 (BN1-folded)
      b1_ref  : (1, Cm)            f32
      w2_ref  : (3, 3*Cm, Cn)      bf16 (BN2-folded, kw-major packed)
      b2_ref  : (1, Cn)            f32
      o_ref   : (1, H, W, Cn)      bf16
      ypad_ref: (H+2, W+2, Cm)     bf16 VMEM scratch (zero halo)
      acc_ref : (H*W, Cn)          f32  VMEM scratch
    """
    _, H, W, Cin = x_ref.shape
    Cm = w1_ref.shape[1]
    Cn = o_ref.shape[-1]

    # conv1 + bn1 + relu, written into the interior of the zero-padded buffer.
    y1 = jnp.dot(x_ref[...].reshape(H * W, Cin), w1_ref[...],
                 preferred_element_type=jnp.float32)
    y1 = jnp.maximum(y1 + b1_ref[...], 0.0)
    ypad_ref[...] = jnp.zeros_like(ypad_ref)
    ypad_ref[1:H + 1, 1:W + 1, :] = y1.reshape(H, W, Cm).astype(ypad_ref.dtype)

    # conv2: 3 MXU matmuls with K = 3*Cm (kw taps lane-concatenated per kh),
    # accumulated in an f32 VMEM scratch (avoids spilling a multi-MB live acc).
    for kh in range(3):
        patch = jnp.concatenate(
            [ypad_ref[kh:kh + H, kw:kw + W, :] for kw in range(3)], axis=-1)
        contrib = jnp.dot(patch.reshape(H * W, 3 * Cm), w2_ref[kh],
                          preferred_element_type=jnp.float32)
        if kh == 0:
            acc_ref[...] = contrib
        else:
            acc_ref[...] += contrib

    y2 = jnp.maximum(acc_ref[...] + b2_ref[...], 0.0)
    o_ref[...] = y2.reshape(1, H, W, Cn).astype(o_ref.dtype)


def _c2_s2_kernel(y_ref, w2_ref, b2_ref, o_ref, acc_ref, *, Ho, Wo):
    """conv2 (3x3, stride=2, pad=1)+bn2+relu on a phase-split padded input.

      y_ref : (1, 4, Ho+1, Wo+1, Cm) bf16 with y_ref[0, 2a+b, i, j] =
              y1_padded[2i+a, 2j+b]  (unit-stride taps only)
      w2_ref: (3, 3*Cm, Cn) bf16,  b2_ref: (1, Cn) f32
      o_ref : (1, Ho, Wo, Cn) bf16,  acc_ref: (Ho*Wo, Cn) f32 scratch
    """
    Cm = y_ref.shape[-1]
    Cn = o_ref.shape[-1]
    for kh in range(3):
        cols = []
        for kw in range(3):
            p = (kh % 2) * 2 + (kw % 2)
            cols.append(
                y_ref[0, p, kh // 2:kh // 2 + Ho, kw // 2:kw // 2 + Wo, :])
        patch = jnp.concatenate(cols, axis=-1)
        contrib = jnp.dot(patch.reshape(Ho * Wo, 3 * Cm), w2_ref[kh],
                          preferred_element_type=jnp.float32)
        if kh == 0:
            acc_ref[...] = contrib
        else:
            acc_ref[...] += contrib
    y2 = jnp.maximum(acc_ref[...] + b2_ref[...], 0.0)
    o_ref[...] = y2.reshape(1, Ho, Wo, Cn).astype(o_ref.dtype)


def _mm_bias_relu_kernel(x_ref, w_ref, b_ref, o_ref):
    # (TM, K) @ (K, Nc) + folded-BN bias + ReLU (used for conv1 when stride=2).
    acc = jnp.dot(x_ref[...], w_ref[...], preferred_element_type=jnp.float32)
    o_ref[...] = jnp.maximum(acc + b_ref[...], 0.0).astype(o_ref.dtype)


def _c3_identity_kernel(y_ref, w_ref, r_ref, b_ref, o_ref):
    # conv3+bn3 + identity residual + ReLU, fused.
    acc = jnp.dot(y_ref[...], w_ref[...], preferred_element_type=jnp.float32)
    acc = acc + r_ref[...].astype(jnp.float32) + b_ref[...]
    o_ref[...] = jnp.maximum(acc, 0.0).astype(o_ref.dtype)


def _c3_proj_kernel(y_ref, w_ref, x_ref, ws_ref, b_ref, o_ref):
    # conv3+bn3 and projection-shortcut conv+bn fused as two MXU matmuls.
    acc = jnp.dot(y_ref[...], w_ref[...], preferred_element_type=jnp.float32)
    acc = acc + jnp.dot(x_ref[...], ws_ref[...],
                        preferred_element_type=jnp.float32)
    o_ref[...] = jnp.maximum(acc + b_ref[...], 0.0).astype(o_ref.dtype)


# --------------------------- pallas_call wrappers --------------------------- #

def fused_conv1_conv2_s1(x_nhwc, w1, b1, w2p, b2):
    """Fused conv1+bn1+relu + conv2(3x3, s=1)+bn2+relu; y1 never touches HBM."""
    N, H, W, Cin = x_nhwc.shape
    Cm = w1.shape[1]
    Cn = w2p.shape[-1]
    # TODO(synk): add an output-row tile axis (halo-carrying BlockSpec) so v7x
    # keeps both TensorCores busy at batch=1, and a Cout tile axis for Cm>512.
    return pl.pallas_call(
        _c1_c2_s1_kernel,
        out_shape=jax.ShapeDtypeStruct((N, H, W, Cn), COMPUTE_DTYPE),
        grid=(N,),
        in_specs=[
            pl.BlockSpec((1, H, W, Cin), lambda n: (n, 0, 0, 0)),
            pl.BlockSpec((Cin, Cm), lambda n: (0, 0)),            # resident
            pl.BlockSpec((1, Cm), lambda n: (0, 0)),
            pl.BlockSpec((3, 3 * Cm, Cn), lambda n: (0, 0, 0)),   # resident
            pl.BlockSpec((1, Cn), lambda n: (0, 0)),
        ],
        out_specs=pl.BlockSpec((1, H, W, Cn), lambda n: (n, 0, 0, 0)),
        scratch_shapes=[
            pltpu.VMEM((H + 2, W + 2, Cm), COMPUTE_DTYPE),
            pltpu.VMEM((H * W, Cn), jnp.float32),
        ],
        compiler_params=_cparams(1),
    )(x_nhwc, w1, b1, w2p, b2)


def conv1x1_bn_relu(x2d, w, b):
    """(M, K) @ (K, Nc) + bias + ReLU; weights/bias resident across the M grid."""
    M, K = x2d.shape
    Nc = w.shape[1]
    TM = min(TILE_M, _rup(M, 8))
    # TODO(synk): sweep pipeline_mode=pl.Buffered(3) on the streamed (TM, K)
    # input once VMEM headroom is confirmed per generation.
    return pl.pallas_call(
        _mm_bias_relu_kernel,
        out_shape=jax.ShapeDtypeStruct((M, Nc), COMPUTE_DTYPE),
        grid=(pl.cdiv(M, TM),),
        in_specs=[
            pl.BlockSpec((TM, K), lambda i: (i, 0)),
            pl.BlockSpec((K, Nc), lambda i: (0, 0)),              # resident
            pl.BlockSpec((1, Nc), lambda i: (0, 0)),
        ],
        out_specs=pl.BlockSpec((TM, Nc), lambda i: (i, 0)),
        compiler_params=_cparams(1),
    )(x2d, w, b)


def conv2_s2_bn_relu(y1_ps, w2p, b2, Ho, Wo):
    """3x3 stride-2 conv + bn + relu on the phase-split padded conv1 output."""
    N = y1_ps.shape[0]
    Cm = y1_ps.shape[-1]
    Cn = w2p.shape[-1]
    return pl.pallas_call(
        functools.partial(_c2_s2_kernel, Ho=Ho, Wo=Wo),
        out_shape=jax.ShapeDtypeStruct((N, Ho, Wo, Cn), COMPUTE_DTYPE),
        grid=(N,),
        in_specs=[
            pl.BlockSpec((1, 4, Ho + 1, Wo + 1, Cm), lambda n: (n, 0, 0, 0, 0)),
            pl.BlockSpec((3, 3 * Cm, Cn), lambda n: (0, 0, 0)),   # resident
            pl.BlockSpec((1, Cn), lambda n: (0, 0)),
        ],
        out_specs=pl.BlockSpec((1, Ho, Wo, Cn), lambda n: (n, 0, 0, 0)),
        scratch_shapes=[pltpu.VMEM((Ho * Wo, Cn), jnp.float32)],
        compiler_params=_cparams(1),
    )(y1_ps, w2p, b2)


def conv3_shortcut_fused(y2d, w3, b, *, res=None, xs=None, ws=None):
    """Fused conv3(1x1)+bn3 + shortcut (identity or projection conv+bn) + ReLU.

    y2d: (M, K1) bf16; identity: res (M, Ncout) bf16; projection: xs (M, K2),
    ws (K2, Ncout).  Output is bf16 (f32 cast happens at the module boundary).
    """
    M, K1 = y2d.shape
    Ncout = w3.shape[1]
    TM = min(TILE_M, _rup(M, 8))
    TN = min(TILE_N, Ncout)
    ni, nj = pl.cdiv(M, TM), pl.cdiv(Ncout, TN)

    proj = ws is not None
    act_b = y2d.size * 2 + (xs.size * 2 if proj else res.size * 2)
    wgt_b = w3.size * 2 + (ws.size * 2 if proj else 0)
    # Put the cheaper-to-restream operand on the inner (fastest) grid axis so
    # the other one stays VMEM-resident (Pallas skips repeated block DMAs).
    i_inner = (wgt_b + nj * act_b) <= (act_b + ni * wgt_b)
    if i_inner:
        grid = (nj, ni)
        act_map = lambda j, i: (i, 0)
        wgt_map = lambda j, i: (0, j)
        b_map = lambda j, i: (0, j)
        res_map = lambda j, i: (i, j)
        out_map = lambda j, i: (i, j)
    else:
        grid = (ni, nj)
        act_map = lambda i, j: (i, 0)
        wgt_map = lambda i, j: (0, j)
        b_map = lambda i, j: (0, j)
        res_map = lambda i, j: (i, j)
        out_map = lambda i, j: (i, j)

    if proj:
        kernel = _c3_proj_kernel
        in_specs = [
            pl.BlockSpec((TM, K1), act_map),
            pl.BlockSpec((K1, TN), wgt_map),
            pl.BlockSpec((TM, xs.shape[1]), act_map),
            pl.BlockSpec((xs.shape[1], TN), wgt_map),
            pl.BlockSpec((1, TN), b_map),
        ]
        args = (y2d, w3, xs, ws, b)
    else:
        kernel = _c3_identity_kernel
        in_specs = [
            pl.BlockSpec((TM, K1), act_map),
            pl.BlockSpec((K1, TN), wgt_map),
            pl.BlockSpec((TM, TN), res_map),
            pl.BlockSpec((1, TN), b_map),
        ]
        args = (y2d, w3, res, b)

    return pl.pallas_call(
        kernel,
        out_shape=jax.ShapeDtypeStruct((M, Ncout), COMPUTE_DTYPE),
        grid=grid,
        in_specs=in_specs,
        out_specs=pl.BlockSpec((TM, TN), out_map),
        compiler_params=_cparams(2),
    )(*args)


# ------------------------------ forward pass -------------------------------- #

def bottleneck_forward(x_nchw, p, stride=1):
    """Pallas implementation of Bottleneck.forward (input/output NCHW, f32)."""
    N, Cin, H, W = x_nchw.shape
    Cmid = p["w1"].shape[0]
    Cout = p["w3"].shape[0]
    has_proj = "ws" in p
    if not has_proj and (stride != 1 or Cin != Cout):
        raise ValueError("identity shortcut requires stride==1 and Cin==Cout")

    cd = COMPUTE_DTYPE
    Cin_p, Cm_p, Co_p = (_rup(c, LANE) for c in (Cin, Cmid, Cout))

    # NCHW -> NHWC once at the module boundary; channel-pad to lane multiples.
    # TODO(synk): in a full network keep activations NHWC end-to-end and drop
    # these boundary transposes entirely.
    x = jnp.transpose(x_nchw, (0, 2, 3, 1))
    x = _pad_to(x.astype(cd), (N, H, W, Cin_p))

    # Fold eval-mode BatchNorm into the conv weights (biases stay f32).
    s1, b1 = _fold_bn(p["bn1"])
    s2, b2 = _fold_bn(p["bn2"])
    s3, b3 = _fold_bn(p["bn3"])

    w1 = _pad_to((p["w1"][:, :, 0, 0].T * s1[None, :]).astype(cd), (Cin_p, Cm_p))
    b1p = _pad_to(b1, (Cm_p,)).reshape(1, Cm_p)

    w2 = jnp.transpose(p["w2"], (2, 3, 1, 0)) * s2[None, None, None, :]
    w2 = _pad_to(w2.astype(cd), (3, 3, Cm_p, Cm_p)).reshape(3, 3 * Cm_p, Cm_p)
    b2p = _pad_to(b2, (Cm_p,)).reshape(1, Cm_p)

    w3 = _pad_to((p["w3"][:, :, 0, 0].T * s3[None, :]).astype(cd), (Cm_p, Co_p))

    if stride == 1:
        # Fused conv1+bn1+relu + conv2+bn2+relu: y1 never round-trips HBM.
        y2 = fused_conv1_conv2_s1(x, w1, b1p, w2, b2p)
        Ho, Wo = H, W
    else:
        # stride-2: conv1 as a flat matmul, then a single wrapper-side
        # phase-split (space-to-depth) of the zero-padded conv1 output so the
        # 3x3 kernel only issues unit-stride loads (no strided pl.ds).
        y1 = conv1x1_bn_relu(x.reshape(N * H * W, Cin_p), w1, b1p)
        Ho = (H - 1) // stride + 1
        Wo = (W - 1) // stride + 1
        y1 = y1.reshape(N, H, W, Cm_p)
        y1p = jnp.pad(y1, ((0, 0), (1, 1 + H % 2), (1, 1 + W % 2), (0, 0)))
        Hh, Wh = y1p.shape[1] // 2, y1p.shape[2] // 2     # == Ho+1, Wo+1
        y1_ps = (y1p.reshape(N, Hh, 2, Wh, 2, Cm_p)
                 .transpose(0, 2, 4, 1, 3, 5)
                 .reshape(N, 4, Hh, Wh, Cm_p))
        y2 = conv2_s2_bn_relu(y1_ps, w2, b2p, Ho, Wo)

    y2_2d = y2.reshape(N * Ho * Wo, Cm_p)

    # conv3 (1x1) + bn3 + shortcut + ReLU, fused into one kernel (bf16 out).
    if has_proj:
        ss, bs = _fold_bn(p["bns"])
        ws = _pad_to((p["ws"][:, :, 0, 0].T * ss[None, :]).astype(cd),
                     (Cin_p, Co_p))
        bsum = _pad_to(b3 + bs, (Co_p,)).reshape(1, Co_p)
        # TODO(synk): fold the stride-2 subsample into the xs BlockSpec (parity
        # pick on a free reshape) instead of this wrapper-side XLA gather.
        xs = x if stride == 1 else x[:, ::stride, ::stride, :]
        y3 = conv3_shortcut_fused(y2_2d, w3, bsum,
                                  xs=xs.reshape(N * Ho * Wo, Cin_p), ws=ws)
    else:
        b3p = _pad_to(b3, (Co_p,)).reshape(1, Co_p)
        # TODO(synk): identity residual uses the bf16-cast input; pass the f32
        # input if skip-path precision ever matters.
        y3 = conv3_shortcut_fused(y2_2d, w3, b3p,
                                  res=x.reshape(N * H * W, Cin_p))

    out = y3.reshape(N, Ho, Wo, Co_p)[..., :Cout]
    return jnp.transpose(out, (0, 3, 1, 2)).astype(jnp.float32)   # back to NCHW


# ------------------------- deterministic parameters ------------------------- #

def init_params(key, in_channels, out_channels, stride, expansion=4):
    keys = jax.random.split(key, 8)

    def w(k, shape):
        return jax.random.normal(k, shape, jnp.float32) * 0.1

    def bn(k, c):
        k1, k2, k3, k4 = jax.random.split(k, 4)
        return dict(
            gamma=jax.random.uniform(k1, (c,), jnp.float32, 0.5, 1.5),
            beta=jax.random.normal(k2, (c,), jnp.float32) * 0.1,
            mean=jax.random.normal(k3, (c,), jnp.float32) * 0.1,
            var=jax.random.uniform(k4, (c,), jnp.float32, 0.5, 1.5),
        )

    cexp = out_channels * expansion
    p = dict(
        w1=w(keys[0], (out_channels, in_channels, 1, 1)),
        bn1=bn(keys[1], out_channels),
        w2=w(keys[2], (out_channels, out_channels, 3, 3)),
        bn2=bn(keys[3], out_channels),
        w3=w(keys[4], (cexp, out_channels, 1, 1)),
        bn3=bn(keys[5], cexp),
    )
    if stride != 1 or in_channels != cexp:
        p["ws"] = w(keys[6], (cexp, in_channels, 1, 1))
        p["bns"] = bn(keys[7], cexp)
    return p


# ------------------------------ pure-JAX ref -------------------------------- #

def reference_bottleneck(x, p, stride):
    def conv(x, w, s=1, pad=0):
        return jax.lax.conv_general_dilated(
            x, w, (s, s), [(pad, pad), (pad, pad)],
            dimension_numbers=("NCHW", "OIHW", "NCHW"))

    def bn(x, d):
        sc = d["gamma"] / jnp.sqrt(d["var"] + EPS)
        sh = d["beta"] - d["mean"] * sc
        return x * sc[None, :, None, None] + sh[None, :, None, None]

    out = jax.nn.relu(bn(conv(x, p["w1"]), p["bn1"]))
    out = jax.nn.relu(bn(conv(out, p["w2"], s=stride, pad=1), p["bn2"]))
    out = bn(conv(out, p["w3"]), p["bn3"])
    sc = bn(conv(x, p["ws"], s=stride), p["bns"]) if "ws" in p else x
    return jax.nn.relu(out + sc)


if __name__ == "__main__":
    key = jax.random.PRNGKey(0)

    configs = [
        # (N, Cin, H, W, out_channels, stride)
        (2, 16, 16, 16, 8, 1),   # projection shortcut, stride 1 (Cin != 4*oc)
        (2, 32, 16, 16, 8, 1),   # identity shortcut   (Cin == 4*oc)
        (2, 16, 16, 16, 8, 2),   # projection shortcut, stride 2 (phase-split)
    ]

    fwd = jax.jit(bottleneck_forward, static_argnames=("stride",))

    for (N, Cin, H, W, oc, stride) in configs:
        kx, kp, key = jax.random.split(key, 3)
        x = jax.random.normal(kx, (N, Cin, H, W), jnp.float32)
        params = init_params(kp, Cin, oc, stride)

        y = jax.block_until_ready(fwd(x, params, stride=stride))
        y_ref = reference_bottleneck(x, params, stride)
        # bf16 activations/weights vs f32 reference -> loose-but-meaningful tol.
        np.testing.assert_allclose(np.asarray(y), np.asarray(y_ref),
                                   atol=5e-2, rtol=5e-2)

    print("KERNEL_OK")
</pallas_src>

<mosaic_0001>
module attributes {stable_mosaic.version = 11 : i64} {
  func.func @_c1_c2_s1_kernel(%arg0: i32, %arg1: memref<1x16x16x128xbf16, #tpu.memory_space<vmem>>, %arg2: memref<128x128xbf16, #tpu.memory_space<vmem>>, %arg3: memref<1x128xf32, #tpu.memory_space<vmem>>, %arg4: memref<3x384x128xbf16, #tpu.memory_space<vmem>>, %arg5: memref<1x128xf32, #tpu.memory_space<vmem>>, %arg6: memref<1x16x16x128xbf16, #tpu.memory_space<vmem>>, %arg7: memref<18x18x128xbf16, #tpu.memory_space<vmem>>, %arg8: memref<256x128xf32, #tpu.memory_space<vmem>>) attributes {dimension_semantics = [#tpu.dimension_semantics<parallel>], iteration_bounds = array<i64: 2>, scalar_prefetch = 0 : i64, scratch_operands = 2 : i64, tpu.core_type = #tpu.core_type<tc>, window_params = [{transform_indices = @transform_0, window_bounds = array<i64: 1, 16, 16, 128>}, {pipeline_mode = #tpu.pipeline_mode<synchronous>, transform_indices = @transform_1, window_bounds = array<i64: 128, 128>}, {pipeline_mode = #tpu.pipeline_mode<synchronous>, transform_indices = @transform_2, window_bounds = array<i64: 1, 128>}, {pipeline_mode = #tpu.pipeline_mode<synchronous>, transform_indices = @transform_3, window_bounds = array<i64: 3, 384, 128>}, {pipeline_mode = #tpu.pipeline_mode<synchronous>, transform_indices = @transform_4, window_bounds = array<i64: 1, 128>}, {transform_indices = @transform_5, window_bounds = array<i64: 1, 16, 16, 128>}]} {
    %c0 = arith.constant 0 : index
    %c0_0 = arith.constant 0 : index
    %c0_1 = arith.constant 0 : index
    %c0_2 = arith.constant 0 : index
    %0 = vector.load %arg1[%c0, %c0_0, %c0_1, %c0_2] : memref<1x16x16x128xbf16, #tpu.memory_space<vmem>>, vector<1x16x16x128xbf16>
    %1 = vector.shape_cast %0 : vector<1x16x16x128xbf16> to vector<256x128xbf16>
    %c0_3 = arith.constant 0 : index
    %c0_4 = arith.constant 0 : index
    %2 = vector.load %arg2[%c0_3, %c0_4] : memref<128x128xbf16, #tpu.memory_space<vmem>>, vector<128x128xbf16>
    %cst = arith.constant dense<0.000000e+00> : vector<256x128xf32>
    %3 = tpu.matmul %1, %2, %cst {dimension_numbers = #tpu.dot_dimension_numbers<[1], [0], [0], [1], [0, 0, 1, 1], [], []>} : vector<256x128xbf16>, vector<128x128xbf16>, vector<256x128xf32> -> vector<256x128xf32>
    %c0_5 = arith.constant 0 : index
    %c0_6 = arith.constant 0 : index
    %4 = vector.load %arg3[%c0_5, %c0_6] : memref<1x128xf32, #tpu.memory_space<vmem>>, vector<1x128xf32>
    %5 = vector.broadcast %4 : vector<1x128xf32> to vector<256x128xf32>
    %6 = arith.addf %3, %5 : vector<256x128xf32>
    %cst_7 = arith.constant 0.000000e+00 : f32
    %7 = vector.broadcast %cst_7 : f32 to vector<256x128xf32>
    %8 = arith.maximumf %6, %7 : vector<256x128xf32>
    %cst_8 = arith.constant 0.000000e+00 : bf16
    %9 = vector.broadcast %cst_8 : bf16 to vector<18x18x128xbf16>
    %c0_9 = arith.constant 0 : index
    %c0_10 = arith.constant 0 : index
    %c0_11 = arith.constant 0 : index
    %10 = vector.load %arg7[%c0_9, %c0_10, %c0_11] : memref<18x18x128xbf16, #tpu.memory_space<vmem>>, vector<18x18x128xbf16>
    tpu.vector_store %arg7[%c0_9, %c0_10, %c0_11], %9 {strides = array<i32>} : memref<18x18x128xbf16, #tpu.memory_space<vmem>>, vector<18x18x128xbf16>,
    %11 = vector.shape_cast %8 : vector<256x128xf32> to vector<16x16x128xf32>
    %12 = arith.truncf %11 : vector<16x16x128xf32> to vector<16x16x128xbf16>
    %c1 = arith.constant 1 : index
    %c1_12 = arith.constant 1 : index
    %c0_13 = arith.constant 0 : index
    %13 = vector.load %arg7[%c1, %c1_12, %c0_13] : memref<18x18x128xbf16, #tpu.memory_space<vmem>>, vector<16x16x128xbf16>
    tpu.vector_store %arg7[%c1, %c1_12, %c0_13], %12 {strides = array<i32>} : memref<18x18x128xbf16, #tpu.memory_space<vmem>>, vector<16x16x128xbf16>,
    %c0_14 = arith.constant 0 : index
    %c0_15 = arith.constant 0 : index
    %c0_16 = arith.constant 0 : index
    %14 = vector.load %arg7[%c0_14, %c0_15, %c0_16] : memref<18x18x128xbf16, #tpu.memory_space<vmem>>, vector<16x16x128xbf16>
    %c0_17 = arith.constant 0 : index
    %c1_18 = arith.constant 1 : index
    %c0_19 = arith.constant 0 : index
    %15 = vector.load %arg7[%c0_17, %c1_18, %c0_19] : memref<18x18x128xbf16, #tpu.memory_space<vmem>>, vector<16x16x128xbf16>
    %c0_20 = arith.constant 0 : index
    %c2 = arith.constant 2 : index
    %c0_21 = arith.constant 0 : index
    %16 = vector.load %arg7[%c0_20, %c2, %c0_21] : memref<18x18x128xbf16, #tpu.memory_space<vmem>>, vector<16x16x128xbf16>
    %17 = tpu.concatenate %14, %15, %16 in 2 : vector<16x16x128xbf16>, vector<16x16x128xbf16>, vector<16x16x128xbf16> -> vector<16x16x384xbf16>
    %18 = vector.shape_cast %17 : vector<16x16x384xbf16> to vector<256x384xbf16>
    %c0_22 = arith.constant 0 : index
    %c0_23 = arith.constant 0 : index
    %c0_24 = arith.constant 0 : index
    %19 = vector.load %arg4[%c0_22, %c0_23, %c0_24] : memref<3x384x128xbf16, #tpu.memory_space<vmem>>, vector<1x384x128xbf16>
    %20 = vector.shape_cast %19 : vector<1x384x128xbf16> to vector<384x128xbf16>
    %cst_25 = arith.constant dense<0.000000e+00> : vector<256x128xf32>
    %21 = tpu.matmul %18, %20, %cst_25 {dimension_numbers = #tpu.dot_dimension_numbers<[1], [0], [0], [1], [0, 0, 1, 1], [], []>} : vector<256x384xbf16>, vector<384x128xbf16>, vector<256x128xf32> -> vector<256x128xf32>
    %c0_26 = arith.constant 0 : index
    %c0_27 = arith.constant 0 : index
    %22 = vector.load %arg8[%c0_26, %c0_27] : memref<256x128xf32, #tpu.memory_space<vmem>>, vector<256x128xf32>
    tpu.vector_store %arg8[%c0_26, %c0_27], %21 {strides = array<i32>} : memref<256x128xf32, #tpu.memory_space<vmem>>, vector<256x128xf32>,
    %c1_28 = arith.constant 1 : index
    %c0_29 = arith.constant 0 : index
    %c0_30 = arith.constant 0 : index
    %23 = vector.load %arg7[%c1_28, %c0_29, %c0_30] : memref<18x18x128xbf16, #tpu.memory_space<vmem>>, vector<16x16x128xbf16>
    %c1_31 = arith.constant 1 : index
    %c1_32 = arith.constant 1 : index
    %c0_33 = arith.constant 0 : index
    %24 = vector.load %arg7[%c1_31, %c1_32, %c0_33] : memref<18x18x128xbf16, #tpu.memory_space<vmem>>, vector<16x16x128xbf16>
    %c1_34 = arith.constant 1 : index
    %c2_35 = arith.constant 2 : index
    %c0_36 = arith.constant 0 : index
    %25 = vector.load %arg7[%c1_34, %c2_35, %c0_36] : memref<18x18x128xbf16, #tpu.memory_space<vmem>>, vector<16x16x128xbf16>
    %26 = tpu.concatenate %23, %24, %25 in 2 : vector<16x16x128xbf16>, vector<16x16x128xbf16>, vector<16x16x128xbf16> -> vector<16x16x384xbf16>
    %27 = vector.shape_cast %26 : vector<16x16x384xbf16> to vector<256x384xbf16>
    %c1_37 = arith.constant 1 : index
    %c0_38 = arith.constant 0 : index
    %c0_39 = arith.constant 0 : index
    %28 = vector.load %arg4[%c1_37, %c0_38, %c0_39] : memref<3x384x128xbf16, #tpu.memory_space<vmem>>, vector<1x384x128xbf16>
    %29 = vector.shape_cast %28 : vector<1x384x128xbf16> to vector<384x128xbf16>
    %cst_40 = arith.constant dense<0.000000e+00> : vector<256x128xf32>
    %30 = tpu.matmul %27, %29, %cst_40 {dimension_numbers = #tpu.dot_dimension_numbers<[1], [0], [0], [1], [0, 0, 1, 1], [], []>} : vector<256x384xbf16>, vector<384x128xbf16>, vector<256x128xf32> -> vector<256x128xf32>
    %c0_41 = arith.constant 0 : index
    %c0_42 = arith.constant 0 : index
    %31 = vector.load %arg8[%c0_41, %c0_42] : memref<256x128xf32, #tpu.memory_space<vmem>>, vector<256x128xf32>
    %32 = arith.addf %31, %30 : vector<256x128xf32>
    %c0_43 = arith.constant 0 : index
    %c0_44 = arith.constant 0 : index
    %33 = vector.load %arg8[%c0_43, %c0_44] : memref<256x128xf32, #tpu.memory_space<vmem>>, vector<256x128xf32>
    tpu.vector_store %arg8[%c0_43, %c0_44], %32 {strides = array<i32>} : memref<256x128xf32, #tpu.memory_space<vmem>>, vector<256x128xf32>,
    %c2_45 = arith.constant 2 : index
    %c0_46 = arith.constant 0 : index
    %c0_47 = arith.constant 0 : index
    %34 = vector.load %arg7[%c2_45, %c0_46, %c0_47] : memref<18x18x128xbf16, #tpu.memory_space<vmem>>, vector<16x16x128xbf16>
    %c2_48 = arith.constant 2 : index
    %c1_49 = arith.constant 1 : index
    %c0_50 = arith.constant 0 : index
    %35 = vector.load %arg7[%c2_48, %c1_49, %c0_50] : memref<18x18x128xbf16, #tpu.memory_space<vmem>>, vector<16x16x128xbf16>
    %c2_51 = arith.constant 2 : index
    %c2_52 = arith.constant 2 : index
    %c0_53 = arith.constant 0 : index
    %36 = vector.load %arg7[%c2_51, %c2_52, %c0_53] : memref<18x18x128xbf16, #tpu.memory_space<vmem>>, vector<16x16x128xbf16>
    %37 = tpu.concatenate %34, %35, %36 in 2 : vector<16x16x128xbf16>, vector<16x16x128xbf16>, vector<16x16x128xbf16> -> vector<16x16x384xbf16>
    %38 = vector.shape_cast %37 : vector<16x16x384xbf16> to vector<256x384xbf16>
    %c2_54 = arith.constant 2 : index
    %c0_55 = arith.constant 0 : index
    %c0_56 = arith.constant 0 : index
    %39 = vector.load %arg4[%c2_54, %c0_55, %c0_56] : memref<3x384x128xbf16, #tpu.memory_space<vmem>>, vector<1x384x128xbf16>
    %40 = vector.shape_cast %39 : vector<1x384x128xbf16> to vector<384x128xbf16>
    %cst_57 = arith.constant dense<0.000000e+00> : vector<256x128xf32>
    %41 = tpu.matmul %38, %40, %cst_57 {dimension_numbers = #tpu.dot_dimension_numbers<[1], [0], [0], [1], [0, 0, 1, 1], [], []>} : vector<256x384xbf16>, vector<384x128xbf16>, vector<256x128xf32> -> vector<256x128xf32>
    %c0_58 = arith.constant 0 : index
    %c0_59 = arith.constant 0 : index
    %42 = vector.load %arg8[%c0_58, %c0_59] : memref<256x128xf32, #tpu.memory_space<vmem>>, vector<256x128xf32>
    %43 = arith.addf %42, %41 : vector<256x128xf32>
    %c0_60 = arith.constant 0 : index
    %c0_61 = arith.constant 0 : index
    %44 = vector.load %arg8[%c0_60, %c0_61] : memref<256x128xf32, #tpu.memory_space<vmem>>, vector<256x128xf32>
    tpu.vector_store %arg8[%c0_60, %c0_61], %43 {strides = array<i32>} : memref<256x128xf32, #tpu.memory_space<vmem>>, vector<256x128xf32>,
    %c0_62 = arith.constant 0 : index
    %c0_63 = arith.constant 0 : index
    %45 = vector.load %arg8[%c0_62, %c0_63] : memref<256x128xf32, #tpu.memory_space<vmem>>, vector<256x128xf32>
    %c0_64 = arith.constant 0 : index
    %c0_65 = arith.constant 0 : index
    %46 = vector.load %arg5[%c0_64, %c0_65] : memref<1x128xf32, #tpu.memory_space<vmem>>, vector<1x128xf32>
    %47 = vector.broadcast %46 : vector<1x128xf32> to vector<256x128xf32>
    %48 = arith.addf %45, %47 : vector<256x128xf32>
    %cst_66 = arith.constant 0.000000e+00 : f32
    %49 = vector.broadcast %cst_66 : f32 to vector<256x128xf32>
    %50 = arith.maximumf %48, %49 : vector<256x128xf32>
    %51 = vector.shape_cast %50 : vector<256x128xf32> to vector<1x16x16x128xf32>
    %52 = arith.truncf %51 : vector<1x16x16x128xf32> to vector<1x16x16x128xbf16>
    %c0_67 = arith.constant 0 : index
    %c0_68 = arith.constant 0 : index
    %c0_69 = arith.constant 0 : index
    %c0_70 = arith.constant 0 : index
    %53 = vector.load %arg6[%c0_67, %c0_68, %c0_69, %c0_70] : memref<1x16x16x128xbf16, #tpu.memory_space<vmem>>, vector<1x16x16x128xbf16>
    tpu.vector_store %arg6[%c0_67, %c0_68, %c0_69, %c0_70], %52 {strides = array<i32>} : memref<1x16x16x128xbf16, #tpu.memory_space<vmem>>, vector<1x16x16x128xbf16>,
    return
  }
  func.func @transform_0(%arg0: i32) -> (i32, i32, i32, i32) {
    %c0_i32 = arith.constant 0 : i32
    %c0_i32_0 = arith.constant 0 : i32
    %c0_i32_1 = arith.constant 0 : i32
    %c0_i32_2 = arith.constant 0 : i32
    return %arg0, %c0_i32, %c0_i32_0, %c0_i32_1 : i32, i32, i32, i32
  }
  func.func @transform_1(%arg0: i32) -> (i32, i32) {
    %c0_i32 = arith.constant 0 : i32
    %c0_i32_0 = arith.constant 0 : i32
    %c0_i32_1 = arith.constant 0 : i32
    return %c0_i32, %c0_i32_0 : i32, i32
  }
  func.func @transform_2(%arg0: i32) -> (i32, i32) {
    %c0_i32 = arith.constant 0 : i32
    %c0_i32_0 = arith.constant 0 : i32
    %c0_i32_1 = arith.constant 0 : i32
    return %c0_i32, %c0_i32_0 : i32, i32
  }
  func.func @transform_3(%arg0: i32) -> (i32, i32, i32) {
    %c0_i32 = arith.constant 0 : i32
    %c0_i32_0 = arith.constant 0 : i32
    %c0_i32_1 = arith.constant 0 : i32
    %c0_i32_2 = arith.constant 0 : i32
    return %c0_i32, %c0_i32_0, %c0_i32_1 : i32, i32, i32
  }
  func.func @transform_4(%arg0: i32) -> (i32, i32) {
    %c0_i32 = arith.constant 0 : i32
    %c0_i32_0 = arith.constant 0 : i32
    %c0_i32_1 = arith.constant 0 : i32
    return %c0_i32, %c0_i32_0 : i32, i32
  }
  func.func @transform_5(%arg0: i32) -> (i32, i32, i32, i32) {
    %c0_i32 = arith.constant 0 : i32
    %c0_i32_0 = arith.constant 0 : i32
    %c0_i32_1 = arith.constant 0 : i32
    %c0_i32_2 = arith.constant 0 : i32
    return %arg0, %c0_i32, %c0_i32_0, %c0_i32_1 : i32, i32, i32, i32
  }
}

module attributes {stable_mosaic.version = 11 : i64} {
  func.func @_c3_proj_kernel(%arg0: i32, %arg1: i32, %arg2: memref<512x128xbf16, #tpu.memory_space<vmem>>, %arg3: memref<128x128xbf16, #tpu.memory_space<vmem>>, %arg4: memref<512x128xbf16, #tpu.memory_space<vmem>>, %arg5: memref<128x128xbf16, #tpu.memory_space<vmem>>, %arg6: memref<1x128xf32, #tpu.memory_space<vmem>>, %arg7: memref<512x128xbf16, #tpu.memory_space<vmem>>) attributes {dimension_semantics = [#tpu.dimension_semantics<parallel>, #tpu.dimension_semantics<parallel>], iteration_bounds = array<i64: 1, 1>, scalar_prefetch = 0 : i64, scratch_operands = 0 : i64, tpu.core_type = #tpu.core_type<tc>, window_params = [{transform_indices = @transform_0, window_bounds = array<i64: 512, 128>}, {transform_indices = @transform_1, window_bounds = array<i64: 128, 128>}, {transform_indices = @transform_2, window_bounds = array<i64: 512, 128>}, {transform_indices = @transform_3, window_bounds = array<i64: 128, 128>}, {transform_indices = @transform_4, window_bounds = array<i64: 1, 128>}, {transform_indices = @transform_5, window_bounds = array<i64: 512, 128>}]} {
    %c0 = arith.constant 0 : index
    %c0_0 = arith.constant 0 : index
    %0 = vector.load %arg2[%c0, %c0_0] : memref<512x128xbf16, #tpu.memory_space<vmem>>, vector<512x128xbf16>
    %c0_1 = arith.constant 0 : index
    %c0_2 = arith.constant 0 : index
    %1 = vector.load %arg3[%c0_1, %c0_2] : memref<128x128xbf16, #tpu.memory_space<vmem>>, vector<128x128xbf16>
    %cst = arith.constant dense<0.000000e+00> : vector<512x128xf32>
    %2 = tpu.matmul %0, %1, %cst {dimension_numbers = #tpu.dot_dimension_numbers<[1], [0], [0], [1], [0, 0, 1, 1], [], []>} : vector<512x128xbf16>, vector<128x128xbf16>, vector<512x128xf32> -> vector<512x128xf32>
    %c0_3 = arith.constant 0 : index
    %c0_4 = arith.constant 0 : index
    %3 = vector.load %arg4[%c0_3, %c0_4] : memref<512x128xbf16, #tpu.memory_space<vmem>>, vector<512x128xbf16>
    %c0_5 = arith.constant 0 : index
    %c0_6 = arith.constant 0 : index
    %4 = vector.load %arg5[%c0_5, %c0_6] : memref<128x128xbf16, #tpu.memory_space<vmem>>, vector<128x128xbf16>
    %cst_7 = arith.constant dense<0.000000e+00> : vector<512x128xf32>
    %5 = tpu.matmul %3, %4, %cst_7 {dimension_numbers = #tpu.dot_dimension_numbers<[1], [0], [0], [1], [0, 0, 1, 1], [], []>} : vector<512x128xbf16>, vector<128x128xbf16>, vector<512x128xf32> -> vector<512x128xf32>
    %6 = arith.addf %2, %5 : vector<512x128xf32>
    %c0_8 = arith.constant 0 : index
    %c0_9 = arith.constant 0 : index
    %7 = vector.load %arg6[%c0_8, %c0_9] : memref<1x128xf32, #tpu.memory_space<vmem>>, vector<1x128xf32>
    %8 = vector.broadcast %7 : vector<1x128xf32> to vector<512x128xf32>
    %9 = arith.addf %6, %8 : vector<512x128xf32>
    %cst_10 = arith.constant 0.000000e+00 : f32
    %10 = vector.broadcast %cst_10 : f32 to vector<512x128xf32>
    %11 = arith.maximumf %9, %10 : vector<512x128xf32>
    %12 = arith.truncf %11 : vector<512x128xf32> to vector<512x128xbf16>
    %c0_11 = arith.constant 0 : index
    %c0_12 = arith.constant 0 : index
    %13 = vector.load %arg7[%c0_11, %c0_12] : memref<512x128xbf16, #tpu.memory_space<vmem>>, vector<512x128xbf16>
    tpu.vector_store %arg7[%c0_11, %c0_12], %12 {strides = array<i32>} : memref<512x128xbf16, #tpu.memory_space<vmem>>, vector<512x128xbf16>,
    return
  }
  func.func @transform_0(%arg0: i32, %arg1: i32) -> (i32, i32) {
    %c0_i32 = arith.constant 0 : i32
    %c0_i32_0 = arith.constant 0 : i32
    return %arg1, %c0_i32 : i32, i32
  }
  func.func @transform_1(%arg0: i32, %arg1: i32) -> (i32, i32) {
    %c0_i32 = arith.constant 0 : i32
    %c0_i32_0 = arith.constant 0 : i32
    return %c0_i32, %arg0 : i32, i32
  }
  func.func @transform_2(%arg0: i32, %arg1: i32) -> (i32, i32) {
    %c0_i32 = arith.constant 0 : i32
    %c0_i32_0 = arith.constant 0 : i32
    return %arg1, %c0_i32 : i32, i32
  }
  func.func @transform_3(%arg0: i32, %arg1: i32) -> (i32, i32) {
    %c0_i32 = arith.constant 0 : i32
    %c0_i32_0 = arith.constant 0 : i32
    return %c0_i32, %arg0 : i32, i32
  }
  func.func @transform_4(%arg0: i32, %arg1: i32) -> (i32, i32) {
    %c0_i32 = arith.constant 0 : i32
    %c0_i32_0 = arith.constant 0 : i32
    return %c0_i32, %arg0 : i32, i32
  }
  func.func @transform_5(%arg0: i32, %arg1: i32) -> (i32, i32) {
    %c0_i32 = arith.constant 0 : i32
    return %arg1, %arg0 : i32, i32
  }
}

</mosaic_0001>

<bundles_post_ra>
// kernel: bottleneck_forward.3
= control target key start
LH: loop header
LB: loop body
LE: loop exit
PB: predicated region body
PF: predicated region fallthrough
CT: control target
= control target key end

     0   :  { %s2305_s3 = inlined_call_operand.vmem [shape: bf16[128,128], index: 3, kind: input, shape index: {}]   ;;  %s2306_s1 = inlined_call_operand.vmem [shape: bf16[128,128], index: 1, kind: input, shape index: {}]   ;;  %s2307_s2 = inlined_call_operand.vmem [shape: bf16[512,128], index: 2, kind: input, shape index: {}]   ;;  %s2308_s0 = inlined_call_operand.vmem [shape: bf16[512,128], index: 0, kind: input, shape index: {}]   ;;  %s2309_s4 = inlined_call_operand.vmem [shape: f32[1,128], index: 4, kind: input, shape index: {}]   ;;  %s2310_s5 = inlined_call_operand.vmem [shape: bf16[512,128], index: 5, kind: output, shape index: {}]  }
   0x1   :  { %v1661_v0 = vld [vmem:[%s2305_s3 + $0x38] sm:$0xff]  ;;  %v1660_v2 = vld [vmem:[%s2305_s3 + $0x30] sm:$0xff]  ;;  %v1659_v4 = vld [vmem:[%s2305_s3 + $0x28] sm:$0xff] }
   0x2   :  { %v1621_v1 = vld [vmem:[%s2306_s1 + $0x38] sm:$0xff]  ;;  %420 = vmatpush.bf16.msra.mxu0 %v1661_v0  ;;  %1853 = vmatpush.bf16.msra.mxu2 %v1661_v0  ;;  %v1620_v3 = vld [vmem:[%s2306_s1 + $0x30] sm:$0xff]  ;;  %v1619_v5 = vld [vmem:[%s2306_s1 + $0x28] sm:$0xff] }
   0x3   :  { %829 = vmatpush.bf16.msra.mxu1 %v1621_v1  ;;  %1861 = vmatpush.bf16.msra.mxu3 %v1621_v1  ;;  %v1658_v6 = vld [vmem:[%s2305_s3 + $0x20] sm:$0xff]  ;;  %v1657_v8 = vld [vmem:[%s2305_s3 + $0x18] sm:$0xff]  ;;  %v1656_v10 = vld [vmem:[%s2305_s3 + $0x10] sm:$0xff] }
   0x4   :  { %v1618_v7 = vld [vmem:[%s2306_s1 + $0x20] sm:$0xff]  ;;  %v1617_v9 = vld [vmem:[%s2306_s1 + $0x18] sm:$0xff]  ;;  %v1616_v11 = vld [vmem:[%s2306_s1 + $0x10] sm:$0xff] }
   0x5   :  { %v1655_v12 = vld [vmem:[%s2305_s3 + $0x8] sm:$0xff]  ;;  %v1654_v14 = vld [vmem:[%s2305_s3] sm:$0xff]  ;;  %v1624_v24 = vld [vmem:[%s2307_s2 + $0x10] sm:$0xff] }
   0x6   :  { %421 = vmatpush.bf16.msra.mxu0 %v1660_v2  ;;  %1854 = vmatpush.bf16.msra.mxu2 %v1660_v2  ;;  %v1615_v13 = vld [vmem:[%s2306_s1 + $0x8] sm:$0xff]  ;;  %v1614_v15 = vld [vmem:[%s2306_s1] sm:$0xff]  ;;  %v1640_v25 = vld [vmem:[%s2307_s2 + $0x90] sm:$0xff] }
   0x7   :  { %830 = vmatpush.bf16.msra.mxu1 %v1620_v3  ;;  %1862 = vmatpush.bf16.msra.mxu3 %v1620_v3  ;;  %v1622_v16 = vld [vmem:[%s2307_s2] sm:$0xff]  ;;  %v1623_v20 = vld [vmem:[%s2307_s2 + $0x8] sm:$0xff]  ;;  %v1584_v26 = vld [vmem:[%s2308_s0 + $0x10] sm:$0xff] }
   0x8   :  { %v1638_v17 = vld [vmem:[%s2307_s2 + $0x80] sm:$0xff]  ;;  %v1639_v21 = vld [vmem:[%s2307_s2 + $0x88] sm:$0xff]  ;;  %v1600_v27 = vld [vmem:[%s2308_s0 + $0x90] sm:$0xff] }
   0x9   :  { %v1582_v18 = vld [vmem:[%s2308_s0] sm:$0xff]  ;;  %v1583_v22 = vld [vmem:[%s2308_s0 + $0x8] sm:$0xff]  ;;  %v1625_v28 = vld [vmem:[%s2307_s2 + $0x18] sm:$0xff] }
   0xa   :  { %422 = vmatpush.bf16.msra.mxu0 %v1659_v4  ;;  %1855 = vmatpush.bf16.msra.mxu2 %v1659_v4  ;;  %v1598_v19 = vld [vmem:[%s2308_s0 + $0x80] sm:$0xff]  ;;  %v1599_v23 = vld [vmem:[%s2308_s0 + $0x88] sm:$0xff]  ;;  %v1641_v29 = vld [vmem:[%s2307_s2 + $0x98] sm:$0xff] }
   0xb   :  { %831 = vmatpush.bf16.msra.mxu1 %v1619_v5  ;;  %1863 = vmatpush.bf16.msra.mxu3 %v1619_v5  ;;  %v1585_v30 = vld [vmem:[%s2308_s0 + $0x18] sm:$0xff]  ;;  %v1626_v32 = vld [vmem:[%s2307_s2 + $0x20] sm:$0xff]  ;;  %v1627_v36 = vld [vmem:[%s2307_s2 + $0x28] sm:$0xff] }
   0xc   :  { %v1601_v31 = vld [vmem:[%s2308_s0 + $0x98] sm:$0xff]  ;;  %v1642_v33 = vld [vmem:[%s2307_s2 + $0xa0] sm:$0xff]  ;;  %v1643_v37 = vld [vmem:[%s2307_s2 + $0xa8] sm:$0xff] }
   0xd   :  { %v1586_v34 = vld [vmem:[%s2308_s0 + $0x20] sm:$0xff]  ;;  %v1587_v38 = vld [vmem:[%s2308_s0 + $0x28] sm:$0xff]  ;;  %v1628_v40 = vld [vmem:[%s2307_s2 + $0x30] sm:$0xff] }
   0xe   :  { %423 = vmatpush.bf16.msra.mxu0 %v1658_v6  ;;  %1856 = vmatpush.bf16.msra.mxu2 %v1658_v6  ;;  %v1602_v35 = vld [vmem:[%s2308_s0 + $0xa0] sm:$0xff]  ;;  %v1603_v39 = vld [vmem:[%s2308_s0 + $0xa8] sm:$0xff]  ;;  %v1644_v41 = vld [vmem:[%s2307_s2 + $0xb0] sm:$0xff] }
   0xf   :  { %832 = vmatpush.bf16.msra.mxu1 %v1618_v7  ;;  %1864 = vmatpush.bf16.msra.mxu3 %v1618_v7  ;;  %v1588_v42 = vld [vmem:[%s2308_s0 + $0x30] sm:$0xff]  ;;  %v1629_v44 = vld [vmem:[%s2307_s2 + $0x38] sm:$0xff]  ;;  %v1630_v48 = vld [vmem:[%s2307_s2 + $0x40] sm:$0xff] }
  0x10   :  { %v1604_v43 = vld [vmem:[%s2308_s0 + $0xb0] sm:$0xff]  ;;  %v1645_v45 = vld [vmem:[%s2307_s2 + $0xb8] sm:$0xff]  ;;  %v1646_v49 = vld [vmem:[%s2307_s2 + $0xc0] sm:$0xff] }
  0x11   :  { %v1589_v46 = vld [vmem:[%s2308_s0 + $0x38] sm:$0xff]  ;;  %v1590_v51 = vld [vmem:[%s2308_s0 + $0x40] sm:$0xff]  ;;  %v1631_v4 = vld [vmem:[%s2307_s2 + $0x48] sm:$0xff] }
  0x12   :  { %424 = vmatpush.bf16.msra.mxu0 %v1657_v8  ;;  %1857 = vmatpush.bf16.msra.mxu2 %v1657_v8  ;;  %v1605_v47 = vld [vmem:[%s2308_s0 + $0xb8] sm:$0xff]  ;;  %v1606_v52 = vld [vmem:[%s2308_s0 + $0xc0] sm:$0xff]  ;;  %v1647_v5 = vld [vmem:[%s2307_s2 + $0xc8] sm:$0xff] }
  0x13   :  { %833 = vmatpush.bf16.msra.mxu1 %v1617_v9  ;;  %1865 = vmatpush.bf16.msra.mxu3 %v1617_v9  ;;  %v2059_v55 = vld [vmem:[%s2309_s4] ss:$0 sm:$0xff] }
  0x16   :  { %425 = vmatpush.bf16.msra.mxu0 %v1656_v10  ;;  %1858 = vmatpush.bf16.msra.mxu2 %v1656_v10  ;;  %v1591_v10 = vld [vmem:[%s2308_s0 + $0x48] sm:$0xff] }
  0x17   :  { %834 = vmatpush.bf16.msra.mxu1 %v1616_v11  ;;  %1866 = vmatpush.bf16.msra.mxu3 %v1616_v11  ;;  %v1607_v11 = vld [vmem:[%s2308_s0 + $0xc8] sm:$0xff] }
  0x1a   :  { %426 = vmatpush.bf16.msra.mxu0 %v1655_v12  ;;  %1859 = vmatpush.bf16.msra.mxu2 %v1655_v12 }
  0x1b   :  { %835 = vmatpush.bf16.msra.mxu1 %v1615_v13  ;;  %1867 = vmatpush.bf16.msra.mxu3 %v1615_v13 }
  0x1e   :  { %427 = vmatpush.bf16.msra.mxu0 %v1654_v14  ;;  %1860 = vmatpush.bf16.msra.mxu2 %v1654_v14 }
  0x1f   :  { %836 = vmatpush.bf16.msra.mxu1 %v1614_v15  ;;  %1868 = vmatpush.bf16.msra.mxu3 %v1614_v15 }
  0x21   :  { %428 = vmatmul.bf16.vlgmr.msra.gmra.mxu0 %v1622_v16  ;;  %508 = vmatmul.bf16.vlgmr.msra.gmra.mxu2 %v1638_v17 }
  0x22   :  { %837 = vmatmul.bf16.vlgmr.msra.gmra.mxu1 %v1582_v18  ;;  %917 = vmatmul.bf16.vlgmr.msra.gmra.mxu3 %v1598_v19 }
  0x31   :  { %433 = vmatmul.bf16.gmra.mxu0 %v1623_v20  ;;  %513 = vmatmul.bf16.gmra.mxu2 %v1639_v21 }
  0x32   :  { %842 = vmatmul.bf16.gmra.mxu1 %v1583_v22  ;;  %922 = vmatmul.bf16.gmra.mxu3 %v1599_v23 }
  0x41   :  { %438 = vmatmul.bf16.gmra.mxu0 %v1624_v24  ;;  %518 = vmatmul.bf16.gmra.mxu2 %v1640_v25 }
  0x42   :  { %847 = vmatmul.bf16.gmra.mxu1 %v1584_v26  ;;  %927 = vmatmul.bf16.gmra.mxu3 %v1600_v27 }
  0x51   :  { %443 = vmatmul.bf16.gmra.mxu0 %v1625_v28  ;;  %523 = vmatmul.bf16.gmra.mxu2 %v1641_v29 }
  0x52   :  { %852 = vmatmul.bf16.gmra.mxu1 %v1585_v30  ;;  %932 = vmatmul.bf16.gmra.mxu3 %v1601_v31  ;;  %v1632_v30 = vld [vmem:[%s2307_s2 + $0x50] sm:$0xff] }
  0x53   :  { %v1648_v31 = vld [vmem:[%s2307_s2 + $0xd0] sm:$0xff] }
  0x61   :  { %448 = vmatmul.bf16.gmra.mxu0 %v1626_v32  ;;  %528 = vmatmul.bf16.gmra.mxu2 %v1642_v33 }
  0x62   :  { %857 = vmatmul.bf16.gmra.mxu1 %v1586_v34  ;;  %937 = vmatmul.bf16.gmra.mxu3 %v1602_v35 }
  0x71   :  { %453 = vmatmul.bf16.gmra.mxu0 %v1627_v36  ;;  %533 = vmatmul.bf16.gmra.mxu2 %v1643_v37  ;;  %v1592_v36 = vld [vmem:[%s2308_s0 + $0x50] sm:$0xff] }
  0x72   :  { %862 = vmatmul.bf16.gmra.mxu1 %v1587_v38  ;;  %942 = vmatmul.bf16.gmra.mxu3 %v1603_v39  ;;  %v1608_v37 = vld [vmem:[%s2308_s0 + $0xd0] sm:$0xff] }
  0x81   :  { %458 = vmatmul.bf16.gmra.mxu0 %v1628_v40  ;;  %538 = vmatmul.bf16.gmra.mxu2 %v1644_v41 }
  0x82   :  { %867 = vmatmul.bf16.gmra.mxu1 %v1588_v42  ;;  %947 = vmatmul.bf16.gmra.mxu3 %v1604_v43 }
  0x91   :  { %463 = vmatmul.bf16.gmra.mxu0 %v1629_v44  ;;  %543 = vmatmul.bf16.gmra.mxu2 %v1645_v45 }
  0x92   :  { %872 = vmatmul.bf16.gmra.mxu1 %v1589_v46  ;;  %952 = vmatmul.bf16.gmra.mxu3 %v1605_v47 }
  0x9e   :  { %v429_v50 = vpop.f32.mrf.mxu0 }
  0x9f   :  { %v838_v53 = vpop.f32.mrf.mxu1 }
  0xa0   :  { %v839_v54 = vadd.f32 %v838_v53, %v429_v50 }
  0xa1   :  { %468 = vmatmul.bf16.gmra.mxu0 %v1630_v48  ;;  %548 = vmatmul.bf16.gmra.mxu2 %v1646_v49 }
  0xa2   :  { %877 = vmatmul.bf16.gmra.mxu1 %v1590_v51  ;;  %957 = vmatmul.bf16.gmra.mxu3 %v1606_v52  ;;  %v1002_v60 = vadd.f32 %v2059_v55, %v839_v54 }
  0xa4   :  { %v509_v56 = vpop.f32.mrf.mxu2  ;;  %v1066_v0 = vmax.f32 %v1002_v60, 0.0 }
  0xa5   :  { %v918_v57 = vpop.f32.mrf.mxu3 }
  0xa6   :  { %v431_v58 = vpop.f32.mrf.mxu0  ;;  %v919_v62 = vadd.f32 %v918_v57, %v509_v56  ;;  %v1633_v57 = vld [vmem:[%s2307_s2 + $0x58] sm:$0xff] }
  0xa7   :  { %v840_v59 = vpop.f32.mrf.mxu1 }
  0xa8   :  { %v841_v61 = vadd.f32 %v840_v59, %v431_v58  ;;  %v1034_v6 = vadd.f32 %v2059_v55, %v919_v62  ;;  %v1649_v58 = vld [vmem:[%s2307_s2 + $0xd8] sm:$0xff] }
  0xaa   :  { %v1003_v63 = vadd.f32 %v2059_v55, %v841_v61  ;;  %v1098_v14 = vmax.f32 %v1034_v6, 0.0 }
  0xac   :  { %v1067_v1 = vmax.f32 %v1003_v63, 0.0  ;;  %v511_v2 = vpop.f32.mrf.mxu2  ;;  %v1593_v63 = vld [vmem:[%s2308_s0 + $0x58] sm:$0xff] }
  0xad   :  { %v920_v3 = vpop.f32.mrf.mxu3 }
  0xae   :  { %v1665_v7 = vpack.c.bf16 %v1067_v1, %v1066_v0  ;;  %v921_v8 = vadd.f32 %v920_v3, %v511_v2  ;;  %v434_v9 = vpop.f32.mrf.mxu0  ;;  %v1609_v0 = vld [vmem:[%s2308_s0 + $0xd8] sm:$0xff] }
  0xaf   :  { %v843_v12 = vpop.f32.mrf.mxu1 }
  0xb0   :  { %1666 = vst [vmem:[%s2310_s5] sm:$0xff] %v1665_v7   ;;  %v1035_v13 = vadd.f32 %v2059_v55, %v921_v8  ;;  %v844_v17 = vadd.f32 %v843_v12, %v434_v9 }
  0xb1   :  { %473 = vmatmul.bf16.gmra.mxu0 %v1631_v4  ;;  %553 = vmatmul.bf16.gmra.mxu2 %v1647_v5 }
  0xb2   :  { %v1099_v15 = vmax.f32 %v1035_v13, 0.0  ;;  %882 = vmatmul.bf16.gmra.mxu1 %v1591_v10  ;;  %962 = vmatmul.bf16.gmra.mxu3 %v1607_v11  ;;  %v1004_v22 = vadd.f32 %v2059_v55, %v844_v17 }
  0xb4   :  { %v1745_v16 = vpack.c.bf16 %v1099_v15, %v1098_v14  ;;  %v514_v18 = vpop.f32.mrf.mxu2  ;;  %v1068_v26 = vmax.f32 %v1004_v22, 0.0 }
  0xb5   :  { %v923_v19 = vpop.f32.mrf.mxu3 }
  0xb6   :  { %1837 = vst [vmem:[%s2310_s5 + $0x80] sm:$0xff] %v1745_v16   ;;  %v436_v20 = vpop.f32.mrf.mxu0  ;;  %v924_v24 = vadd.f32 %v923_v19, %v514_v18  ;;  %v1634_v19 = vld [vmem:[%s2307_s2 + $0x60] sm:$0xff] }
  0xb7   :  { %v845_v21 = vpop.f32.mrf.mxu1 }
  0xb8   :  { %v846_v23 = vadd.f32 %v845_v21, %v436_v20  ;;  %v1036_v32 = vadd.f32 %v2059_v55, %v924_v24  ;;  %v1650_v20 = vld [vmem:[%s2307_s2 + $0xe0] sm:$0xff] }
  0xba   :  { %v1005_v25 = vadd.f32 %v2059_v55, %v846_v23  ;;  %v1100_v40 = vmax.f32 %v1036_v32, 0.0 }
  0xbc   :  { %v1069_v27 = vmax.f32 %v1005_v25, 0.0  ;;  %v516_v28 = vpop.f32.mrf.mxu2  ;;  %v1594_v25 = vld [vmem:[%s2308_s0 + $0x60] sm:$0xff] }
  0xbd   :  { %v925_v29 = vpop.f32.mrf.mxu3 }
  0xbe   :  { %v1670_v33 = vpack.c.bf16 %v1069_v27, %v1068_v26  ;;  %v926_v34 = vadd.f32 %v925_v29, %v516_v28  ;;  %v439_v35 = vpop.f32.mrf.mxu0  ;;  %v1610_v26 = vld [vmem:[%s2308_s0 + $0xe0] sm:$0xff] }
  0xbf   :  { %v848_v38 = vpop.f32.mrf.mxu1 }
  0xc0   :  { %1822 = vst [vmem:[%s2310_s5 + $0x8] sm:$0xff] %v1670_v33   ;;  %v1037_v39 = vadd.f32 %v2059_v55, %v926_v34  ;;  %v849_v43 = vadd.f32 %v848_v38, %v439_v35 }
  0xc1   :  { %478 = vmatmul.bf16.gmra.mxu0 %v1632_v30  ;;  %558 = vmatmul.bf16.gmra.mxu2 %v1648_v31 }
  0xc2   :  { %v1101_v41 = vmax.f32 %v1037_v39, 0.0  ;;  %887 = vmatmul.bf16.gmra.mxu1 %v1592_v36  ;;  %967 = vmatmul.bf16.gmra.mxu3 %v1608_v37  ;;  %v1006_v48 = vadd.f32 %v2059_v55, %v849_v43 }
  0xc4   :  { %v1750_v42 = vpack.c.bf16 %v1101_v41, %v1100_v40  ;;  %v519_v44 = vpop.f32.mrf.mxu2  ;;  %v1070_v52 = vmax.f32 %v1006_v48, 0.0 }
  0xc5   :  { %v928_v45 = vpop.f32.mrf.mxu3 }
  0xc6   :  { %1838 = vst [vmem:[%s2310_s5 + $0x88] sm:$0xff] %v1750_v42   ;;  %v441_v46 = vpop.f32.mrf.mxu0  ;;  %v929_v50 = vadd.f32 %v928_v45, %v519_v44  ;;  %v1635_v45 = vld [vmem:[%s2307_s2 + $0x68] sm:$0xff] }
  0xc7   :  { %v850_v47 = vpop.f32.mrf.mxu1 }
  0xc8   :  { %v851_v49 = vadd.f32 %v850_v47, %v441_v46  ;;  %v1038_v59 = vadd.f32 %v2059_v55, %v929_v50  ;;  %v1651_v46 = vld [vmem:[%s2307_s2 + $0xe8] sm:$0xff] }
  0xca   :  { %v1007_v51 = vadd.f32 %v2059_v55, %v851_v49  ;;  %v1102_v3 = vmax.f32 %v1038_v59, 0.0 }
  0xcc   :  { %v1071_v53 = vmax.f32 %v1007_v51, 0.0  ;;  %v521_v54 = vpop.f32.mrf.mxu2  ;;  %v1595_v51 = vld [vmem:[%s2308_s0 + $0x68] sm:$0xff] }
  0xcd   :  { %v930_v56 = vpop.f32.mrf.mxu3 }
  0xce   :  { %v1675_v60 = vpack.c.bf16 %v1071_v53, %v1070_v52  ;;  %v931_v61 = vadd.f32 %v930_v56, %v521_v54  ;;  %v444_v62 = vpop.f32.mrf.mxu0  ;;  %v1611_v52 = vld [vmem:[%s2308_s0 + $0xe8] sm:$0xff] }
  0xcf   :  { %v853_v1 = vpop.f32.mrf.mxu1 }
  0xd0   :  { %1823 = vst [vmem:[%s2310_s5 + $0x10] sm:$0xff] %v1675_v60   ;;  %v1039_v2 = vadd.f32 %v2059_v55, %v931_v61  ;;  %v854_v6 = vadd.f32 %v853_v1, %v444_v62 }
  0xd1   :  { %483 = vmatmul.bf16.gmra.mxu0 %v1633_v57  ;;  %563 = vmatmul.bf16.gmra.mxu2 %v1649_v58 }
  0xd2   :  { %v1103_v4 = vmax.f32 %v1039_v2, 0.0  ;;  %892 = vmatmul.bf16.gmra.mxu1 %v1593_v63  ;;  %972 = vmatmul.bf16.gmra.mxu3 %v1609_v0  ;;  %v1008_v11 = vadd.f32 %v2059_v55, %v854_v6 }
  0xd4   :  { %v1755_v5 = vpack.c.bf16 %v1103_v4, %v1102_v3  ;;  %v524_v7 = vpop.f32.mrf.mxu2  ;;  %v1072_v15 = vmax.f32 %v1008_v11, 0.0 }
  0xd5   :  { %v933_v8 = vpop.f32.mrf.mxu3 }
  0xd6   :  { %1839 = vst [vmem:[%s2310_s5 + $0x90] sm:$0xff] %v1755_v5   ;;  %v446_v9 = vpop.f32.mrf.mxu0  ;;  %v934_v13 = vadd.f32 %v933_v8, %v524_v7  ;;  %v1636_v8 = vld [vmem:[%s2307_s2 + $0x70] sm:$0xff] }
  0xd7   :  { %v855_v10 = vpop.f32.mrf.mxu1 }
  0xd8   :  { %v856_v12 = vadd.f32 %v855_v10, %v446_v9  ;;  %v1040_v21 = vadd.f32 %v2059_v55, %v934_v13  ;;  %v1652_v9 = vld [vmem:[%s2307_s2 + $0xf0] sm:$0xff] }
  0xda   :  { %v1009_v14 = vadd.f32 %v2059_v55, %v856_v12  ;;  %v1104_v29 = vmax.f32 %v1040_v21, 0.0 }
  0xdc   :  { %v1073_v16 = vmax.f32 %v1009_v14, 0.0  ;;  %v526_v17 = vpop.f32.mrf.mxu2  ;;  %v1596_v14 = vld [vmem:[%s2308_s0 + $0x70] sm:$0xff] }
  0xdd   :  { %v935_v18 = vpop.f32.mrf.mxu3 }
  0xde   :  { %v1680_v22 = vpack.c.bf16 %v1073_v16, %v1072_v15  ;;  %v936_v23 = vadd.f32 %v935_v18, %v526_v17  ;;  %v449_v24 = vpop.f32.mrf.mxu0  ;;  %v1612_v15 = vld [vmem:[%s2308_s0 + $0xf0] sm:$0xff] }
  0xdf   :  { %v858_v27 = vpop.f32.mrf.mxu1 }
  0xe0   :  { %1824 = vst [vmem:[%s2310_s5 + $0x18] sm:$0xff] %v1680_v22   ;;  %v1041_v28 = vadd.f32 %v2059_v55, %v936_v23  ;;  %v859_v32 = vadd.f32 %v858_v27, %v449_v24 }
  0xe1   :  { %488 = vmatmul.bf16.gmra.mxu0 %v1634_v19  ;;  %568 = vmatmul.bf16.gmra.mxu2 %v1650_v20 }
  0xe2   :  { %v1105_v30 = vmax.f32 %v1041_v28, 0.0  ;;  %897 = vmatmul.bf16.gmra.mxu1 %v1594_v25  ;;  %977 = vmatmul.bf16.gmra.mxu3 %v1610_v26  ;;  %v1010_v37 = vadd.f32 %v2059_v55, %v859_v32 }
  0xe4   :  { %v1760_v31 = vpack.c.bf16 %v1105_v30, %v1104_v29  ;;  %v529_v33 = vpop.f32.mrf.mxu2  ;;  %v1074_v41 = vmax.f32 %v1010_v37, 0.0 }
  0xe5   :  { %v938_v34 = vpop.f32.mrf.mxu3 }
  0xe6   :  { %1840 = vst [vmem:[%s2310_s5 + $0x98] sm:$0xff] %v1760_v31   ;;  %v451_v35 = vpop.f32.mrf.mxu0  ;;  %v939_v39 = vadd.f32 %v938_v34, %v529_v33  ;;  %v1637_v34 = vld [vmem:[%s2307_s2 + $0x78] sm:$0xff] }
  0xe7   :  { %v860_v36 = vpop.f32.mrf.mxu1 }
  0xe8   :  { %v861_v38 = vadd.f32 %v860_v36, %v451_v35  ;;  %v1042_v47 = vadd.f32 %v2059_v55, %v939_v39  ;;  %v1653_v35 = vld [vmem:[%s2307_s2 + $0xf8] sm:$0xff] }
  0xea   :  { %v1011_v40 = vadd.f32 %v2059_v55, %v861_v38  ;;  %v1106_v56 = vmax.f32 %v1042_v47, 0.0 }
  0xec   :  { %v1075_v42 = vmax.f32 %v1011_v40, 0.0  ;;  %v531_v43 = vpop.f32.mrf.mxu2  ;;  %v1597_v40 = vld [vmem:[%s2308_s0 + $0x78] sm:$0xff] }
  0xed   :  { %v940_v44 = vpop.f32.mrf.mxu3 }
  0xee   :  { %v1685_v48 = vpack.c.bf16 %v1075_v42, %v1074_v41  ;;  %v941_v49 = vadd.f32 %v940_v44, %v531_v43  ;;  %v454_v50 = vpop.f32.mrf.mxu0  ;;  %v1613_v41 = vld [vmem:[%s2308_s0 + $0xf8] sm:$0xff] }
  0xef   :  { %v863_v53 = vpop.f32.mrf.mxu1 }
  0xf0   :  { %1825 = vst [vmem:[%s2310_s5 + $0x20] sm:$0xff] %v1685_v48   ;;  %v1043_v54 = vadd.f32 %v2059_v55, %v941_v49  ;;  %v864_v59 = vadd.f32 %v863_v53, %v454_v50 }
  0xf1   :  { %493 = vmatmul.bf16.gmra.mxu0 %v1635_v45  ;;  %573 = vmatmul.bf16.gmra.mxu2 %v1651_v46 }
  0xf2   :  { %v1107_v57 = vmax.f32 %v1043_v54, 0.0  ;;  %902 = vmatmul.bf16.gmra.mxu1 %v1595_v51  ;;  %982 = vmatmul.bf16.gmra.mxu3 %v1611_v52  ;;  %v1012_v0 = vadd.f32 %v2059_v55, %v864_v59 }
  0xf4   :  { %v1765_v58 = vpack.c.bf16 %v1107_v57, %v1106_v56  ;;  %v534_v60 = vpop.f32.mrf.mxu2  ;;  %v1076_v4 = vmax.f32 %v1012_v0, 0.0 }
  0xf5   :  { %v943_v61 = vpop.f32.mrf.mxu3 }
  0xf6   :  { %1841 = vst [vmem:[%s2310_s5 + $0xa0] sm:$0xff] %v1765_v58   ;;  %v456_v62 = vpop.f32.mrf.mxu0  ;;  %v944_v2 = vadd.f32 %v943_v61, %v534_v60 }
  0xf7   :  { %v865_v63 = vpop.f32.mrf.mxu1 }
  0xf8   :  { %v866_v1 = vadd.f32 %v865_v63, %v456_v62  ;;  %v1044_v10 = vadd.f32 %v2059_v55, %v944_v2 }
  0xfa   :  { %v1013_v3 = vadd.f32 %v2059_v55, %v866_v1  ;;  %v1108_v18 = vmax.f32 %v1044_v10, 0.0 }
  0xfc   :  { %v1077_v5 = vmax.f32 %v1013_v3, 0.0  ;;  %v536_v6 = vpop.f32.mrf.mxu2 }
  0xfd   :  { %v945_v7 = vpop.f32.mrf.mxu3 }
  0xfe   :  { %v1690_v11 = vpack.c.bf16 %v1077_v5, %v1076_v4  ;;  %v946_v12 = vadd.f32 %v945_v7, %v536_v6  ;;  %v459_v13 = vpop.f32.mrf.mxu0 }
  0xff   :  { %v868_v16 = vpop.f32.mrf.mxu1 }
 0x100   :  { %1826 = vst [vmem:[%s2310_s5 + $0x28] sm:$0xff] %v1690_v11   ;;  %v1045_v17 = vadd.f32 %v2059_v55, %v946_v12  ;;  %v869_v21 = vadd.f32 %v868_v16, %v459_v13 }
 0x101   :  { %498 = vmatmul.bf16.gmra.mxu0 %v1636_v8  ;;  %578 = vmatmul.bf16.gmra.mxu2 %v1652_v9 }
 0x102   :  { %v1109_v19 = vmax.f32 %v1045_v17, 0.0  ;;  %907 = vmatmul.bf16.gmra.mxu1 %v1596_v14  ;;  %987 = vmatmul.bf16.gmra.mxu3 %v1612_v15  ;;  %v1014_v26 = vadd.f32 %v2059_v55, %v869_v21 }
 0x104   :  { %v1770_v20 = vpack.c.bf16 %v1109_v19, %v1108_v18  ;;  %v539_v22 = vpop.f32.mrf.mxu2  ;;  %v1078_v30 = vmax.f32 %v1014_v26, 0.0 }
 0x105   :  { %v948_v23 = vpop.f32.mrf.mxu3 }
 0x106   :  { %1842 = vst [vmem:[%s2310_s5 + $0xa8] sm:$0xff] %v1770_v20   ;;  %v461_v24 = vpop.f32.mrf.mxu0  ;;  %v949_v28 = vadd.f32 %v948_v23, %v539_v22 }
 0x107   :  { %v870_v25 = vpop.f32.mrf.mxu1 }
 0x108   :  { %v871_v27 = vadd.f32 %v870_v25, %v461_v24  ;;  %v1046_v36 = vadd.f32 %v2059_v55, %v949_v28 }
 0x10a   :  { %v1015_v29 = vadd.f32 %v2059_v55, %v871_v27  ;;  %v1110_v44 = vmax.f32 %v1046_v36, 0.0 }
 0x10c   :  { %v1079_v31 = vmax.f32 %v1015_v29, 0.0  ;;  %v541_v32 = vpop.f32.mrf.mxu2 }
 0x10d   :  { %v950_v33 = vpop.f32.mrf.mxu3 }
 0x10e   :  { %v1695_v37 = vpack.c.bf16 %v1079_v31, %v1078_v30  ;;  %v951_v38 = vadd.f32 %v950_v33, %v541_v32  ;;  %v464_v39 = vpop.f32.mrf.mxu0 }
 0x10f   :  { %v873_v42 = vpop.f32.mrf.mxu1 }
 0x110   :  { %1827 = vst [vmem:[%s2310_s5 + $0x30] sm:$0xff] %v1695_v37   ;;  %v1047_v43 = vadd.f32 %v2059_v55, %v951_v38  ;;  %v874_v47 = vadd.f32 %v873_v42, %v464_v39 }
 0x111   :  { %503 = vmatmul.bf16.gmra.mxu0 %v1637_v34  ;;  %583 = vmatmul.bf16.gmra.mxu2 %v1653_v35 }
 0x112   :  { %v1111_v45 = vmax.f32 %v1047_v43, 0.0  ;;  %912 = vmatmul.bf16.gmra.mxu1 %v1597_v40  ;;  %992 = vmatmul.bf16.gmra.mxu3 %v1613_v41  ;;  %v1016_v52 = vadd.f32 %v2059_v55, %v874_v47 }
 0x114   :  { %v1775_v46 = vpack.c.bf16 %v1111_v45, %v1110_v44  ;;  %v544_v48 = vpop.f32.mrf.mxu2  ;;  %v1080_v57 = vmax.f32 %v1016_v52, 0.0 }
 0x115   :  { %v953_v49 = vpop.f32.mrf.mxu3 }
 0x116   :  { %1843 = vst [vmem:[%s2310_s5 + $0xb0] sm:$0xff] %v1775_v46   ;;  %v466_v50 = vpop.f32.mrf.mxu0  ;;  %v954_v54 = vadd.f32 %v953_v49, %v544_v48 }
 0x117   :  { %v875_v51 = vpop.f32.mrf.mxu1 }
 0x118   :  { %v876_v53 = vadd.f32 %v875_v51, %v466_v50  ;;  %v1048_v61 = vadd.f32 %v2059_v55, %v954_v54 }
 0x11a   :  { %v1017_v56 = vadd.f32 %v2059_v55, %v876_v53  ;;  %v1112_v3 = vmax.f32 %v1048_v61, 0.0 }
 0x11c   :  { %v1081_v58 = vmax.f32 %v1017_v56, 0.0  ;;  %v546_v59 = vpop.f32.mrf.mxu2 }
 0x11d   :  { %v955_v60 = vpop.f32.mrf.mxu3 }
 0x11e   :  { %v1700_v62 = vpack.c.bf16 %v1081_v58, %v1080_v57  ;;  %v956_v63 = vadd.f32 %v955_v60, %v546_v59  ;;  %v469_v0 = vpop.f32.mrf.mxu0 }
 0x11f   :  { %v878_v1 = vpop.f32.mrf.mxu1 }
 0x120   :  { %1828 = vst [vmem:[%s2310_s5 + $0x38] sm:$0xff] %v1700_v62   ;;  %v1049_v2 = vadd.f32 %v2059_v55, %v956_v63  ;;  %v879_v6 = vadd.f32 %v878_v1, %v469_v0 }
 0x122   :  { %v1113_v4 = vmax.f32 %v1049_v2, 0.0  ;;  %v1018_v11 = vadd.f32 %v2059_v55, %v879_v6 }
 0x124   :  { %v1780_v5 = vpack.c.bf16 %v1113_v4, %v1112_v3  ;;  %v549_v7 = vpop.f32.mrf.mxu2  ;;  %v1082_v15 = vmax.f32 %v1018_v11, 0.0 }
 0x125   :  { %v958_v8 = vpop.f32.mrf.mxu3 }
 0x126   :  { %1844 = vst [vmem:[%s2310_s5 + $0xb8] sm:$0xff] %v1780_v5   ;;  %v471_v9 = vpop.f32.mrf.mxu0  ;;  %v959_v13 = vadd.f32 %v958_v8, %v549_v7 }
 0x127   :  { %v880_v10 = vpop.f32.mrf.mxu1 }
 0x128   :  { %v881_v12 = vadd.f32 %v880_v10, %v471_v9  ;;  %v1050_v19 = vadd.f32 %v2059_v55, %v959_v13 }
 0x12a   :  { %v1019_v14 = vadd.f32 %v2059_v55, %v881_v12  ;;  %v1114_v25 = vmax.f32 %v1050_v19, 0.0 }
 0x12c   :  { %v1083_v16 = vmax.f32 %v1019_v14, 0.0  ;;  %v551_v17 = vpop.f32.mrf.mxu2 }
 0x12d   :  { %v960_v18 = vpop.f32.mrf.mxu3 }
 0x12e   :  { %v1705_v20 = vpack.c.bf16 %v1083_v16, %v1082_v15  ;;  %v961_v21 = vadd.f32 %v960_v18, %v551_v17  ;;  %v474_v22 = vpop.f32.mrf.mxu0 }
 0x12f   :  { %v883_v23 = vpop.f32.mrf.mxu1 }
 0x130   :  { %1829 = vst [vmem:[%s2310_s5 + $0x40] sm:$0xff] %v1705_v20   ;;  %v1051_v24 = vadd.f32 %v2059_v55, %v961_v21  ;;  %v884_v28 = vadd.f32 %v883_v23, %v474_v22 }
 0x132   :  { %v1115_v26 = vmax.f32 %v1051_v24, 0.0  ;;  %v1020_v33 = vadd.f32 %v2059_v55, %v884_v28 }
 0x134   :  { %v1785_v27 = vpack.c.bf16 %v1115_v26, %v1114_v25  ;;  %v554_v29 = vpop.f32.mrf.mxu2  ;;  %v1084_v37 = vmax.f32 %v1020_v33, 0.0 }
 0x135   :  { %v963_v30 = vpop.f32.mrf.mxu3 }
 0x136   :  { %1845 = vst [vmem:[%s2310_s5 + $0xc0] sm:$0xff] %v1785_v27   ;;  %v476_v31 = vpop.f32.mrf.mxu0  ;;  %v964_v35 = vadd.f32 %v963_v30, %v554_v29 }
 0x137   :  { %v885_v32 = vpop.f32.mrf.mxu1 }
 0x138   :  { %v886_v34 = vadd.f32 %v885_v32, %v476_v31  ;;  %v1052_v41 = vadd.f32 %v2059_v55, %v964_v35 }
 0x13a   :  { %v1021_v36 = vadd.f32 %v2059_v55, %v886_v34  ;;  %v1116_v47 = vmax.f32 %v1052_v41, 0.0 }
 0x13c   :  { %v1085_v38 = vmax.f32 %v1021_v36, 0.0  ;;  %v556_v39 = vpop.f32.mrf.mxu2 }
 0x13d   :  { %v965_v40 = vpop.f32.mrf.mxu3 }
 0x13e   :  { %v1710_v42 = vpack.c.bf16 %v1085_v38, %v1084_v37  ;;  %v966_v43 = vadd.f32 %v965_v40, %v556_v39  ;;  %v479_v44 = vpop.f32.mrf.mxu0 }
 0x13f   :  { %v888_v45 = vpop.f32.mrf.mxu1 }
 0x140   :  { %1830 = vst [vmem:[%s2310_s5 + $0x48] sm:$0xff] %v1710_v42   ;;  %v1053_v46 = vadd.f32 %v2059_v55, %v966_v43  ;;  %v889_v50 = vadd.f32 %v888_v45, %v479_v44 }
 0x142   :  { %v1117_v48 = vmax.f32 %v1053_v46, 0.0  ;;  %v1022_v56 = vadd.f32 %v2059_v55, %v889_v50 }
 0x144   :  { %v1790_v49 = vpack.c.bf16 %v1117_v48, %v1116_v47  ;;  %v559_v51 = vpop.f32.mrf.mxu2  ;;  %v1086_v60 = vmax.f32 %v1022_v56, 0.0 }
 0x145   :  { %v968_v52 = vpop.f32.mrf.mxu3 }
 0x146   :  { %1846 = vst [vmem:[%s2310_s5 + $0xc8] sm:$0xff] %v1790_v49   ;;  %v481_v53 = vpop.f32.mrf.mxu0  ;;  %v969_v58 = vadd.f32 %v968_v52, %v559_v51 }
 0x147   :  { %v890_v54 = vpop.f32.mrf.mxu1 }
 0x148   :  { %v891_v57 = vadd.f32 %v890_v54, %v481_v53  ;;  %v1054_v0 = vadd.f32 %v2059_v55, %v969_v58 }
 0x14a   :  { %v1023_v59 = vadd.f32 %v2059_v55, %v891_v57  ;;  %v1118_v6 = vmax.f32 %v1054_v0, 0.0 }
 0x14c   :  { %v1087_v61 = vmax.f32 %v1023_v59, 0.0  ;;  %v561_v62 = vpop.f32.mrf.mxu2 }
 0x14d   :  { %v970_v63 = vpop.f32.mrf.mxu3 }
 0x14e   :  { %v1715_v1 = vpack.c.bf16 %v1087_v61, %v1086_v60  ;;  %v971_v2 = vadd.f32 %v970_v63, %v561_v62  ;;  %v484_v3 = vpop.f32.mrf.mxu0 }
 0x14f   :  { %v893_v4 = vpop.f32.mrf.mxu1 }
 0x150   :  { %1831 = vst [vmem:[%s2310_s5 + $0x50] sm:$0xff] %v1715_v1   ;;  %v1055_v5 = vadd.f32 %v2059_v55, %v971_v2  ;;  %v894_v9 = vadd.f32 %v893_v4, %v484_v3 }
 0x152   :  { %v1119_v7 = vmax.f32 %v1055_v5, 0.0  ;;  %v1024_v14 = vadd.f32 %v2059_v55, %v894_v9 }
 0x154   :  { %v1795_v8 = vpack.c.bf16 %v1119_v7, %v1118_v6  ;;  %v564_v10 = vpop.f32.mrf.mxu2  ;;  %v1088_v18 = vmax.f32 %v1024_v14, 0.0 }
 0x155   :  { %v973_v11 = vpop.f32.mrf.mxu3 }
 0x156   :  { %1847 = vst [vmem:[%s2310_s5 + $0xd0] sm:$0xff] %v1795_v8   ;;  %v486_v12 = vpop.f32.mrf.mxu0  ;;  %v974_v16 = vadd.f32 %v973_v11, %v564_v10 }
 0x157   :  { %v895_v13 = vpop.f32.mrf.mxu1 }
 0x158   :  { %v896_v15 = vadd.f32 %v895_v13, %v486_v12  ;;  %v1056_v22 = vadd.f32 %v2059_v55, %v974_v16 }
 0x15a   :  { %v1025_v17 = vadd.f32 %v2059_v55, %v896_v15  ;;  %v1120_v28 = vmax.f32 %v1056_v22, 0.0 }
 0x15c   :  { %v1089_v19 = vmax.f32 %v1025_v17, 0.0  ;;  %v566_v20 = vpop.f32.mrf.mxu2 }
 0x15d   :  { %v975_v21 = vpop.f32.mrf.mxu3 }
 0x15e   :  { %v1720_v23 = vpack.c.bf16 %v1089_v19, %v1088_v18  ;;  %v976_v24 = vadd.f32 %v975_v21, %v566_v20  ;;  %v489_v25 = vpop.f32.mrf.mxu0 }
 0x15f   :  { %v898_v26 = vpop.f32.mrf.mxu1 }
 0x160   :  { %1832 = vst [vmem:[%s2310_s5 + $0x58] sm:$0xff] %v1720_v23   ;;  %v1057_v27 = vadd.f32 %v2059_v55, %v976_v24  ;;  %v899_v31 = vadd.f32 %v898_v26, %v489_v25 }
 0x162   :  { %v1121_v29 = vmax.f32 %v1057_v27, 0.0  ;;  %v1026_v36 = vadd.f32 %v2059_v55, %v899_v31 }
 0x164   :  { %v1800_v30 = vpack.c.bf16 %v1121_v29, %v1120_v28  ;;  %v569_v32 = vpop.f32.mrf.mxu2  ;;  %v1090_v40 = vmax.f32 %v1026_v36, 0.0 }
 0x165   :  { %v978_v33 = vpop.f32.mrf.mxu3 }
 0x166   :  { %1848 = vst [vmem:[%s2310_s5 + $0xd8] sm:$0xff] %v1800_v30   ;;  %v491_v34 = vpop.f32.mrf.mxu0  ;;  %v979_v38 = vadd.f32 %v978_v33, %v569_v32 }
 0x167   :  { %v900_v35 = vpop.f32.mrf.mxu1 }
 0x168   :  { %v901_v37 = vadd.f32 %v900_v35, %v491_v34  ;;  %v1058_v44 = vadd.f32 %v2059_v55, %v979_v38 }
 0x16a   :  { %v1027_v39 = vadd.f32 %v2059_v55, %v901_v37  ;;  %v1122_v50 = vmax.f32 %v1058_v44, 0.0 }
 0x16c   :  { %v1091_v41 = vmax.f32 %v1027_v39, 0.0  ;;  %v571_v42 = vpop.f32.mrf.mxu2 }
 0x16d   :  { %v980_v43 = vpop.f32.mrf.mxu3 }
 0x16e   :  { %v1725_v45 = vpack.c.bf16 %v1091_v41, %v1090_v40  ;;  %v981_v46 = vadd.f32 %v980_v43, %v571_v42  ;;  %v494_v47 = vpop.f32.mrf.mxu0 }
 0x16f   :  { %v903_v48 = vpop.f32.mrf.mxu1 }
 0x170   :  { %1833 = vst [vmem:[%s2310_s5 + $0x60] sm:$0xff] %v1725_v45   ;;  %v1059_v49 = vadd.f32 %v2059_v55, %v981_v46  ;;  %v904_v53 = vadd.f32 %v903_v48, %v494_v47 }
 0x172   :  { %v1123_v51 = vmax.f32 %v1059_v49, 0.0  ;;  %v1028_v59 = vadd.f32 %v2059_v55, %v904_v53 }
 0x174   :  { %v1805_v52 = vpack.c.bf16 %v1123_v51, %v1122_v50  ;;  %v574_v54 = vpop.f32.mrf.mxu2  ;;  %v1092_v63 = vmax.f32 %v1028_v59, 0.0 }
 0x175   :  { %v983_v56 = vpop.f32.mrf.mxu3 }
 0x176   :  { %1849 = vst [vmem:[%s2310_s5 + $0xe0] sm:$0xff] %v1805_v52   ;;  %v496_v57 = vpop.f32.mrf.mxu0  ;;  %v984_v61 = vadd.f32 %v983_v56, %v574_v54 }
 0x177   :  { %v905_v58 = vpop.f32.mrf.mxu1 }
 0x178   :  { %v906_v60 = vadd.f32 %v905_v58, %v496_v57  ;;  %v1060_v3 = vadd.f32 %v2059_v55, %v984_v61 }
 0x17a   :  { %v1029_v62 = vadd.f32 %v2059_v55, %v906_v60  ;;  %v1124_v9 = vmax.f32 %v1060_v3, 0.0 }
 0x17c   :  { %v1093_v0 = vmax.f32 %v1029_v62, 0.0  ;;  %v576_v1 = vpop.f32.mrf.mxu2 }
 0x17d   :  { %v985_v2 = vpop.f32.mrf.mxu3 }
 0x17e   :  { %v1730_v4 = vpack.c.bf16 %v1093_v0, %v1092_v63  ;;  %v986_v5 = vadd.f32 %v985_v2, %v576_v1  ;;  %v499_v6 = vpop.f32.mrf.mxu0 }
 0x17f   :  { %v908_v7 = vpop.f32.mrf.mxu1 }
 0x180   :  { %1834 = vst [vmem:[%s2310_s5 + $0x68] sm:$0xff] %v1730_v4   ;;  %v1061_v8 = vadd.f32 %v2059_v55, %v986_v5  ;;  %v909_v12 = vadd.f32 %v908_v7, %v499_v6 }
 0x182   :  { %v1125_v10 = vmax.f32 %v1061_v8, 0.0  ;;  %v1030_v17 = vadd.f32 %v2059_v55, %v909_v12 }
 0x184   :  { %v1810_v11 = vpack.c.bf16 %v1125_v10, %v1124_v9  ;;  %v579_v13 = vpop.f32.mrf.mxu2  ;;  %v1094_v21 = vmax.f32 %v1030_v17, 0.0 }
 0x185   :  { %v988_v14 = vpop.f32.mrf.mxu3 }
 0x186   :  { %1850 = vst [vmem:[%s2310_s5 + $0xe8] sm:$0xff] %v1810_v11   ;;  %v501_v15 = vpop.f32.mrf.mxu0  ;;  %v989_v19 = vadd.f32 %v988_v14, %v579_v13 }
 0x187   :  { %v910_v16 = vpop.f32.mrf.mxu1 }
 0x188   :  { %v911_v18 = vadd.f32 %v910_v16, %v501_v15  ;;  %v1062_v25 = vadd.f32 %v2059_v55, %v989_v19 }
 0x18a   :  { %v1031_v20 = vadd.f32 %v2059_v55, %v911_v18  ;;  %v1126_v31 = vmax.f32 %v1062_v25, 0.0 }
 0x18c   :  { %v1095_v22 = vmax.f32 %v1031_v20, 0.0  ;;  %v581_v23 = vpop.f32.mrf.mxu2 }
 0x18d   :  { %v990_v24 = vpop.f32.mrf.mxu3 }
 0x18e   :  { %v1735_v26 = vpack.c.bf16 %v1095_v22, %v1094_v21  ;;  %v991_v27 = vadd.f32 %v990_v24, %v581_v23  ;;  %v504_v28 = vpop.f32.mrf.mxu0 }
 0x18f   :  { %v913_v29 = vpop.f32.mrf.mxu1 }
 0x190   :  { %1835 = vst [vmem:[%s2310_s5 + $0x70] sm:$0xff] %v1735_v26   ;;  %v1063_v30 = vadd.f32 %v2059_v55, %v991_v27  ;;  %v914_v34 = vadd.f32 %v913_v29, %v504_v28 }
 0x192   :  { %v1127_v32 = vmax.f32 %v1063_v30, 0.0  ;;  %v1032_v39 = vadd.f32 %v2059_v55, %v914_v34 }
 0x194   :  { %v1815_v33 = vpack.c.bf16 %v1127_v32, %v1126_v31  ;;  %v584_v35 = vpop.f32.mrf.mxu2  ;;  %v1096_v43 = vmax.f32 %v1032_v39, 0.0 }
 0x195   :  { %v993_v36 = vpop.f32.mrf.mxu3 }
 0x196   :  { %1851 = vst [vmem:[%s2310_s5 + $0xf0] sm:$0xff] %v1815_v33   ;;  %v506_v37 = vpop.f32.mrf.mxu0  ;;  %v994_v41 = vadd.f32 %v993_v36, %v584_v35 }
 0x197   :  { %v915_v38 = vpop.f32.mrf.mxu1 }
 0x198   :  { %v916_v40 = vadd.f32 %v915_v38, %v506_v37  ;;  %v1064_v47 = vadd.f32 %v2059_v55, %v994_v41 }
 0x19a   :  { %v1033_v42 = vadd.f32 %v2059_v55, %v916_v40  ;;  %v1128_v51 = vmax.f32 %v1064_v47, 0.0 }
 0x19c   :  { %v1097_v44 = vmax.f32 %v1033_v42, 0.0  ;;  %v586_v45 = vpop.f32.mrf.mxu2 }
 0x19d   :  { %v995_v46 = vpop.f32.mrf.mxu3 }
 0x19e   :  { %v1740_v48 = vpack.c.bf16 %v1097_v44, %v1096_v43  ;;  %v996_v49 = vadd.f32 %v995_v46, %v586_v45 }
 0x1a0   :  { %1836 = vst [vmem:[%s2310_s5 + $0x78] sm:$0xff] %v1740_v48   ;;  %v1065_v50 = vadd.f32 %v2059_v55, %v996_v49 }
 0x1a2   :  { %v1129_v52 = vmax.f32 %v1065_v50, 0.0 }
 0x1a4   :  { %v1820_v53 = vpack.c.bf16 %v1129_v52, %v1128_v51 }
 0x1a6   :  { %1852 = vst [vmem:[%s2310_s5 + $0xf8] sm:$0xff] %v1820_v53  }

// kernel: bottleneck_forward.2
= control target key start
LH: loop header
LB: loop body
LE: loop exit
PB: predicated region body
PF: predicated region fallthrough
CT: control target
= control target key end

     0   :  { %s5495_s18 = smov 0   ;;  %s6992_s0 = inlined_call_operand.vmem [shape: bf16[2,16,16,128], index: 0, kind: input, shape index: {}]   ;;  %s6993_s1 = inlined_call_operand.vmem [shape: bf16[128,128], index: 1, kind: input, shape index: {}]   ;;  %s6994_s2 = inlined_call_operand.vmem [shape: f32[1,128], index: 2, kind: input, shape index: {}]   ;;  %s6995_s3 = inlined_call_operand.vmem [shape: bf16[3,384,128], index: 3, kind: input, shape index: {}]   ;;  %s6996_s4 = inlined_call_operand.vmem [shape: f32[1,128], index: 4, kind: input, shape index: {}]   ;;  %s6997_s5 = inlined_call_operand.vmem [shape: bf16[2,16,16,128], index: 5, kind: output, shape index: {}]  }
   0x1 LB: > { %s4479_s19 = sadd.s32 4294967295, %s5462_s18   ;;  %p4483_p0 = scmp.ge.s32.totalorder %s5462_s18, 1  ;;  %s5462_s18 = sphi %s5495_s18, %s15_s18  }
   0x2   : > { %p187_p1 = scmp.lt.s32.totalorder %s5462_s18, 3 }
   0x4   : > { %p188_p2 = pnand %p4483_p0, %p187_p1 }
   0x6   : > { %191 = sbr.rel (%p188_p2) target bundleno = 1087 (0x43f), region = 40 }
   0xb   : > { %v4995_v0 = vld [vmem:[%s6993_s1 + $0x38] sm:$0xff]  ;;  %v4994_v1 = vld [vmem:[%s6993_s1 + $0x30] sm:$0xff]  ;;  %v4993_v2 = vld [vmem:[%s6993_s1 + $0x28] sm:$0xff]  ;;  %p215_p3 = scmp.lt.s32.totalorder %s4479_s19, 1  ;;  %v5464_v31 = vmov 0   ;;  %vm953_vm1 = vcmask 1043456  }
   0xc   : > { %422 = vmatpush.bf16.msra.mxu0 %v4995_v0  ;;  %5353 = vmatpush.bf16.msra.mxu2 %v4995_v0  ;;  %v4992_v3 = vld [vmem:[%s6993_s1 + $0x20] sm:$0xff]  ;;  %v4991_v4 = vld [vmem:[%s6993_s1 + $0x18] sm:$0xff]  ;;  %v4990_v5 = vld [vmem:[%s6993_s1 + $0x10] sm:$0xff]  ;;  %546 = vst [vmem:[#allocation2 + $0xc] sm:$0xf] %v5464_v31  ;;  %vm960_vm6 = vcmask 1040384  }
   0xd   : > { %s7209_s19 = smov (!%p215_p3, %s4479_s19), 1  ;;  %v4989_v6 = vld [vmem:[%s6993_s1 + $0x8] sm:$0xff]  ;;  %v4988_v7 = vld [vmem:[%s6993_s1] sm:$0xff]  ;;  %v5003_v20 = vld [vmem:[%s6995_s3 + $0x38] sm:$0xff]  ;;  %543 = vst [vmem:[#allocation2] sm:$0xf] %v5464_v31 }
   0xe   : > { %s4970_s9 = sshll.u32 %s7209_s19, 7  ;;  %v5011_v21 = vld [vmem:[%s6995_s3 + $0x78] sm:$0xff]  ;;  %1792 = vmatpush.bf16.msra.mxu1 %v5003_v20  ;;  %v5002_v22 = vld [vmem:[%s6995_s3 + $0x30] sm:$0xff]  ;;  %5361 = vmatpush.bf16.msra.mxu3 %v5003_v20  ;;  %v5001_v24 = vld [vmem:[%s6995_s3 + $0x28] sm:$0xff]  ;;  %544 = vst [vmem:[#allocation2 + $0x4] sm:$0xf] %v5464_v31 }
   0xf   : > { %s5535_s14 = scalar_lea.vmem %s6992_s0, %s4970_s9  ;;  %v5010_v23 = vld [vmem:[%s6995_s3 + $0x70] sm:$0xff]  ;;  %v5000_v25 = vld [vmem:[%s6995_s3 + $0x20] sm:$0xff]  ;;  %v5009_v28 = vld [vmem:[%s6995_s3 + $0x68] sm:$0xff]  ;;  %545 = vst [vmem:[#allocation2 + $0x8] sm:$0x1] %v5464_v31  ;;  %vm1535_vm9 = vcmask 1046528   ;;  %s6889_s13 = scalar_lea.vmem %s6997_s5, %s4970_s9 }
  0x10   : > { %423 = vmatpush.bf16.msra.mxu0 %v4994_v1  ;;  %5354 = vmatpush.bf16.msra.mxu2 %v4994_v1  ;;  %v4972_v8 = vld [vmem:[%s5535_s14] sm:$0xff]  ;;  %v4973_v10 = vld [vmem:[%s5535_s14 + $0x8] sm:$0xff]  ;;  %v4974_v12 = vld [vmem:[%s5535_s14 + $0x10] sm:$0xff]  ;;  %547 = vst [vmem:[#allocation2 + $0x10] sm:$0xf] %v5464_v31 }
  0x11   : > { %v4980_v9 = vld [vmem:[%s5535_s14 + $0x40] sm:$0xff]  ;;  %v4981_v11 = vld [vmem:[%s5535_s14 + $0x48] sm:$0xff]  ;;  %v4982_v13 = vld [vmem:[%s5535_s14 + $0x50] sm:$0xff]  ;;  %548 = vst [vmem:[#allocation2 + $0x14] sm:$0x1] %v5464_v31 }
  0x12   : > { %v4975_v14 = vld [vmem:[%s5535_s14 + $0x18] sm:$0xff]  ;;  %v4976_v16 = vld [vmem:[%s5535_s14 + $0x20] sm:$0xff]  ;;  %v4977_v18 = vld [vmem:[%s5535_s14 + $0x28] sm:$0xff]  ;;  %1793 = vmatpush.bf16.msra.mxu1 %v5002_v22  ;;  %5362 = vmatpush.bf16.msra.mxu3 %v5002_v22  ;;  %549 = vst [vmem:[#allocation2 + $0x18] sm:$0xf] %v5464_v31 }
  0x13   : > { %v4983_v15 = vld [vmem:[%s5535_s14 + $0x58] sm:$0xff]  ;;  %v4984_v17 = vld [vmem:[%s5535_s14 + $0x60] sm:$0xff]  ;;  %v4985_v19 = vld [vmem:[%s5535_s14 + $0x68] sm:$0xff]  ;;  %550 = vst [vmem:[#allocation2 + $0x1c] sm:$0xf] %v5464_v31 }
  0x14   : > { %424 = vmatpush.bf16.msra.mxu0 %v4993_v2  ;;  %5355 = vmatpush.bf16.msra.mxu2 %v4993_v2  ;;  %v4978_v26 = vld [vmem:[%s5535_s14 + $0x30] sm:$0xff]  ;;  %v4999_v29 = vld [vmem:[%s6995_s3 + $0x18] sm:$0xff]  ;;  %v5008_v32 = vld [vmem:[%s6995_s3 + $0x60] sm:$0xff]  ;;  %551 = vst [vmem:[#allocation2 + $0x20] sm:$0x1] %v5464_v31 }
  0x15   : > { %v4986_v27 = vld [vmem:[%s5535_s14 + $0x70] sm:$0xff]  ;;  %v5027_v30 = vld [vmem:[%s6995_s3 + $0xf8] sm:$0xff]  ;;  %552 = vst [vmem:[#allocation2 + $0x24] sm:$0xf] %v5464_v31  ;;  %v4997_v38 = vld [vmem:[%s6995_s3 + $0x8] sm:$0xff] }
  0x16   : > { %1794 = vmatpush.bf16.msra.mxu1 %v5001_v24  ;;  %5363 = vmatpush.bf16.msra.mxu3 %v5001_v24  ;;  %v4998_v33 = vld [vmem:[%s6995_s3 + $0x10] sm:$0xff]  ;;  %v4979_v35 = vld [vmem:[%s5535_s14 + $0x38] sm:$0xff]  ;;  %553 = vst [vmem:[#allocation2 + $0x28] sm:$0xf] %v5464_v31  ;;  %v5025_v39 = vld [vmem:[%s6995_s3 + $0xe8] sm:$0xff] }
  0x17   : > { %v5026_v34 = vld [vmem:[%s6995_s3 + $0xf0] sm:$0xff]  ;;  %v4987_v36 = vld [vmem:[%s5535_s14 + $0x78] sm:$0xff]  ;;  %554 = vst [vmem:[#allocation2 + $0x2c] sm:$0x1] %v5464_v31  ;;  %v4996_v41 = vld [vmem:[%s6995_s3] sm:$0xff] }
  0x18   : > { %425 = vmatpush.bf16.msra.mxu0 %v4992_v3  ;;  %5356 = vmatpush.bf16.msra.mxu2 %v4992_v3  ;;  %v5007_v37 = vld [vmem:[%s6995_s3 + $0x58] sm:$0xff]  ;;  %555 = vst [vmem:[#allocation2 + $0x30] sm:$0xf] %v5464_v31  ;;  %v5006_v40 = vld [vmem:[%s6995_s3 + $0x50] sm:$0xff]  ;;  %v5024_v42 = vld [vmem:[%s6995_s3 + $0xe0] sm:$0xff] }
  0x19   : > { %556 = vst [vmem:[#allocation2 + $0x34] sm:$0xf] %v5464_v31  ;;  %v1102_v43 = vld [vmem:[#allocation2 + $0x8] sm:$0x1]  ;;  %v5069_v46 = vld [vmem:[#allocation2] sm:$0xff]   ;;  %v5023_v47 = vld [vmem:[%s6995_s3 + $0xd8] sm:$0xff] }
  0x1a   : > { %1795 = vmatpush.bf16.msra.mxu1 %v5000_v25  ;;  %5364 = vmatpush.bf16.msra.mxu3 %v5000_v25  ;;  %557 = vst [vmem:[#allocation2 + $0x38] sm:$0x1] %v5464_v31  ;;  %v5005_v44 = vld [vmem:[%s6995_s3 + $0x48] sm:$0xff]  ;;  %v1246_v45 = vunpack.c.l.b16 %v1102_v43  ;;  %v1282_v48 = vshll.u32 %v5069_v46, 16  ;;  %v1280_v50 = vshrl.u32 %v5069_v46, 16  ;;  %v5004_v52 = vld [vmem:[%s6995_s3 + $0x40] sm:$0xff] }
  0x1b   : > { %558 = vst [vmem:[#allocation2 + $0x3c] sm:$0xf] %v5464_v31  ;;  %v5022_v54 = vld [vmem:[%s6995_s3 + $0xd0] sm:$0xff]  ;;  %v5649_v55 = vld [vmem:[%s6994_s2] ss:$0 sm:$0xff]  ;;  %v5021_v60 = vld [vmem:[%s6995_s3 + $0xc8] sm:$0xff] }
  0x1c   : > { %426 = vmatpush.bf16.msra.mxu0 %v4991_v4  ;;  %5357 = vmatpush.bf16.msra.mxu2 %v4991_v4  ;;  %559 = vst [vmem:[#allocation2 + $0x40] sm:$0xf] %v5464_v31  ;;  %v5634_v49 = vpack.c.b16 %v1246_v45, %v1246_v45  ;;  %v1284_v51 = vrot.slane %v1282_v48, 1  ;;  %vm1278_vm0 = vsmask.f32 7424  ;;  %v5020_v63 = vld [vmem:[%s6995_s3 + $0xc0] sm:$0xff] }
  0x1d   : > { %560 = vst [vmem:[#allocation2 + $0x44] sm:$0x1] %v5464_v31  ;;  %vm954_vm2 = vsmask.f32 7938  ;;  %vm629_vm4 = vsmask.f32 256 }
  0x1e   : > { %1796 = vmatpush.bf16.msra.mxu1 %v4999_v29  ;;  %5365 = vmatpush.bf16.msra.mxu3 %v4999_v29  ;;  %561 = vst [vmem:[#allocation2 + $0x48] sm:$0xf] %v5464_v31  ;;  %v1287_v53 = vshll.u32 %v5634_v49, 16  ;;  %v1285_v56 = vor.u32 %v1284_v51, %v1280_v50  ;;  %vm5674_vm3 = vmand %vm953_vm1, %vm954_vm2  ;;  %vm630_vm5 = vsmask.f32 4368 }
  0x1f   : > { %562 = vst [vmem:[#allocation2 + $0x4c] sm:$0xf] %v5464_v31  ;;  %vm5694_vm7 = vmor %vm629_vm4, %vm630_vm5 }
  0x20   : > { %427 = vmatpush.bf16.msra.mxu0 %v4990_v5  ;;  %5358 = vmatpush.bf16.msra.mxu2 %v4990_v5  ;;  %563 = vst [vmem:[#allocation2 + $0x50] sm:$0x1] %v5464_v31  ;;  %v1289_v57 = vrot.slane %v1287_v53, 1  ;;  %vm5702_vm8 = vmand %vm960_vm6, %vm629_vm4 }
  0x21   : > { %564 = vst [vmem:[#allocation2 + $0x54] sm:$0xf] %v5464_v31 }
  0x22   : > { %1797 = vmatpush.bf16.msra.mxu1 %v4998_v33  ;;  %5366 = vmatpush.bf16.msra.mxu3 %v4998_v33  ;;  %565 = vst [vmem:[#allocation2 + $0x58] sm:$0xf] %v5464_v31  ;;  %v1290_v59 = vsel %vm1278_vm0, %v1285_v56, %v1289_v57 }
  0x23   : > { %566 = vst [vmem:[#allocation2 + $0x5c] sm:$0x1] %v5464_v31 }
  0x24   : > { %428 = vmatpush.bf16.msra.mxu0 %v4989_v6  ;;  %5359 = vmatpush.bf16.msra.mxu2 %v4989_v6  ;;  %567 = vst [vmem:[#allocation2 + $0x60] sm:$0xf] %v5464_v31 }
  0x25   : > { %568 = vst [vmem:[#allocation2 + $0x64] sm:$0xf] %v5464_v31 }
  0x26   : > { %1798 = vmatpush.bf16.msra.mxu1 %v4997_v38  ;;  %5367 = vmatpush.bf16.msra.mxu3 %v4997_v38  ;;  %569 = vst [vmem:[#allocation2 + $0x68] sm:$0x1] %v5464_v31 }
  0x27   : > { %570 = vst [vmem:[#allocation2 + $0x6c] sm:$0xf] %v5464_v31 }
  0x28   : > { %429 = vmatpush.bf16.msra.mxu0 %v4988_v7  ;;  %5360 = vmatpush.bf16.msra.mxu2 %v4988_v7  ;;  %571 = vst [vmem:[#allocation2 + $0x70] sm:$0xf] %v5464_v31 }
  0x29   : > { %572 = vst [vmem:[#allocation2 + $0x74] sm:$0x1] %v5464_v31 }
  0x2a   : > { %1799 = vmatpush.bf16.msra.mxu1 %v4996_v41  ;;  %5368 = vmatpush.bf16.msra.mxu3 %v4996_v41  ;;  %573 = vst [vmem:[#allocation2 + $0x78] sm:$0xf] %v5464_v31 }
  0x2b   : > { %430 = vmatmul.bf16.vlgmr.msra.gmra.mxu0 %v4972_v8  ;;  %470 = vmatmul.bf16.vlgmr.msra.gmra.mxu2 %v4980_v9  ;;  %574 = vst [vmem:[#allocation2 + $0x7c] sm:$0xf] %v5464_v31 }
  0x2c   : > { %1881 = vmatpush.bf16.msrb.mxu2 %v5011_v21  ;;  %2812 = vmatpush.bf16.msrb.mxu0 %v5027_v30  ;;  %575 = vst [vmem:[#allocation2 + $0x80] sm:$0x1] %v5464_v31  ;;  %v5017_v30 = vld [vmem:[%s6995_s3 + $0xa8] sm:$0xff] }
  0x2d   : > { %1800 = vmatmul.bf16.vlgmr.msra.gmra.mxu1 %v5069_v46  ;;  %576 = vst [vmem:[#allocation2 + $0x84] sm:$0xf] %v5464_v31 }
  0x2e   : > { %577 = vst [vmem:[#allocation2 + $0x88] sm:$0xf] %v5464_v31  ;;  %v1014_v46 = vld [vmem:[#allocation2 + $0x6c] sm:$0xf] }
  0x2f   : > { %578 = vst [vmem:[#allocation2 + $0x8c] sm:$0x1] %v5464_v31 }
  0x30   : > { %1882 = vmatpush.bf16.msrb.mxu2 %v5010_v23  ;;  %2813 = vmatpush.bf16.msrb.mxu0 %v5026_v34  ;;  %579 = vst [vmem:[#allocation2 + $0x90] sm:$0xf] %v5464_v31 }
  0x31   : > { %580 = vst [vmem:[#allocation2 + $0x94] sm:$0xf] %v5464_v31 }
  0x32   : > { %581 = vst [vmem:[#allocation2 + $0x98] sm:$0x1] %v5464_v31 }
  0x33   : > { %582 = vst [vmem:[#allocation2 + $0x9c] sm:$0xf] %v5464_v31 }
  0x34   : > { %1883 = vmatpush.bf16.msrb.mxu2 %v5009_v28  ;;  %2814 = vmatpush.bf16.msrb.mxu0 %v5025_v39  ;;  %583 = vst [vmem:[#allocation2 + $0xa0] sm:$0xf] %v5464_v31  ;;  %v962_v39 = vld [vmem:[#allocation2 + $0x14] sm:$0x1] }
  0x35   : > { %584 = vst [vmem:[#allocation2 + $0xa4] sm:$0x1] %v5464_v31 }
  0x36   : > { %585 = vst [vmem:[#allocation2 + $0xa8] sm:$0xf] %v5464_v31 }
  0x37   : > { %586 = vst [vmem:[#allocation2 + $0xac] sm:$0xf] %v5464_v31 }
  0x38   : > { %1884 = vmatpush.bf16.msrb.mxu2 %v5008_v32  ;;  %2815 = vmatpush.bf16.msrb.mxu0 %v5024_v42  ;;  %587 = vst [vmem:[#allocation2 + $0xb0] sm:$0x1] %v5464_v31 }
  0x39   : > { %588 = vst [vmem:[#allocation2 + $0xb4] sm:$0xf] %v5464_v31 }
  0x3a   : > { %589 = vst [vmem:[#allocation2 + $0xb8] sm:$0xf] %v5464_v31 }
  0x3b   : > { %435 = vmatmul.bf16.gmra.mxu0 %v4973_v10  ;;  %475 = vmatmul.bf16.gmra.mxu2 %v4981_v11  ;;  %v956_v10 = vld [vmem:[#allocation2 + $0xc] sm:$0xf]  ;;  %590 = vst [vmem:[#allocation2 + $0xbc] sm:$0x1] %v5464_v31 }
  0x3c   : > { %1885 = vmatpush.bf16.msrb.mxu2 %v5007_v37  ;;  %2816 = vmatpush.bf16.msrb.mxu0 %v5023_v47  ;;  %591 = vst [vmem:[#allocation2 + $0xc0] sm:$0xf] %v5464_v31 }
  0x3d   : > { %592 = vst [vmem:[#allocation2 + $0xc4] sm:$0xf] %v5464_v31 }
  0x3e   : > { %593 = vst [vmem:[#allocation2 + $0xc8] sm:$0x1] %v5464_v31 }
  0x3f   : > { %594 = vst [vmem:[#allocation2 + $0xcc] sm:$0xf] %v5464_v31 }
  0x40   : > { %1886 = vmatpush.bf16.msrb.mxu2 %v5006_v40  ;;  %2817 = vmatpush.bf16.msrb.mxu0 %v5022_v54  ;;  %595 = vst [vmem:[#allocation2 + $0xd0] sm:$0xf] %v5464_v31  ;;  %v965_v54 = vld [vmem:[#allocation2 + $0x18] sm:$0xf] }
  0x41   : > { %596 = vst [vmem:[#allocation2 + $0xd4] sm:$0x1] %v5464_v31 }
  0x44   : > { %1887 = vmatpush.bf16.msrb.mxu2 %v5005_v44  ;;  %2818 = vmatpush.bf16.msrb.mxu0 %v5021_v60  ;;  %v1018_v60 = vld [vmem:[#allocation2 + $0x74] sm:$0x1] }
  0x48   : > { %1888 = vmatpush.bf16.msrb.mxu2 %v5004_v52  ;;  %2819 = vmatpush.bf16.msrb.mxu0 %v5020_v63 }
  0x4b   : > { %440 = vmatmul.bf16.gmra.mxu0 %v4974_v12  ;;  %480 = vmatmul.bf16.gmra.mxu2 %v4982_v13 }
  0x5b   : > { %445 = vmatmul.bf16.gmra.mxu0 %v4975_v14  ;;  %485 = vmatmul.bf16.gmra.mxu2 %v4983_v15 }
  0x6b   : > { %450 = vmatmul.bf16.gmra.mxu0 %v4976_v16  ;;  %490 = vmatmul.bf16.gmra.mxu2 %v4984_v17 }
  0x7b   : > { %455 = vmatmul.bf16.gmra.mxu0 %v4977_v18  ;;  %495 = vmatmul.bf16.gmra.mxu2 %v4985_v19 }
  0x8b   : > { %460 = vmatmul.bf16.gmra.mxu0 %v4978_v26  ;;  %500 = vmatmul.bf16.gmra.mxu2 %v4986_v27 }
  0x9b   : > { %465 = vmatmul.bf16.gmra.mxu0 %v4979_v35  ;;  %505 = vmatmul.bf16.gmra.mxu2 %v4987_v36 }
  0xa8   : > { %v431_v58 = vpop.f32.mrf.mxu0 }
  0xa9   : > { %v432_v61 = vadd.f32 %v5649_v55, %v431_v58 }
  0xab   : > { %v511_v62 = vmax.f32 %v432_v61, 0.0  ;;  %1889 = vmatmul.bf16.vlgmr.msrb.gmra.mxu2 %v1290_v59 }
  0xad   : > { %v597_v0 = vpack.c.bf16 %v511_v62, %v511_v62 }
  0xae   : > { %v471_v1 = vpop.f32.mrf.mxu2 }
  0xaf   : > { %v633_v2 = vshrl.u32 %v597_v0, 16  ;;  %v472_v3 = vadd.f32 %v5649_v55, %v471_v1  ;;  %v636_v6 = vshll.u32 %v597_v0, 16 }
  0xb0   : > { %v433_v4 = vpop.f32.mrf.mxu0 }
  0xb1   : > { %v635_v5 = vrot.slane %v633_v2, 7  ;;  %v434_v7 = vadd.f32 %v5649_v55, %v433_v4  ;;  %v527_v8 = vmax.f32 %v472_v3, 0.0 }
  0xb3   : > { %v638_v11 = vor.u32 %v636_v6, %v635_v5  ;;  %v512_v12 = vmax.f32 %v434_v7, 0.0  ;;  %v613_v13 = vpack.c.bf16 %v527_v8, %v527_v8  ;;  %v639_v33 = vrot.slane %v635_v5, 4 }
  0xb5   : > { %v957_v14 = vsel %vm5674_vm3, %v638_v11, %v956_v10  ;;  %v598_v15 = vpack.c.bf16 %v512_v12, %v512_v12  ;;  %v769_v20 = vshrl.u32 %v613_v13, 16  ;;  %v772_v28 = vshll.u32 %v613_v13, 16  ;;  %v1021_v10 = vld [vmem:[#allocation2 + $0x78] sm:$0xf] }
  0xb6   : > { %958 = vst [vmem:[#allocation2 + $0xc] sm:$0xf] %v957_v14  ;;  %v473_v16 = vpop.f32.mrf.mxu2 }
  0xb7   : > { %v641_v17 = vshrl.u32 %v598_v15, 16  ;;  %v474_v18 = vadd.f32 %v5649_v55, %v473_v16  ;;  %v644_v23 = vshll.u32 %v598_v15, 16  ;;  %v771_v27 = vrot.slane %v769_v20, 7  ;;  %v969_v16 = vld [vmem:[#allocation2 + $0x20] sm:$0x1] }
  0xb8   : > { %v436_v19 = vpop.f32.mrf.mxu0 }
  0xb9   : > { %v643_v21 = vrot.slane %v641_v17, 7  ;;  %v437_v22 = vadd.f32 %v5649_v55, %v436_v19  ;;  %v528_v24 = vmax.f32 %v474_v18, 0.0  ;;  %v774_v44 = vor.u32 %v772_v28, %v771_v27 }
  0xba   : > { %v775_v45 = vrot.slane %v771_v27, 4 }
  0xbb   : > { %v513_v25 = vmax.f32 %v437_v22, 0.0  ;;  %v646_v26 = vor.u32 %v644_v23, %v643_v21  ;;  %v614_v29 = vpack.c.bf16 %v528_v24, %v528_v24  ;;  %v648_v34 = vrot.slane %v643_v21, 4 }
  0xbc   : > { %v1015_v62 = vsel %vm5674_vm3, %v774_v44, %v1014_v46  ;;  %v972_v46 = vld [vmem:[#allocation2 + $0x24] sm:$0xf] }
  0xbd   : > { %v599_v32 = vpack.c.bf16 %v513_v25, %v513_v25  ;;  %v777_v35 = vshrl.u32 %v614_v29, 16  ;;  %v780_v36 = vshll.u32 %v614_v29, 16  ;;  %v647_v42 = vsel %vm5694_vm7, %v639_v33, %v646_v26  ;;  %1016 = vst [vmem:[#allocation2 + $0x6c] sm:$0xf] %v1015_v62 }
  0xbe   : > { %v476_v37 = vpop.f32.mrf.mxu2  ;;  %v963_v53 = vsel %vm5702_vm8, %v648_v34, %v962_v39  ;;  %959 = vst [vmem:[#allocation2 + $0x10] sm:$0xf] %v647_v42 }
  0xbf   : > { %v650_v40 = vshrl.u32 %v599_v32, 16  ;;  %v477_v41 = vadd.f32 %v5649_v55, %v476_v37  ;;  %v779_v47 = vrot.slane %v777_v35, 7  ;;  %v653_v50 = vshll.u32 %v599_v32, 16  ;;  %964 = vst [vmem:[#allocation2 + $0x14] sm:$0x1] %v963_v53 }
  0xc0   : > { %v438_v43 = vpop.f32.mrf.mxu0 }
  0xc1   : > { %v652_v48 = vrot.slane %v650_v40, 7  ;;  %v439_v51 = vadd.f32 %v5649_v55, %v438_v43  ;;  %v529_v52 = vmax.f32 %v477_v41, 0.0  ;;  %v782_v56 = vor.u32 %v780_v36, %v779_v47 }
  0xc2   : > { %v784_v57 = vrot.slane %v779_v47, 4 }
  0xc3   : > { %v655_v58 = vor.u32 %v653_v50, %v652_v48  ;;  %v514_v59 = vmax.f32 %v439_v51, 0.0  ;;  %v615_v61 = vpack.c.bf16 %v529_v52, %v529_v52  ;;  %v783_v63 = vsel %vm5694_vm7, %v775_v45, %v782_v56  ;;  %v5385_v56 = vld [vmem:[#allocation2 + $0xc] sm:$0xe] }
  0xc4   : > { %v1019_v31 = vsel %vm5702_vm8, %v784_v57, %v1018_v60  ;;  %1017 = vst [vmem:[#allocation2 + $0x70] sm:$0xf] %v783_v63  ;;  %v656_v15 = vrot.slane %v652_v48, 4 }
  0xc5   : > { %v966_v0 = vsel %vm5674_vm3, %v655_v58, %v965_v54  ;;  %v600_v1 = vpack.c.bf16 %v514_v59, %v514_v59  ;;  %v786_v2 = vshrl.u32 %v615_v61, 16  ;;  %v789_v3 = vshll.u32 %v615_v61, 16  ;;  %1020 = vst [vmem:[#allocation2 + $0x74] sm:$0x1] %v1019_v31  ;;  %v1072_v21 = vld [vmem:[#allocation2 + $0xc] sm:$0xff]  }
  0xc6   : > { %967 = vst [vmem:[#allocation2 + $0x18] sm:$0xf] %v966_v0  ;;  %v478_v4 = vpop.f32.mrf.mxu2  ;;  %v5729_v22 = vld [vmem:[#allocation2 + $0xc] sm:$0xf0]  ;;  %v1103_v26 = vld [vmem:[#allocation2 + $0x14] sm:$0x1]  ;;  %1805 = vmatmul.bf16.gmra.mxu1 %v1072_v21 }
  0xc7   : > { %v658_v5 = vshrl.u32 %v600_v1, 16  ;;  %v5724_v6 = vrot.slane %v786_v2, 7  ;;  %v479_v7 = vadd.f32 %v5649_v55, %v478_v4  ;;  %v661_v12 = vshll.u32 %v600_v1, 16  ;;  %v5731_v23 = vld [vmem:[#allocation2 + $0xc] sm:$0xff]   ;;  %v2123_v63 = vld [vmem:[#allocation2 + $0x14] sm:$0x1] }
  0xc8   : > { %v441_v8 = vpop.f32.mrf.mxu0  ;;  %v5733_v24 = vld [vmem:[#allocation2 + $0xc] sm:$0xf0]  ;;  %v1247_v32 = vunpack.c.l.b16 %v1103_v26  ;;  %2820 = vmatmul.bf16.vlgmr.msrb.gmra.mxu0 %v5731_v23  ;;  %v1294_v41 = vshll.u32 %v1072_v21, 16  ;;  %v1292_v47 = vshrl.u32 %v1072_v21, 16  ;;  %v1025_v2 = vld [vmem:[#allocation2 + $0x80] sm:$0x1] }
  0xc9   : > { %v660_v11 = vrot.slane %v658_v5, 7  ;;  %v442_v13 = vadd.f32 %v5649_v55, %v441_v8  ;;  %v791_v14 = vor.u32 %v789_v3, %v5724_v6  ;;  %v530_v17 = vmax.f32 %v479_v7, 0.0 }
  0xca   : > { %v5741_v36 = vpack.c.b16 %v1247_v32, %v1247_v32  ;;  %v1296_v48 = vrot.slane %v1294_v41, 1  ;;  %v792_v54 = vrot.slane %v5724_v6, 4  ;;  %v1028_v32 = vld [vmem:[#allocation2 + $0x84] sm:$0xf] }
  0xcb   : > { %v663_v18 = vor.u32 %v661_v12, %v660_v11  ;;  %v665_v19 = vrot.slane %v660_v11, 4  ;;  %v515_v20 = vmax.f32 %v442_v13, 0.0  ;;  %v1022_v25 = vsel %vm5674_vm3, %v791_v14, %v1021_v10 }
  0xcc   : > { %1023 = vst [vmem:[#allocation2 + $0x78] sm:$0xf] %v1022_v25  ;;  %v616_v33 = vpack.c.bf16 %v530_v17, %v530_v17  ;;  %v1299_v44 = vshll.u32 %v5741_v36, 16  ;;  %v1297_v57 = vor.u32 %v1296_v48, %v1292_v47  ;;  %v2267_v12 = vunpack.c.l.b16 %v2123_v63 }
  0xcd   : > { %v664_v27 = vsel %vm5694_vm7, %v656_v15, %v663_v18  ;;  %v970_v28 = vsel %vm5702_vm8, %v665_v19, %v969_v16  ;;  %v601_v29 = vpack.c.bf16 %v515_v20, %v515_v20  ;;  %v5386_v18 = vor.u32 %v5385_v56, %v5733_v24  ;;  %v976_v19 = vld [vmem:[#allocation2 + $0x2c] sm:$0x1] }
  0xce   : > { %968 = vst [vmem:[#allocation2 + $0x1c] sm:$0xf] %v664_v27  ;;  %v481_v34 = vpop.f32.mrf.mxu2  ;;  %v794_v45 = vshrl.u32 %v616_v33, 16  ;;  %v797_v50 = vshll.u32 %v616_v33, 16  ;;  %v1301_v58 = vrot.slane %v1299_v44, 1 }
  0xcf   : > { %971 = vst [vmem:[#allocation2 + $0x20] sm:$0x1] %v970_v28  ;;  %v667_v35 = vshrl.u32 %v601_v29, 16  ;;  %v482_v37 = vadd.f32 %v5649_v55, %v481_v34  ;;  %v670_v39 = vshll.u32 %v601_v29, 16 }
  0xd0   : > { %v443_v40 = vpop.f32.mrf.mxu0  ;;  %v796_v59 = vrot.slane %v794_v45, 7  ;;  %v1302_v0 = vsel %vm1278_vm0, %v1297_v57, %v1301_v58  ;;  %v2555_v45 = vrot.slane %v5386_v18, 1 }
  0xd1   : > { %v669_v42 = vrot.slane %v667_v35, 7  ;;  %v444_v43 = vadd.f32 %v5649_v55, %v443_v40  ;;  %v531_v51 = vmax.f32 %v482_v37, 0.0  ;;  %1894 = vmatmul.bf16.gmra.mxu2 %v1302_v0  ;;  %v5767_v40 = vpack.c.b16 %v2267_v12, %v2267_v12 }
  0xd2   : > { %v799_v1 = vor.u32 %v797_v50, %v796_v59  ;;  %v801_v5 = vrot.slane %v796_v59, 4  ;;  %v979_v59 = vld [vmem:[#allocation2 + $0x30] sm:$0xf] }
  0xd3   : > { %v672_v52 = vor.u32 %v670_v39, %v669_v42  ;;  %v516_v53 = vmax.f32 %v444_v43, 0.0  ;;  %v617_v60 = vpack.c.bf16 %v531_v51, %v531_v51  ;;  %v673_v26 = vrot.slane %v669_v42, 4 }
  0xd4   : > { %v800_v8 = vsel %vm5694_vm7, %v792_v54, %v799_v1  ;;  %v1026_v17 = vsel %vm5702_vm8, %v801_v5, %v1025_v2  ;;  %v2556_v58 = vrot.slane %v5767_v40, 1  ;;  %v1032_v5 = vld [vmem:[#allocation2 + $0x8c] sm:$0x1] }
  0xd5   : > { %v973_v61 = vsel %vm5674_vm3, %v672_v52, %v972_v46  ;;  %v602_v62 = vpack.c.bf16 %v516_v53, %v516_v53  ;;  %v803_v10 = vshrl.u32 %v617_v60, 16  ;;  %v806_v11 = vshll.u32 %v617_v60, 16  ;;  %v5244_v16 = vld [vmem:[#allocation2 + $0x18] sm:$0xff]   ;;  %1024 = vst [vmem:[#allocation2 + $0x7c] sm:$0xf] %v800_v8 }
  0xd6   : > { %974 = vst [vmem:[#allocation2 + $0x24] sm:$0xf] %v973_v61  ;;  %v1104_v3 = vld [vmem:[#allocation2 + $0x20] sm:$0x1]  ;;  %v483_v31 = vpop.f32.mrf.mxu2  ;;  %v1306_v33 = vshll.u32 %v5244_v16, 16  ;;  %1810 = vmatmul.bf16.gmra.mxu1 %v5244_v16  ;;  %v1304_v60 = vshrl.u32 %v5244_v16, 16 }
  0xd7   : > { %v675_v4 = vshrl.u32 %v602_v62, 16  ;;  %v1248_v6 = vunpack.c.l.b16 %v1104_v3  ;;  %v678_v14 = vshll.u32 %v602_v62, 16  ;;  %1027 = vst [vmem:[#allocation2 + $0x80] sm:$0x1] %v1026_v17  ;;  %v5759_v21 = vrot.slane %v803_v10, 7 }
  0xd8   : > { %v446_v7 = vpop.f32.mrf.mxu0  ;;  %v484_v25 = vadd.f32 %v5649_v55, %v483_v31  ;;  %v1308_v50 = vrot.slane %v1306_v33, 1  ;;  %2825 = vmatmul.bf16.gmra.mxu0 %v5244_v16 }
  0xd9   : > { %v677_v13 = vrot.slane %v675_v4, 7  ;;  %v447_v15 = vadd.f32 %v5649_v55, %v446_v7  ;;  %v5757_v20 = vpack.c.b16 %v1248_v6, %v1248_v6  ;;  %v808_v34 = vor.u32 %v806_v11, %v5759_v21 }
  0xda   : > { %v532_v35 = vmax.f32 %v484_v25, 0.0  ;;  %v809_v1 = vrot.slane %v5759_v21, 4  ;;  %v5776_v3 = vor.u32 %v1308_v50, %v1304_v60  ;;  %v5779_v6 = vsel %vm1535_vm9, %v2555_v45, %v2556_v58 }
  0xdb   : > { %v680_v27 = vor.u32 %v678_v14, %v677_v13  ;;  %v682_v28 = vrot.slane %v677_v13, 4  ;;  %v517_v29 = vmax.f32 %v447_v15, 0.0  ;;  %v1311_v41 = vshll.u32 %v5757_v20, 16 }
  0xdc   : > { %v1029_v42 = vsel %vm5674_vm3, %v808_v34, %v1028_v32  ;;  %v618_v43 = vpack.c.bf16 %v532_v35, %v532_v35  ;;  %v1035_v34 = vld [vmem:[#allocation2 + $0x90] sm:$0xf] }
  0xdd   : > { %v681_v24 = vsel %vm5694_vm7, %v673_v26, %v680_v27  ;;  %v977_v37 = vsel %vm5702_vm8, %v682_v28, %v976_v19  ;;  %v603_v39 = vpack.c.bf16 %v517_v29, %v517_v29  ;;  %1030 = vst [vmem:[#allocation2 + $0x84] sm:$0xf] %v1029_v42  ;;  %v1313_v61 = vrot.slane %v1311_v41, 1 }
  0xde   : > { %975 = vst [vmem:[#allocation2 + $0x28] sm:$0xf] %v681_v24  ;;  %v486_v44 = vpop.f32.mrf.mxu2  ;;  %v811_v52 = vshrl.u32 %v618_v43, 16  ;;  %v814_v53 = vshll.u32 %v618_v43, 16  ;;  %v983_v24 = vld [vmem:[#allocation2 + $0x38] sm:$0x1] }
  0xdf   : > { %978 = vst [vmem:[#allocation2 + $0x2c] sm:$0x1] %v977_v37  ;;  %v684_v46 = vshrl.u32 %v603_v39, 16  ;;  %v487_v47 = vadd.f32 %v5649_v55, %v486_v44  ;;  %v687_v48 = vshll.u32 %v603_v39, 16  ;;  %v1314_v15 = vsel %vm1278_vm0, %v5776_v3, %v1313_v61 }
  0xe0   : > { %v448_v51 = vpop.f32.mrf.mxu0  ;;  %v813_v62 = vrot.slane %v811_v52, 7 }
  0xe1   : > { %v686_v54 = vrot.slane %v684_v46, 7  ;;  %v449_v56 = vadd.f32 %v5649_v55, %v448_v51  ;;  %v533_v57 = vmax.f32 %v487_v47, 0.0  ;;  %1899 = vmatmul.bf16.gmra.mxu2 %v1314_v15  ;;  %v5388_v46 = vld [vmem:[#allocation2 + $0xc] sm:$0xe] }
  0xe2   : > { %v816_v31 = vor.u32 %v814_v53, %v813_v62  ;;  %v818_v4 = vrot.slane %v813_v62, 4 }
  0xe3   : > { %v689_v63 = vor.u32 %v687_v48, %v686_v54  ;;  %v518_v0 = vmax.f32 %v449_v56, 0.0  ;;  %v619_v2 = vpack.c.bf16 %v533_v57, %v533_v57  ;;  %v690_v42 = vrot.slane %v686_v54, 4 }
  0xe4   : > { %v817_v21 = vsel %vm5694_vm7, %v809_v1, %v816_v31  ;;  %v1033_v25 = vsel %vm5702_vm8, %v818_v4, %v1032_v5  ;;  %v5389_v1 = vor.u32 %v5388_v46, %v5729_v22 }
  0xe5   : > { %v980_v7 = vsel %vm5674_vm3, %v689_v63, %v979_v59  ;;  %v604_v8 = vpack.c.bf16 %v518_v0, %v518_v0  ;;  %v1076_v10 = vld [vmem:[#allocation2 + $0x24] sm:$0xff]   ;;  %v820_v14 = vshrl.u32 %v619_v2, 16  ;;  %v823_v17 = vshll.u32 %v619_v2, 16  ;;  %1031 = vst [vmem:[#allocation2 + $0x88] sm:$0xf] %v817_v21 }
  0xe6   : > { %v5783_v11 = vld [vmem:[#allocation2 + $0x24] sm:$0xf0]  ;;  %981 = vst [vmem:[#allocation2 + $0x30] sm:$0xf] %v980_v7  ;;  %v1105_v16 = vld [vmem:[#allocation2 + $0x2c] sm:$0x1]  ;;  %v488_v18 = vpop.f32.mrf.mxu2  ;;  %1815 = vmatmul.bf16.gmra.mxu1 %v1076_v10 }
  0xe7   : > { %v5785_v12 = vld [vmem:[#allocation2 + $0x24] sm:$0xff]   ;;  %v692_v19 = vshrl.u32 %v604_v8, 16  ;;  %v1249_v27 = vunpack.c.l.b16 %v1105_v16  ;;  %v822_v28 = vrot.slane %v820_v14, 7  ;;  %v695_v32 = vshll.u32 %v604_v8, 16  ;;  %1034 = vst [vmem:[#allocation2 + $0x8c] sm:$0x1] %v1033_v25 }
  0xe8   : > { %v5787_v13 = vld [vmem:[#allocation2 + $0x24] sm:$0xf0]  ;;  %v451_v26 = vpop.f32.mrf.mxu0  ;;  %v489_v35 = vadd.f32 %v5649_v55, %v488_v18  ;;  %v1318_v39 = vshll.u32 %v1076_v10, 16  ;;  %v1316_v56 = vshrl.u32 %v1076_v10, 16  ;;  %2830 = vmatmul.bf16.gmra.mxu0 %v5785_v12  ;;  %v986_v7 = vld [vmem:[#allocation2 + $0x3c] sm:$0xf] }
  0xe9   : > { %v694_v29 = vrot.slane %v692_v19, 7  ;;  %v452_v33 = vadd.f32 %v5649_v55, %v451_v26  ;;  %v5797_v37 = vpack.c.b16 %v1249_v27, %v1249_v27  ;;  %v825_v41 = vor.u32 %v823_v17, %v822_v28  ;;  %v1039_v10 = vld [vmem:[#allocation2 + $0x98] sm:$0x1] }
  0xea   : > { %v1320_v47 = vrot.slane %v1318_v39, 1  ;;  %v534_v50 = vmax.f32 %v489_v35, 0.0  ;;  %v826_v14 = vrot.slane %v822_v28, 4  ;;  %v1540_v19 = vrot.slane %v5741_v36, 1 }
  0xeb   : > { %v697_v43 = vor.u32 %v695_v32, %v694_v29  ;;  %v699_v44 = vrot.slane %v694_v29, 4  ;;  %v519_v45 = vmax.f32 %v452_v33, 0.0  ;;  %v1036_v48 = vsel %vm5674_vm3, %v825_v41, %v1035_v34 }
  0xec   : > { %1037 = vst [vmem:[#allocation2 + $0x90] sm:$0xf] %v1036_v48  ;;  %v1323_v54 = vshll.u32 %v5797_v37, 16  ;;  %v620_v57 = vpack.c.bf16 %v534_v50, %v534_v50  ;;  %v1321_v62 = vor.u32 %v1320_v47, %v1316_v56  ;;  %v1539_v22 = vrot.slane %v5389_v1, 1 }
  0xed   : > { %v698_v51 = vsel %vm5694_vm7, %v690_v42, %v697_v43  ;;  %v984_v52 = vsel %vm5702_vm8, %v699_v44, %v983_v24  ;;  %v605_v53 = vpack.c.bf16 %v519_v45, %v519_v45 }
  0xee   : > { %982 = vst [vmem:[#allocation2 + $0x34] sm:$0xf] %v698_v51  ;;  %v491_v58 = vpop.f32.mrf.mxu2  ;;  %v828_v63 = vshrl.u32 %v620_v57, 16  ;;  %v831_v0 = vshll.u32 %v620_v57, 16  ;;  %v1325_v8 = vrot.slane %v1323_v54, 1  ;;  %v5820_v44 = vsel %vm1535_vm9, %v1539_v22, %v1540_v19 }
  0xef   : > { %985 = vst [vmem:[#allocation2 + $0x38] sm:$0x1] %v984_v52  ;;  %v701_v59 = vshrl.u32 %v605_v53, 16  ;;  %v492_v60 = vadd.f32 %v5649_v55, %v491_v58  ;;  %v704_v31 = vshll.u32 %v605_v53, 16  ;;  %v1042_v51 = vld [vmem:[#allocation2 + $0x9c] sm:$0xf] }
  0xf0   : > { %v453_v61 = vpop.f32.mrf.mxu0  ;;  %v830_v15 = vrot.slane %v828_v63, 7  ;;  %v1326_v21 = vsel %vm1278_vm0, %v1321_v62, %v1325_v8  ;;  %v990_v52 = vld [vmem:[#allocation2 + $0x44] sm:$0x1]  ;;  %v993_v22 = vld [vmem:[#allocation2 + $0x48] sm:$0xf] }
  0xf1   : > { %v703_v2 = vrot.slane %v701_v59, 7  ;;  %v454_v4 = vadd.f32 %v5649_v55, %v453_v61  ;;  %v535_v5 = vmax.f32 %v492_v60, 0.0  ;;  %1904 = vmatmul.bf16.gmra.mxu2 %v1326_v21 }
  0xf2   : > { %v833_v25 = vor.u32 %v831_v0, %v830_v15  ;;  %v835_v26 = vrot.slane %v830_v15, 4 }
  0xf3   : > { %v706_v16 = vor.u32 %v704_v31, %v703_v2  ;;  %v520_v17 = vmax.f32 %v454_v4, 0.0  ;;  %v621_v18 = vpack.c.bf16 %v535_v5, %v535_v5  ;;  %v707_v54 = vrot.slane %v703_v2, 4 }
  0xf4   : > { %v834_v28 = vsel %vm5694_vm7, %v826_v14, %v833_v25  ;;  %v1040_v34 = vsel %vm5702_vm8, %v835_v26, %v1039_v10  ;;  %v5035_v10 = vld [vmem:[%s6995_s3 + $0x138] sm:$0xff]  ;;  %v1046_v25 = vld [vmem:[#allocation2 + $0xa4] sm:$0x1] }
  0xf5   : > { %v987_v27 = vsel %vm5674_vm3, %v706_v16, %v986_v7  ;;  %v606_v29 = vpack.c.bf16 %v520_v17, %v520_v17  ;;  %v837_v32 = vshrl.u32 %v621_v18, 16  ;;  %v840_v33 = vshll.u32 %v621_v18, 16  ;;  %1038 = vst [vmem:[#allocation2 + $0x94] sm:$0xf] %v834_v28  ;;  %v5245_v48 = vld [vmem:[#allocation2 + $0x30] sm:$0xff]   ;;  %2901 = vmatpush.bf16.msrb.mxu1 %v5035_v10 }
  0xf6   : > { %988 = vst [vmem:[#allocation2 + $0x3c] sm:$0xf] %v987_v27  ;;  %v1106_v35 = vld [vmem:[#allocation2 + $0x38] sm:$0x1]  ;;  %v493_v36 = vpop.f32.mrf.mxu2  ;;  %v1330_v60 = vshll.u32 %v5245_v48, 16  ;;  %1820 = vmatmul.bf16.gmra.mxu1 %v5245_v48  ;;  %v1328_v27 = vshrl.u32 %v5245_v48, 16 }
  0xf7   : > { %v709_v24 = vshrl.u32 %v606_v29, 16  ;;  %v1250_v39 = vunpack.c.l.b16 %v1106_v35  ;;  %v839_v41 = vrot.slane %v837_v32, 7  ;;  %1041 = vst [vmem:[#allocation2 + $0x98] sm:$0x1] %v1040_v34  ;;  %v494_v43 = vadd.f32 %v5649_v55, %v493_v36 }
  0xf8   : > { %v456_v42 = vpop.f32.mrf.mxu0  ;;  %v712_v46 = vshll.u32 %v606_v29, 16  ;;  %v1332_v14 = vrot.slane %v1330_v60, 1  ;;  %2835 = vmatmul.bf16.gmra.mxu0 %v5245_v48 }
  0xf9   : > { %v711_v45 = vrot.slane %v709_v24, 7  ;;  %v457_v47 = vadd.f32 %v5649_v55, %v456_v42  ;;  %v842_v50 = vor.u32 %v840_v33, %v839_v41  ;;  %v5823_v53 = vpack.c.b16 %v1250_v39, %v1250_v39 }
  0xfa   : > { %v536_v56 = vmax.f32 %v494_v43, 0.0  ;;  %v843_v16 = vrot.slane %v839_v41, 4  ;;  %v5837_v36 = vor.u32 %v1332_v14, %v1328_v27  ;;  %v5034_v41 = vld [vmem:[%s6995_s3 + $0x130] sm:$0xff] }
  0xfb   : > { %v714_v57 = vor.u32 %v712_v46, %v711_v45  ;;  %v716_v58 = vrot.slane %v711_v45, 4  ;;  %v521_v59 = vmax.f32 %v457_v47, 0.0  ;;  %v1043_v61 = vsel %vm5674_vm3, %v842_v50, %v1042_v51  ;;  %2902 = vmatpush.bf16.msrb.mxu1 %v5034_v41  ;;  %v5031_v41 = vld [vmem:[%s6995_s3 + $0x118] sm:$0xff] }
  0xfc   : > { %v622_v62 = vpack.c.bf16 %v536_v56, %v536_v56  ;;  %1044 = vst [vmem:[#allocation2 + $0x9c] sm:$0xf] %v1043_v61  ;;  %v1335_v31 = vshll.u32 %v5823_v53, 16 }
  0xfd   : > { %v715_v63 = vsel %vm5694_vm7, %v707_v54, %v714_v57  ;;  %v991_v0 = vsel %vm5702_vm8, %v716_v58, %v990_v52  ;;  %v607_v1 = vpack.c.bf16 %v521_v59, %v521_v59 }
  0xfe   : > { %989 = vst [vmem:[#allocation2 + $0x40] sm:$0xf] %v715_v63  ;;  %v845_v2 = vshrl.u32 %v622_v62, 16  ;;  %v848_v4 = vshll.u32 %v622_v62, 16  ;;  %v496_v5 = vpop.f32.mrf.mxu2  ;;  %v1337_v29 = vrot.slane %v1335_v31, 1  ;;  %v5033_v62 = vld [vmem:[%s6995_s3 + $0x128] sm:$0xff] }
  0xff   : > { %992 = vst [vmem:[#allocation2 + $0x44] sm:$0x1] %v991_v0  ;;  %v718_v7 = vshrl.u32 %v607_v1, 16  ;;  %v497_v8 = vadd.f32 %v5649_v55, %v496_v5  ;;  %v721_v19 = vshll.u32 %v607_v1, 16  ;;  %2903 = vmatpush.bf16.msrb.mxu1 %v5033_v62 }
 0x100   : > { %v458_v15 = vpop.f32.mrf.mxu0  ;;  %v847_v17 = vrot.slane %v845_v2, 7  ;;  %v1338_v52 = vsel %vm1278_vm0, %v5837_v36, %v1337_v29  ;;  %v1049_v2 = vld [vmem:[#allocation2 + $0xa8] sm:$0xf] }
 0x101   : > { %v720_v18 = vrot.slane %v718_v7, 7  ;;  %v459_v21 = vadd.f32 %v5649_v55, %v458_v15  ;;  %v537_v26 = vmax.f32 %v497_v8, 0.0  ;;  %1909 = vmatmul.bf16.gmra.mxu2 %v1338_v52  ;;  %v1000_v52 = vld [vmem:[#allocation2 + $0x54] sm:$0xf] }
 0x102   : > { %v850_v32 = vor.u32 %v848_v4, %v847_v17  ;;  %v852_v33 = vrot.slane %v847_v17, 4  ;;  %v997_v4 = vld [vmem:[#allocation2 + $0x50] sm:$0x1] }
 0x103   : > { %v723_v28 = vor.u32 %v721_v19, %v720_v18  ;;  %v522_v34 = vmax.f32 %v459_v21, 0.0  ;;  %v623_v35 = vpack.c.bf16 %v537_v26, %v537_v26  ;;  %v724_v8 = vrot.slane %v720_v18, 4  ;;  %v5032_v21 = vld [vmem:[%s6995_s3 + $0x120] sm:$0xff] }
 0x104   : > { %v851_v24 = vsel %vm5694_vm7, %v843_v16, %v850_v32  ;;  %v1047_v39 = vsel %vm5702_vm8, %v852_v33, %v1046_v25  ;;  %2904 = vmatpush.bf16.msrb.mxu1 %v5032_v21 }
 0x105   : > { %v994_v42 = vsel %vm5674_vm3, %v723_v28, %v993_v22  ;;  %v608_v43 = vpack.c.bf16 %v522_v34, %v522_v34  ;;  %v1080_v45 = vld [vmem:[#allocation2 + $0x3c] sm:$0xff]   ;;  %1045 = vst [vmem:[#allocation2 + $0xa0] sm:$0xf] %v851_v24  ;;  %v854_v50 = vshrl.u32 %v623_v35, 16  ;;  %v857_v51 = vshll.u32 %v623_v35, 16 }
 0x106   : > { %v5848_v46 = vld [vmem:[#allocation2 + $0x3c] sm:$0xf0]  ;;  %995 = vst [vmem:[#allocation2 + $0x48] sm:$0xf] %v994_v42  ;;  %v1107_v56 = vld [vmem:[#allocation2 + $0x44] sm:$0x1]  ;;  %v498_v54 = vpop.f32.mrf.mxu2  ;;  %1825 = vmatmul.bf16.gmra.mxu1 %v1080_v45 }
 0x107   : > { %v5850_v47 = vld [vmem:[#allocation2 + $0x3c] sm:$0xff]   ;;  %v726_v57 = vshrl.u32 %v608_v43, 16  ;;  %1048 = vst [vmem:[#allocation2 + $0xa4] sm:$0x1] %v1047_v39  ;;  %v1251_v58 = vunpack.c.l.b16 %v1107_v56  ;;  %v5856_v59 = vrot.slane %v854_v50, 7  ;;  %v499_v61 = vadd.f32 %v5649_v55, %v498_v54 }
 0x108   : > { %v5852_v48 = vld [vmem:[#allocation2 + $0x3c] sm:$0xf0]  ;;  %v461_v60 = vpop.f32.mrf.mxu0  ;;  %v729_v0 = vshll.u32 %v608_v43, 16  ;;  %v1342_v5 = vshll.u32 %v1080_v45, 16  ;;  %v1340_v18 = vshrl.u32 %v1080_v45, 16  ;;  %2840 = vmatmul.bf16.gmra.mxu0 %v5850_v47  ;;  %2905 = vmatpush.bf16.msrb.mxu1 %v5031_v41 }
 0x109   : > { %v728_v63 = vrot.slane %v726_v57, 7  ;;  %v462_v1 = vadd.f32 %v5649_v55, %v461_v60  ;;  %v859_v31 = vor.u32 %v857_v51, %v5856_v59  ;;  %v5864_v7 = vpack.c.b16 %v1251_v58, %v1251_v58  ;;  %v5030_v57 = vld [vmem:[%s6995_s3 + $0x110] sm:$0xff] }
 0x10a   : > { %v1344_v17 = vrot.slane %v1342_v5, 1  ;;  %v538_v19 = vmax.f32 %v499_v61, 0.0  ;;  %v860_v54 = vrot.slane %v5856_v59, 4  ;;  %v1053_v61 = vld [vmem:[#allocation2 + $0xb0] sm:$0x1] }
 0x10b   : > { %v731_v14 = vor.u32 %v729_v0, %v728_v63  ;;  %v733_v15 = vrot.slane %v728_v63, 4  ;;  %v523_v16 = vmax.f32 %v462_v1, 0.0  ;;  %v1050_v10 = vsel %vm5674_vm3, %v859_v31, %v1049_v2 }
 0x10c   : > { %1051 = vst [vmem:[#allocation2 + $0xa8] sm:$0xf] %v1050_v10  ;;  %v1347_v27 = vshll.u32 %v5864_v7, 16  ;;  %v624_v29 = vpack.c.bf16 %v538_v19, %v538_v19  ;;  %v1345_v35 = vor.u32 %v1344_v17, %v1340_v18  ;;  %2906 = vmatpush.bf16.msrb.mxu1 %v5030_v57  ;;  %v5029_v19 = vld [vmem:[%s6995_s3 + $0x108] sm:$0xff]  ;;  %v5900_v18 = vld [vmem:[%s6994_s2] ss:$0 sm:$0xff] }
 0x10d   : > { %v732_v25 = vsel %vm5694_vm7, %v724_v8, %v731_v14  ;;  %v998_v26 = vsel %vm5702_vm8, %v733_v15, %v997_v4  ;;  %v609_v22 = vpack.c.bf16 %v523_v16, %v523_v16 }
 0x10e   : > { %996 = vst [vmem:[#allocation2 + $0x4c] sm:$0xf] %v732_v25  ;;  %v501_v32 = vpop.f32.mrf.mxu2  ;;  %v862_v24 = vshrl.u32 %v624_v29, 16  ;;  %v865_v39 = vshll.u32 %v624_v29, 16  ;;  %v1349_v56 = vrot.slane %v1347_v27, 1 }
 0x10f   : > { %999 = vst [vmem:[#allocation2 + $0x50] sm:$0x1] %v998_v26  ;;  %v735_v33 = vshrl.u32 %v609_v22, 16  ;;  %v502_v28 = vadd.f32 %v5649_v55, %v501_v32  ;;  %v738_v43 = vshll.u32 %v609_v22, 16 }
 0x110   : > { %v463_v34 = vpop.f32.mrf.mxu0  ;;  %v864_v45 = vrot.slane %v862_v24, 7  ;;  %v1350_v63 = vsel %vm1278_vm0, %v1345_v35, %v1349_v56  ;;  %2907 = vmatpush.bf16.msrb.mxu1 %v5029_v19  ;;  %v5028_v24 = vld [vmem:[%s6995_s3 + $0x100] sm:$0xff] }
 0x111   : > { %v737_v42 = vrot.slane %v735_v33, 7  ;;  %v464_v50 = vadd.f32 %v5649_v55, %v463_v34  ;;  %v539_v51 = vmax.f32 %v502_v28, 0.0  ;;  %1914 = vmatmul.bf16.gmra.mxu2 %v1350_v63  ;;  %v1056_v33 = vld [vmem:[#allocation2 + $0xb4] sm:$0xf]  ;;  %v1004_v28 = vld [vmem:[#allocation2 + $0x5c] sm:$0x1] }
 0x112   : > { %v867_v0 = vor.u32 %v865_v39, %v864_v45  ;;  %v869_v1 = vrot.slane %v864_v45, 4 }
 0x113   : > { %v740_v58 = vor.u32 %v738_v43, %v737_v42  ;;  %v524_v60 = vmax.f32 %v464_v50, 0.0  ;;  %v625_v62 = vpack.c.bf16 %v539_v51, %v539_v51  ;;  %v741_v39 = vrot.slane %v737_v42, 4 }
 0x114   : > { %v868_v5 = vsel %vm5694_vm7, %v860_v54, %v867_v0  ;;  %v1054_v8 = vsel %vm5702_vm8, %v869_v1, %v1053_v61  ;;  %2908 = vmatpush.bf16.msrb.mxu1 %v5028_v24 }
 0x115   : > { %v1001_v31 = vsel %vm5674_vm3, %v740_v58, %v1000_v52  ;;  %v610_v2 = vpack.c.bf16 %v524_v60, %v524_v60  ;;  %v871_v4 = vshrl.u32 %v625_v62, 16  ;;  %v874_v59 = vshll.u32 %v625_v62, 16  ;;  %1052 = vst [vmem:[#allocation2 + $0xac] sm:$0xf] %v868_v5  ;;  %v5246_v29 = vld [vmem:[#allocation2 + $0x48] sm:$0xff]  }
 0x116   : > { %1002 = vst [vmem:[#allocation2 + $0x54] sm:$0xf] %v1001_v31  ;;  %v1108_v14 = vld [vmem:[#allocation2 + $0x50] sm:$0x1]  ;;  %v503_v15 = vpop.f32.mrf.mxu2  ;;  %v1354_v51 = vshll.u32 %v5246_v29, 16  ;;  %1830 = vmatmul.bf16.gmra.mxu1 %v5246_v29 }
 0x117   : > { %v743_v16 = vshrl.u32 %v610_v2, 16  ;;  %v1252_v17 = vunpack.c.l.b16 %v1108_v14  ;;  %v873_v10 = vrot.slane %v871_v4, 7  ;;  %1055 = vst [vmem:[#allocation2 + $0xb0] sm:$0x1] %v1054_v8  ;;  %v504_v25 = vadd.f32 %v5649_v55, %v503_v15  ;;  %v5019_v55 = vld [vmem:[%s6995_s3 + $0xb8] sm:$0xff] }
 0x118   : > { %v466_v21 = vpop.f32.mrf.mxu0  ;;  %v746_v22 = vshll.u32 %v610_v2, 16  ;;  %1970 = vmatpush.bf16.msrb.mxu3 %v5019_v55  ;;  %v1356_v0 = vrot.slane %v1354_v51, 1  ;;  %2845 = vmatmul.bf16.gmra.mxu0 %v5246_v29  ;;  %v1060_v8 = vld [vmem:[#allocation2 + $0xbc] sm:$0x1]  ;;  %v1007_v15 = vld [vmem:[#allocation2 + $0x60] sm:$0xf] }
 0x119   : > { %v745_v26 = vrot.slane %v743_v16, 7  ;;  %v467_v27 = vadd.f32 %v5900_v18, %v466_v21  ;;  %v876_v32 = vor.u32 %v874_v59, %v873_v10  ;;  %v5903_v34 = vpack.c.b16 %v1252_v17, %v1252_v17 }
 0x11a   : > { %v540_v35 = vmax.f32 %v504_v25, 0.0  ;;  %v877_v31 = vrot.slane %v873_v10, 4  ;;  %v1352_v16 = vshrl.u32 %v5246_v29, 16 }
 0x11b   : > { %v748_v41 = vor.u32 %v746_v22, %v745_v26  ;;  %v750_v43 = vrot.slane %v745_v26, 4  ;;  %v525_v50 = vmax.f32 %v467_v27, 0.0  ;;  %v1057_v52 = vsel %vm5674_vm3, %v876_v32, %v1056_v33 }
 0x11c   : > { %v626_v56 = vpack.c.bf16 %v540_v35, %v540_v35  ;;  %1058 = vst [vmem:[#allocation2 + $0xb4] sm:$0xf] %v1057_v52  ;;  %v1359_v42 = vshll.u32 %v5903_v34, 16  ;;  %v5920_v27 = vor.u32 %v1356_v0, %v1352_v16 }
 0x11d   : > { %v749_v54 = vsel %vm5694_vm7, %v741_v39, %v748_v41  ;;  %v1005_v45 = vsel %vm5702_vm8, %v750_v43, %v1004_v28  ;;  %v611_v57 = vpack.c.bf16 %v525_v50, %v525_v50 }
 0x11e   : > { %1003 = vst [vmem:[#allocation2 + $0x58] sm:$0xf] %v749_v54  ;;  %v879_v58 = vshrl.u32 %v626_v56, 16  ;;  %v882_v60 = vshll.u32 %v626_v56, 16  ;;  %v506_v61 = vpop.f32.mrf.mxu2  ;;  %v1361_v17 = vrot.slane %v1359_v42, 1  ;;  %v5018_v42 = vld [vmem:[%s6995_s3 + $0xb0] sm:$0xff] }
 0x11f   : > { %1006 = vst [vmem:[#allocation2 + $0x5c] sm:$0x1] %v1005_v45  ;;  %v752_v62 = vshrl.u32 %v611_v57, 16  ;;  %v507_v63 = vadd.f32 %v5900_v18, %v506_v61  ;;  %v755_v59 = vshll.u32 %v611_v57, 16  ;;  %v1063_v45 = vld [vmem:[#allocation2 + $0xc0] sm:$0xf]  ;;  %1971 = vmatpush.bf16.msrb.mxu3 %v5018_v42 }
 0x120   : > { %v468_v1 = vpop.f32.mrf.mxu0  ;;  %v881_v2 = vrot.slane %v879_v58, 7  ;;  %v1362_v43 = vsel %vm1278_vm0, %v5920_v27, %v1361_v17 }
 0x121   : > { %v754_v4 = vrot.slane %v752_v62, 7  ;;  %v469_v5 = vadd.f32 %v5900_v18, %v468_v1  ;;  %v541_v14 = vmax.f32 %v507_v63, 0.0  ;;  %1919 = vmatmul.bf16.gmra.mxu2 %v1362_v43  ;;  %v1011_v62 = vld [vmem:[#allocation2 + $0x68] sm:$0x1] }
 0x122   : > { %v884_v19 = vor.u32 %v882_v60, %v881_v2  ;;  %v886_v21 = vrot.slane %v881_v2, 4 }
 0x123   : > { %v757_v25 = vor.u32 %v755_v59, %v754_v4  ;;  %v526_v26 = vmax.f32 %v469_v5, 0.0  ;;  %v627_v22 = vpack.c.bf16 %v541_v14, %v541_v14  ;;  %1972 = vmatpush.bf16.msrb.mxu3 %v5017_v30  ;;  %v5999_v30 = vld [vmem:[#allocation2 + $0x24] sm:$0xff]  }
 0x124   : > { %v885_v10 = vsel %vm5694_vm7, %v877_v31, %v884_v19  ;;  %v1061_v32 = vsel %vm5702_vm8, %v886_v21, %v1060_v8  ;;  %v758_v31 = vrot.slane %v754_v4, 4  ;;  %v1801_v19 = vpop.f32.mrf.mxu1  ;;  %7025 = vst [vmem:[#allocation5_spill] sm:$0xff] %v5999_v30 }
 0x125   : > { %v1008_v33 = vsel %vm5674_vm3, %v757_v25, %v1007_v15  ;;  %v612_v28 = vpack.c.bf16 %v526_v26, %v526_v26  ;;  %v1084_v35 = vld [vmem:[#allocation2 + $0x54] sm:$0xff]   ;;  %1059 = vst [vmem:[#allocation2 + $0xb8] sm:$0xf] %v885_v10  ;;  %v888_v39 = vshrl.u32 %v627_v22, 16  ;;  %v891_v41 = vshll.u32 %v627_v22, 16 }
 0x126   : > { %v5928_v29 = vld [vmem:[#allocation2 + $0x54] sm:$0xf0]  ;;  %1009 = vst [vmem:[#allocation2 + $0x60] sm:$0xf] %v1008_v33  ;;  %v1109_v50 = vld [vmem:[#allocation2 + $0x5c] sm:$0x1]  ;;  %v508_v51 = vpop.f32.mrf.mxu2  ;;  %1835 = vmatmul.bf16.gmra.mxu1 %v1084_v35 }
 0x127   : > { %v5930_v55 = vld [vmem:[#allocation2 + $0x54] sm:$0xff]   ;;  %v760_v52 = vshrl.u32 %v612_v28, 16  ;;  %1062 = vst [vmem:[#allocation2 + $0xbc] sm:$0x1] %v1061_v32  ;;  %v1253_v56 = vunpack.c.l.b16 %v1109_v50  ;;  %v890_v54 = vrot.slane %v888_v39, 7  ;;  %v509_v57 = vadd.f32 %v5900_v18, %v508_v51 }
 0x128   : > { %v5932_v24 = vld [vmem:[#allocation2 + $0x54] sm:$0xf0]  ;;  %v763_v60 = vshll.u32 %v612_v28, 16  ;;  %v1366_v63 = vshll.u32 %v1084_v35, 16  ;;  %v1364_v16 = vshrl.u32 %v1084_v35, 16  ;;  %2850 = vmatmul.bf16.gmra.mxu0 %v5930_v55 }
 0x129   : > { %v762_v58 = vrot.slane %v760_v52, 7  ;;  %v893_v61 = vor.u32 %v891_v41, %v890_v54  ;;  %v5940_v0 = vpack.c.b16 %v1253_v56, %v1253_v56  ;;  %v542_v1 = vmax.f32 %v509_v57, 0.0  ;;  %v1067_v32 = vld [vmem:[#allocation2 + $0xc8] sm:$0x1] }
 0x12a   : > { %v1368_v18 = vrot.slane %v1366_v63, 1  ;;  %v894_v22 = vrot.slane %v890_v54, 4  ;;  %v2302_v41 = vshll.u32 %v5731_v23, 16  ;;  %v2307_v57 = vshll.u32 %v5767_v40, 16  ;;  %v1088_v63 = vld [vmem:[#allocation2 + $0x6c] sm:$0xff]  }
 0x12b   : > { %v765_v2 = vor.u32 %v763_v60, %v762_v58  ;;  %v767_v59 = vrot.slane %v762_v58, 4  ;;  %v1064_v5 = vsel %vm5674_vm3, %v893_v61, %v1063_v45  ;;  %v628_v8 = vpack.c.bf16 %v542_v1, %v542_v1  ;;  %v2124_v60 = vld [vmem:[#allocation2 + $0x20] sm:$0x1]  ;;  %v2127_v61 = vld [vmem:[#allocation2 + $0x44] sm:$0x1] }
 0x12c   : > { %1065 = vst [vmem:[#allocation2 + $0xc0] sm:$0xf] %v1064_v5  ;;  %v1371_v17 = vshll.u32 %v5940_v0, 16  ;;  %v1369_v26 = vor.u32 %v1368_v18, %v1364_v16  ;;  %v2304_v56 = vrot.slane %v2302_v41, 1  ;;  %v2300_v45 = vshrl.u32 %v5731_v23, 16 }
 0x12d   : > { %v766_v14 = vsel %vm5694_vm7, %v758_v31, %v765_v2  ;;  %v1012_v15 = vsel %vm5702_vm8, %v767_v59, %v1011_v62  ;;  %v896_v4 = vshrl.u32 %v628_v8, 16  ;;  %v899_v21 = vshll.u32 %v628_v8, 16  ;;  %v5965_v1 = vld [vmem:[#allocation2 + $0x6c] sm:$0xf0]  ;;  %v5391_v8 = vld [vmem:[#allocation2 + $0x3c] sm:$0xe] }
 0x12e   : > { %1010 = vst [vmem:[#allocation2 + $0x64] sm:$0xf] %v766_v14  ;;  %v1890_v25 = vpop.f32.mrf.mxu2  ;;  %v1373_v33 = vrot.slane %v1371_v17, 1  ;;  %v2305_v58 = vor.u32 %v2304_v56, %v2300_v45  ;;  %v2309_v62 = vrot.slane %v2307_v57, 1  ;;  %v2268_v40 = vunpack.c.l.b16 %v2124_v60  ;;  %v5969_v14 = vpop.f32.mrf.mxu1  ;;  %v1111_v16 = vld [vmem:[#allocation2 + $0x74] sm:$0x1] }
 0x12f   : > { %1013 = vst [vmem:[#allocation2 + $0x68] sm:$0x1] %v1012_v15  ;;  %v5949_v9 = vadd.f32 %v1890_v25, %v1801_v19  ;;  %v898_v10 = vrot.slane %v896_v4, 7  ;;  %v2271_v2 = vunpack.c.l.b16 %v2127_v61  ;;  %v5979_v25 = vld [vmem:[#allocation2 + $0x6c] sm:$0xff]  }
 0x130   : > { %v1374_v43 = vsel %vm1278_vm0, %v1369_v26, %v1373_v33  ;;  %v2310_v23 = vsel %vm1278_vm0, %v2305_v58, %v2309_v62  ;;  %7024 = vst [vmem:[#allocation4_spill] sm:$0xff] %v5969_v14  ;;  %v5971_v15 = vpack.c.b16 %v2268_v40, %v2268_v40  ;;  %v5981_v26 = vld [vmem:[#allocation2 + $0x6c] sm:$0xf0]  ;;  %v3209_v41 = vld [vmem:[#allocation2 + $0x2c] sm:$0x1]  ;;  %v2326_v62 = vshll.u32 %v5785_v12, 16 }
 0x131   : > { %v901_v28 = vor.u32 %v899_v21, %v898_v10  ;;  %v903_v39 = vrot.slane %v898_v10, 4  ;;  %1924 = vmatmul.bf16.gmra.mxu2 %v1374_v43  ;;  %v5973_v17 = vpack.c.b16 %v2271_v2, %v2271_v2  ;;  %v1255_v21 = vunpack.c.l.b16 %v1111_v16  ;;  %v2125_v56 = vld [vmem:[#allocation2 + $0x2c] sm:$0x1]  ;;  %v1112_v2 = vld [vmem:[#allocation2 + $0x80] sm:$0x1] }
 0x132   : > { %v5392_v10 = vor.u32 %v5391_v8, %v5852_v48  ;;  %v3353_v48 = vunpack.c.l.b16 %v3209_v41  ;;  %v2269_v61 = vunpack.c.l.b16 %v2125_v56  ;;  %v2328_v8 = vrot.slane %v2326_v62, 1  ;;  %v3211_v62 = vld [vmem:[#allocation2 + $0x44] sm:$0x1] }
 0x133   : > { %v902_v50 = vsel %vm5694_vm7, %v894_v22, %v901_v28  ;;  %v1068_v51 = vsel %vm5702_vm8, %v903_v39, %v1067_v32  ;;  %v2319_v22 = vshll.u32 %v5971_v15, 16  ;;  %v2568_v32 = vrot.slane %v5973_v17, 1  ;;  %v5052_v14 = vld [vmem:[%s6995_s3 + $0x1c0] sm:$0xff] }
 0x134   : > { %1066 = vst [vmem:[#allocation2 + $0xc4] sm:$0xf] %v902_v50  ;;  %v2567_v33 = vrot.slane %v5392_v10, 1  ;;  %v1390_v28 = vshll.u32 %v1088_v63, 16  ;;  %v5986_v39 = vpack.c.b16 %v1255_v21, %v1255_v21  ;;  %v5016_v50 = vld [vmem:[%s6995_s3 + $0xa0] sm:$0xff]  ;;  %v6005_v40 = vpack.c.b16 %v3353_v48, %v3353_v48 }
 0x135   : > { %v5247_v35 = vld [vmem:[#allocation2 + $0x60] sm:$0xff]   ;;  %1069 = vst [vmem:[#allocation2 + $0xc8] sm:$0x1] %v1068_v51  ;;  %v2321_v43 = vrot.slane %v2319_v22, 1  ;;  %1973 = vmatpush.bf16.msrb.mxu3 %v5016_v50  ;;  %v2129_v10 = vld [vmem:[#allocation2 + $0x5c] sm:$0x1] }
 0x136   : > { %1840 = vmatmul.bf16.vlgmr.msra.gmra.mxu3 %v5247_v35  ;;  %v1110_v52 = vld [vmem:[#allocation2 + $0x68] sm:$0x1]  ;;  %v1378_v38 = vshll.u32 %v5247_v35, 16  ;;  %2909 = vmatmul.bf16.vlgmr.msrb.gmra.mxu1 %v2310_v23  ;;  %v1376_v5 = vshrl.u32 %v5247_v35, 16  ;;  %v5992_v51 = vsel %vm1535_vm9, %v2567_v33, %v2568_v32  ;;  %v1392_v45 = vrot.slane %v1390_v28, 1  ;;  %v6002_v60 = vpop.f32.mrf.mxu2 }
 0x137   : > { %v1254_v54 = vunpack.c.l.b16 %v1110_v52  ;;  %v1395_v57 = vshll.u32 %v5986_v39, 16  ;;  %v2322_v58 = vsel %vm1278_vm0, %v5776_v3, %v2321_v43  ;;  %7026 = vst [vmem:[#allocation6_spill] sm:$0xff] %v6002_v60  ;;  %v3644_v22 = vrot.slane %v6005_v40, 1 }
 0x138   : > { %v1380_v59 = vrot.slane %v1378_v38, 1  ;;  %2855 = vmatmul.bf16.gmra.mxu0 %v5247_v35  ;;  %v5439_v38 = vld [vmem:[#allocation2 + $0x24] sm:$0xf0]  ;;  %v2324_v32 = vshrl.u32 %v5785_v12, 16  ;;  %v2273_v48 = vunpack.c.l.b16 %v2129_v10  ;;  %v5015_v12 = vld [vmem:[%s6995_s3 + $0x98] sm:$0xff] }
 0x139   : > { %v5960_v42 = vpack.c.b16 %v1254_v54, %v1254_v54  ;;  %v1388_v54 = vshrl.u32 %v1088_v63, 16  ;;  %1974 = vmatpush.bf16.msrb.mxu3 %v5015_v12  ;;  %v5442_v10 = vld [vmem:[#allocation2 + $0x3c] sm:$0xf0] }
 0x13a   : > { %v5975_v19 = vor.u32 %v1380_v59, %v1376_v5  ;;  %v6007_v59 = vpack.c.b16 %v2269_v61, %v2269_v61  ;;  %v2329_v50 = vor.u32 %v2328_v8, %v2324_v32  ;;  %v2126_v61 = vld [vmem:[#allocation2 + $0x38] sm:$0x1]  ;;  %v1092_v8 = vld [vmem:[#allocation2 + $0x84] sm:$0xff]  }
 0x13b   : > { %v1383_v31 = vshll.u32 %v5960_v42, 16  ;;  %v1393_v23 = vor.u32 %v1392_v45, %v1388_v54  ;;  %v5394_v54 = vld [vmem:[#allocation2 + $0x54] sm:$0xe]  ;;  %v2270_v32 = vunpack.c.l.b16 %v2126_v61 }
 0x13c   : > { %v2331_v33 = vshll.u32 %v6007_v59, 16  ;;  %v5397_v45 = vld [vmem:[#allocation2 + $0x54] sm:$0xe] }
 0x13d   : > { %v1385_v18 = vrot.slane %v1383_v31, 1  ;;  %v5440_v31 = vld [vmem:[#allocation2 + $0x24] sm:$0xe]  ;;  %v6043_v61 = vpack.c.b16 %v2270_v32, %v2270_v32 }
 0x13e   : > { %v5441_v21 = vor.u32 %v5440_v31, %v5439_v38  ;;  %v2333_v38 = vrot.slane %v2331_v33, 1  ;;  %v3355_v33 = vunpack.c.l.b16 %v3211_v62 }
 0x13f   : > { %v1386_v4 = vsel %vm1278_vm0, %v5975_v19, %v1385_v18  ;;  %v5248_v18 = vld [vmem:[#allocation2 + $0x78] sm:$0xff]  }
 0x140   : > { %v3643_v28 = vrot.slane %v5441_v21, 1  ;;  %v1402_v41 = vshll.u32 %v5248_v18, 16  ;;  %v1400_v31 = vshrl.u32 %v5248_v18, 16  ;;  %v6031_v21 = vpack.c.b16 %v2273_v48, %v2273_v48 }
 0x141   : > { %1929 = vmatmul.bf16.gmra.mxu2 %v1386_v4  ;;  %v1256_v4 = vunpack.c.l.b16 %v1112_v2 }
 0x142   : > { %v2574_v48 = vrot.slane %v6031_v21, 1 }
 0x143   : > { %v1806_v35 = vpop.f32.mrf.mxu1  ;;  %v6015_v56 = vpack.c.b16 %v1256_v4, %v1256_v4  ;;  %v2334_v4 = vsel %vm1278_vm0, %v2329_v50, %v2333_v38 }
 0x145   : > { %v5994_v52 = vpop.f32.mrf.mxu0  ;;  %7028 = vst [vmem:[#allocation8_spill] sm:$0xff] %v6015_v56 }
 0x146   : > { %1845 = vmatmul.bf16.gmra.mxu3 %v1088_v63  ;;  %2914 = vmatmul.bf16.gmra.mxu1 %v2322_v58  ;;  %v1397_v63 = vrot.slane %v1395_v57, 1  ;;  %v6018_v57 = vsel %vm1535_vm9, %v3643_v28, %v3644_v22  ;;  %v6033_v22 = vld [vmem:[#allocation2 + $0x3c] sm:$0xff]   ;;  %v5395_v28 = vor.u32 %v5394_v54, %v5932_v24  ;;  %v1113_v24 = vld [vmem:[#allocation2 + $0x8c] sm:$0x1]  ;;  %v6045_v54 = vpack.c.b16 %v3355_v33, %v3355_v33 }
 0x147   : > { %7029 = vst [vmem:[#allocation9_spill] sm:$0xff] %v6018_v57 }
 0x148   : > { %2860 = vmatmul.bf16.gmra.mxu0 %v5979_v25  ;;  %v1398_v16 = vsel %vm1278_vm0, %v1393_v23, %v1397_v63  ;;  %v1404_v23 = vrot.slane %v1402_v41, 1  ;;  %7032 = vst [vmem:[#allocation12_spill] sm:$0xff] %v6033_v22  ;;  %v5398_v41 = vor.u32 %v5397_v45, %v5928_v29  ;;  %v2573_v12 = vrot.slane %v5395_v28, 1 }
 0x14a   : > { %v6048_v29 = vsel %vm1535_vm9, %v2573_v12, %v2574_v48  ;;  %v5014_v12 = vld [vmem:[%s6995_s3 + $0x90] sm:$0xff]  ;;  %v1412_v48 = vshrl.u32 %v1092_v8, 16 }
 0x14b   : > { %v1808_v3 = vpop.f32.mrf.mxu1  ;;  %1975 = vmatpush.bf16.msrb.mxu3 %v5014_v12 }
 0x14d   : > { %v6009_v5 = vpop.f32.mrf.mxu0 }
 0x14e   : > { %7027 = vst [vmem:[#allocation7_spill] sm:$0xff] %v6009_v5 }
 0x151   : > { %1934 = vmatmul.bf16.gmra.mxu2 %v1398_v16  ;;  %v6027_v16 = vld [vmem:[#allocation2 + $0x84] sm:$0xf0] }
 0x152   : > { %7031 = vst [vmem:[#allocation11_spill] sm:$0xff] %v6027_v16  ;;  %v6037_v16 = vor.u32 %v1404_v23, %v1400_v31  ;;  %v6057_v23 = vld [vmem:[#allocation2 + $0x84] sm:$0xff]  }
 0x153   : > { %v1811_v63 = vpop.f32.mrf.mxu1 }
 0x154   : > { %v1895_v43 = vpop.f32.mrf.mxu2 }
 0x155   : > { %v6020_v58 = vadd.f32 %v1895_v43, %v1806_v35  ;;  %v6025_v2 = vpop.f32.mrf.mxu0  ;;  %v1407_v35 = vshll.u32 %v6015_v56, 16  ;;  %v5443_v43 = vld [vmem:[#allocation2 + $0x3c] sm:$0xe]  ;;  %v1558_v56 = vrot.slane %v5940_v0, 1 }
 0x156   : > { %1850 = vmatmul.bf16.gmra.mxu3 %v5248_v18  ;;  %7030 = vst [vmem:[#allocation10_spill] sm:$0xff] %v6025_v2  ;;  %2919 = vmatmul.bf16.gmra.mxu1 %v2334_v4  ;;  %v1557_v2 = vrot.slane %v5398_v41, 1  ;;  %v5444_v31 = vor.u32 %v5443_v43, %v5442_v10  ;;  %v6059_v4 = vld [vmem:[#allocation2 + $0x84] sm:$0xf0]  ;;  %v1414_v10 = vshll.u32 %v1092_v8, 16 }
 0x157   : > { %v1409_v38 = vrot.slane %v1407_v35, 1  ;;  %7035 = vst [vmem:[#allocation15_spill] sm:$0xff] %v6059_v4  ;;  %v2343_v35 = vshll.u32 %v6043_v61, 16 }
 0x158   : > { %2865 = vmatmul.bf16.gmra.mxu0 %v5248_v18  ;;  %v6051_v18 = vsel %vm1535_vm9, %v1557_v2, %v1558_v56  ;;  %v3649_v32 = vrot.slane %v5444_v31, 1  ;;  %v3650_v56 = vrot.slane %v6045_v54, 1 }
 0x159   : > { %v1410_v0 = vsel %vm1278_vm0, %v6037_v16, %v1409_v38  ;;  %v2345_v43 = vrot.slane %v2343_v35, 1 }
 0x15a   : > { %v6064_v2 = vsel %vm1535_vm9, %v3649_v32, %v3650_v56  ;;  %v2350_v32 = vshll.u32 %v5850_v47, 16 }
 0x15b   : > { %v1813_v45 = vpop.f32.mrf.mxu1  ;;  %7036 = vst [vmem:[#allocation16_spill] sm:$0xff] %v6064_v2 }
 0x15c   : > { %v1897_v50 = vpop.f32.mrf.mxu2 }
 0x15d   : > { %v6041_v5 = vadd.f32 %v1897_v50, %v1808_v3  ;;  %v6053_v62 = vpop.f32.mrf.mxu0  ;;  %v1257_v3 = vunpack.c.l.b16 %v1113_v24  ;;  %v1416_v24 = vrot.slane %v1414_v10, 1 }
 0x15e   : > { %7034 = vst [vmem:[#allocation14_spill] sm:$0xff] %v6053_v62  ;;  %v5446_v62 = vld [vmem:[#allocation2 + $0x54] sm:$0xe] }
 0x15f   : > { %7033 = vst [vmem:[#allocation13_spill] sm:$0xff] %v6041_v5  ;;  %v6066_v28 = vpack.c.b16 %v1257_v3, %v1257_v3  ;;  %v1417_v3 = vor.u32 %v1416_v24, %v1412_v48  ;;  %v2355_v48 = vshll.u32 %v5973_v17, 16 }
 0x161   : > { %1939 = vmatmul.bf16.gmra.mxu2 %v1410_v0  ;;  %7037 = vst [vmem:[#allocation17_spill] sm:$0xff] %v6066_v28  ;;  %v1419_v31 = vshll.u32 %v6066_v28, 16  ;;  %v2346_v0 = vsel %vm1278_vm0, %v5837_v36, %v2345_v43  ;;  %v2352_v36 = vrot.slane %v2350_v32, 1  ;;  %v2348_v43 = vshrl.u32 %v5850_v47, 16  ;;  %v1096_v47 = vld [vmem:[#allocation2 + $0x9c] sm:$0xff]  }
 0x162   : > { %v2357_v32 = vrot.slane %v2355_v48, 1 }
 0x163   : > { %v1816_v50 = vpop.f32.mrf.mxu1  ;;  %v1421_v35 = vrot.slane %v1419_v31, 1 }
 0x164   : > { %v1900_v33 = vpop.f32.mrf.mxu2 }
 0x165   : > { %v6068_v41 = vadd.f32 %v1900_v33, %v1811_v63  ;;  %v6073_v38 = vpop.f32.mrf.mxu0  ;;  %v1114_v33 = vld [vmem:[#allocation2 + $0x98] sm:$0x1]  ;;  %v1422_v10 = vsel %vm1278_vm0, %v1417_v3, %v1421_v35  ;;  %v2128_v3 = vld [vmem:[#allocation2 + $0x50] sm:$0x1]  ;;  %v3213_v35 = vld [vmem:[#allocation2 + $0x5c] sm:$0x1] }
 0x166   : > { %1855 = vmatmul.bf16.gmra.mxu3 %v1092_v8  ;;  %7039 = vst [vmem:[#allocation19_spill] sm:$0xff] %v6073_v38  ;;  %2924 = vmatmul.bf16.gmra.mxu1 %v2346_v0  ;;  %v5249_v8 = vld [vmem:[#allocation2 + $0x90] sm:$0xff]   ;;  %v1258_v38 = vunpack.c.l.b16 %v1114_v33  ;;  %v3357_v28 = vunpack.c.l.b16 %v3213_v35  ;;  %v6114_v35 = vld [vmem:[#allocation2 + $0x9c] sm:$0xff]  }
 0x167   : > { %7038 = vst [vmem:[#allocation18_spill] sm:$0xff] %v6068_v41  ;;  %v1426_v31 = vshll.u32 %v5249_v8, 16  ;;  %v1424_v17 = vshrl.u32 %v5249_v8, 16 }
 0x168   : > { %2870 = vmatmul.bf16.gmra.mxu0 %v6057_v23  ;;  %v6087_v0 = vpack.c.b16 %v1258_v38, %v1258_v38 }
 0x169   : > { %v1428_v38 = vrot.slane %v1426_v31, 1  ;;  %v1115_v31 = vld [vmem:[#allocation2 + $0xa4] sm:$0x1] }
 0x16a   : > { %7042 = vst [vmem:[#allocation22_spill] sm:$0xff] %v6087_v0 }
 0x16b   : > { %v1818_v2 = vpop.f32.mrf.mxu1 }
 0x16c   : > { %v1902_v63 = vpop.f32.mrf.mxu2 }
 0x16d   : > { %v6080_v56 = vadd.f32 %v1902_v63, %v1813_v45  ;;  %v6082_v12 = vpop.f32.mrf.mxu0  ;;  %v2353_v63 = vor.u32 %v2352_v36, %v2348_v43  ;;  %v5445_v36 = vld [vmem:[#allocation2 + $0x54] sm:$0xf0] }
 0x16e   : > { %7041 = vst [vmem:[#allocation21_spill] sm:$0xff] %v6082_v12  ;;  %v5013_v12 = vld [vmem:[%s6995_s3 + $0x88] sm:$0xff] }
 0x16f   : > { %7040 = vst [vmem:[#allocation20_spill] sm:$0xff] %v6080_v56  ;;  %v6096_v56 = vld [vmem:[#allocation2 + $0x9c] sm:$0xf0]  ;;  %1976 = vmatpush.bf16.msrb.mxu3 %v5013_v12  ;;  %v2358_v43 = vsel %vm1278_vm0, %v2353_v63, %v2357_v32  ;;  %v5447_v63 = vor.u32 %v5446_v62, %v5445_v36 }
 0x170   : > { %7045 = vst [vmem:[#allocation25_spill] sm:$0xff] %v6096_v56  ;;  %v6116_v32 = vld [vmem:[#allocation2 + $0x9c] sm:$0xf0] }
 0x171   : > { %1944 = vmatmul.bf16.gmra.mxu2 %v1422_v10  ;;  %7049 = vst [vmem:[#allocation29_spill] sm:$0xff] %v6116_v32 }
 0x173   : > { %v1821_v33 = vpop.f32.mrf.mxu1 }
 0x174   : > { %v1905_v24 = vpop.f32.mrf.mxu2 }
 0x175   : > { %v6089_v45 = vadd.f32 %v1905_v24, %v1816_v50  ;;  %v6094_v10 = vpop.f32.mrf.mxu0  ;;  %v1431_v50 = vshll.u32 %v6087_v0, 16  ;;  %v6099_v24 = vld [vmem:[#allocation2 + $0x54] sm:$0xff]   ;;  %v6108_v0 = vpack.c.b16 %v3357_v28, %v3357_v28 }
 0x176   : > { %1860 = vmatmul.bf16.gmra.mxu3 %v5249_v8  ;;  %7044 = vst [vmem:[#allocation24_spill] sm:$0xff] %v6094_v10  ;;  %2929 = vmatmul.bf16.gmra.mxu1 %v2358_v43  ;;  %v6102_v10 = vor.u32 %v1428_v38, %v1424_v17  ;;  %v5043_v28 = vld [vmem:[%s6995_s3 + $0x178] sm:$0xff]  ;;  %v1438_v38 = vshll.u32 %v1096_v47, 16 }
 0x177   : > { %7043 = vst [vmem:[#allocation23_spill] sm:$0xff] %v6089_v45  ;;  %v2272_v45 = vunpack.c.l.b16 %v2128_v3  ;;  %v1433_v4 = vrot.slane %v1431_v50, 1  ;;  %v1259_v3 = vunpack.c.l.b16 %v1115_v31  ;;  %v3656_v17 = vrot.slane %v6108_v0, 1  ;;  %2990 = vmatpush.bf16.msra.mxu2 %v5043_v28  ;;  %v5042_v31 = vld [vmem:[%s6995_s3 + $0x170] sm:$0xff] }
 0x178   : > { %7046 = vst [vmem:[#allocation26_spill] sm:$0xff] %v6099_v24  ;;  %2875 = vmatmul.bf16.gmra.mxu0 %v5249_v8  ;;  %v1436_v28 = vshrl.u32 %v1096_v47, 16 }
 0x179   : > { %v6106_v12 = vpack.c.b16 %v2272_v45, %v2272_v45  ;;  %v1434_v8 = vsel %vm1278_vm0, %v6102_v10, %v1433_v4  ;;  %v3655_v45 = vrot.slane %v5447_v63, 1  ;;  %v6126_v50 = vpack.c.b16 %v1259_v3, %v1259_v3 }
 0x17b   : > { %v1823_v41 = vpop.f32.mrf.mxu1  ;;  %v6124_v62 = vsel %vm1535_vm9, %v3655_v45, %v3656_v17  ;;  %7051 = vst [vmem:[#allocation31_spill] sm:$0xff] %v6126_v50  ;;  %2991 = vmatpush.bf16.msra.mxu2 %v5042_v31  ;;  %v1440_v45 = vrot.slane %v1438_v38, 1  ;;  %v1443_v3 = vshll.u32 %v6126_v50, 16  ;;  %v5041_v17 = vld [vmem:[%s6995_s3 + $0x168] sm:$0xff]  ;;  %v5040_v50 = vld [vmem:[%s6995_s3 + $0x160] sm:$0xff] }
 0x17c   : > { %v1907_v48 = vpop.f32.mrf.mxu2  ;;  %7050 = vst [vmem:[#allocation30_spill] sm:$0xff] %v6124_v62  ;;  %v6148_v31 = vld [vmem:[#allocation2 + $0x6c] sm:$0xff]   ;;  %v2374_v62 = vshll.u32 %v5930_v55, 16 }
 0x17d   : > { %v6104_v56 = vadd.f32 %v1907_v48, %v1818_v2  ;;  %v6110_v5 = vpop.f32.mrf.mxu0  ;;  %v2367_v2 = vshll.u32 %v6106_v12, 16  ;;  %v5012_v48 = vld [vmem:[%s6995_s3 + $0x80] sm:$0xff]  ;;  %v1445_v38 = vrot.slane %v1443_v3, 1  ;;  %7054 = vst [vmem:[#allocation34_spill] sm:$0xff] %v6148_v31 }
 0x17e   : > { %7048 = vst [vmem:[#allocation28_spill] sm:$0xff] %v6110_v5  ;;  %1977 = vmatpush.bf16.msrb.mxu3 %v5012_v48  ;;  %v5449_v5 = vld [vmem:[#allocation2 + $0x6c] sm:$0xe] }
 0x17f   : > { %7047 = vst [vmem:[#allocation27_spill] sm:$0xff] %v6104_v56  ;;  %v2369_v43 = vrot.slane %v2367_v2, 1  ;;  %v3215_v2 = vld [vmem:[#allocation2 + $0x74] sm:$0x1]  ;;  %2992 = vmatpush.bf16.msra.mxu2 %v5041_v17  ;;  %v5039_v17 = vld [vmem:[%s6995_s3 + $0x158] sm:$0xff] }
 0x181   : > { %1949 = vmatmul.bf16.gmra.mxu2 %v1434_v8 }
 0x183   : > { %v1826_v63 = vpop.f32.mrf.mxu1  ;;  %2993 = vmatpush.bf16.msra.mxu2 %v5040_v50  ;;  %v2379_v50 = vshll.u32 %v6031_v21, 16 }
 0x184   : > { %v1910_v4 = vpop.f32.mrf.mxu2 }
 0x185   : > { %v6128_v36 = vadd.f32 %v1910_v4, %v1821_v33  ;;  %v6136_v8 = vpop.f32.mrf.mxu0  ;;  %v2370_v33 = vsel %vm1278_vm0, %v5920_v27, %v2369_v43  ;;  %v5059_v4 = vld [vmem:[%s6995_s3 + $0x1f8] sm:$0xff]  ;;  %v5448_v27 = vld [vmem:[#allocation2 + $0x6c] sm:$0xf0]  ;;  %v3359_v43 = vunpack.c.l.b16 %v3215_v2 }
 0x186   : > { %1865 = vmatmul.bf16.gmra.mxu3 %v1096_v47  ;;  %7053 = vst [vmem:[#allocation33_spill] sm:$0xff] %v6136_v8  ;;  %2934 = vmatmul.bf16.gmra.mxu1 %v2370_v33  ;;  %v1441_v47 = vor.u32 %v1440_v45, %v1436_v28  ;;  %v1116_v8 = vld [vmem:[#allocation2 + $0xb0] sm:$0x1] }
 0x187   : > { %7052 = vst [vmem:[#allocation32_spill] sm:$0xff] %v6128_v36  ;;  %3986 = vmatpush.bf16.msra.mxu0 %v5059_v4  ;;  %v5250_v36 = vld [vmem:[#allocation2 + $0xa8] sm:$0xff]   ;;  %v5058_v28 = vld [vmem:[%s6995_s3 + $0x1f0] sm:$0xff]  ;;  %v1260_v3 = vunpack.c.l.b16 %v1116_v8  ;;  %v6160_v2 = vpack.c.b16 %v3359_v43, %v3359_v43  ;;  %2994 = vmatpush.bf16.msra.mxu2 %v5039_v17  ;;  %v2381_v17 = vrot.slane %v2379_v50, 1 }
 0x188   : > { %2880 = vmatmul.bf16.gmra.mxu0 %v6114_v35  ;;  %v1446_v45 = vsel %vm1278_vm0, %v1441_v47, %v1445_v38  ;;  %v5057_v4 = vld [vmem:[%s6995_s3 + $0x1e8] sm:$0xff]  ;;  %v2372_v47 = vshrl.u32 %v5930_v55, 16  ;;  %v1450_v38 = vshll.u32 %v5250_v36, 16  ;;  %v5051_v55 = vld [vmem:[%s6995_s3 + $0x1b8] sm:$0xff] }
 0x189   : > { %v6172_v43 = vpack.c.b16 %v1260_v3, %v1260_v3  ;;  %3897 = vmatpush.bf16.msra.mxu3 %v5051_v55  ;;  %v5037_v50 = vld [vmem:[%s6995_s3 + $0x148] sm:$0xff] }
 0x18b   : > { %v1828_v32 = vpop.f32.mrf.mxu1  ;;  %3987 = vmatpush.bf16.msra.mxu0 %v5058_v28  ;;  %7057 = vst [vmem:[#allocation37_spill] sm:$0xff] %v6172_v43  ;;  %v3662_v28 = vrot.slane %v6160_v2, 1 }
 0x18c   : > { %v1912_v48 = vpop.f32.mrf.mxu2 }
 0x18d   : > { %v6151_v33 = vadd.f32 %v1912_v48, %v1823_v41  ;;  %v2376_v41 = vrot.slane %v2374_v62, 1  ;;  %v5450_v48 = vor.u32 %v5449_v5, %v5448_v27  ;;  %v5038_v5 = vld [vmem:[%s6995_s3 + $0x150] sm:$0xff]  ;;  %v2130_v27 = vld [vmem:[#allocation2 + $0x68] sm:$0x1] }
 0x18e   : > { %2995 = vmatpush.bf16.msra.mxu2 %v5038_v5 }
 0x18f   : > { %7055 = vst [vmem:[#allocation35_spill] sm:$0xff] %v6151_v33  ;;  %v6168_v33 = vpop.f32.mrf.mxu0  ;;  %v3661_v62 = vrot.slane %v5450_v48, 1  ;;  %v2377_v56 = vor.u32 %v2376_v41, %v2372_v47  ;;  %3988 = vmatpush.bf16.msra.mxu0 %v5057_v4  ;;  %v6186_v48 = vld [vmem:[#allocation2 + $0xb4] sm:$0xff]   ;;  %v1448_v41 = vshrl.u32 %v5250_v36, 16  ;;  %v1452_v4 = vrot.slane %v1450_v38, 1 }
 0x190   : > { %7056 = vst [vmem:[#allocation36_spill] sm:$0xff] %v6168_v33  ;;  %v1455_v47 = vshll.u32 %v6172_v43, 16  ;;  %v5055_v38 = vld [vmem:[%s6995_s3 + $0x1d8] sm:$0xff] }
 0x191   : > { %1954 = vmatmul.bf16.gmra.mxu2 %v1446_v45  ;;  %v6184_v21 = vsel %vm1535_vm9, %v3661_v62, %v3662_v28  ;;  %v2382_v33 = vsel %vm1278_vm0, %v2377_v56, %v2381_v17  ;;  %v2274_v62 = vunpack.c.l.b16 %v2130_v27  ;;  %v6201_v28 = vor.u32 %v1452_v4, %v1448_v41  ;;  %v5036_v27 = vld [vmem:[%s6995_s3 + $0x140] sm:$0xff]  ;;  %v5067_v17 = vld [vmem:[%s6995_s3 + $0x238] sm:$0xff] }
 0x192   : > { %7059 = vst [vmem:[#allocation39_spill] sm:$0xff] %v6184_v21  ;;  %v1457_v21 = vrot.slane %v1455_v47, 1  ;;  %2996 = vmatpush.bf16.msra.mxu2 %v5037_v50  ;;  %4075 = vmatpush.bf16.msra.mxu1 %v5067_v17  ;;  %v5054_v47 = vld [vmem:[%s6995_s3 + $0x1d0] sm:$0xff] }
 0x193   : > { %v1831_v3 = vpop.f32.mrf.mxu1 }
 0x194   : > { %v1915_v8 = vpop.f32.mrf.mxu2  ;;  %v1458_v4 = vsel %vm1278_vm0, %v6201_v28, %v1457_v21  ;;  %v5053_v21 = vld [vmem:[%s6995_s3 + $0x1c8] sm:$0xff] }
 0x195   : > { %v6175_v45 = vadd.f32 %v1915_v8, %v1826_v63  ;;  %v6188_v63 = vld [vmem:[#allocation2 + $0xb4] sm:$0xf0]  ;;  %v5056_v8 = vld [vmem:[%s6995_s3 + $0x1e0] sm:$0xff] }
 0x196   : > { %1870 = vmatmul.bf16.gmra.mxu3 %v5250_v36  ;;  %7060 = vst [vmem:[#allocation40_spill] sm:$0xff] %v6188_v63  ;;  %2939 = vmatmul.bf16.gmra.mxu1 %v2382_v33  ;;  %v1117_v33 = vld [vmem:[#allocation2 + $0xbc] sm:$0x1] }
 0x197   : > { %7058 = vst [vmem:[#allocation38_spill] sm:$0xff] %v6175_v45  ;;  %3989 = vmatpush.bf16.msra.mxu0 %v5056_v8  ;;  %v6203_v5 = vpop.f32.mrf.mxu0  ;;  %2997 = vmatpush.bf16.msra.mxu2 %v5036_v27  ;;  %v6221_v8 = vld [vmem:[#allocation2 + $0xb4] sm:$0xff]   ;;  %v1462_v27 = vshll.u32 %v6186_v48, 16 }
 0x198   : > { %2885 = vmatmul.bf16.gmra.mxu0 %v5250_v36  ;;  %7061 = vst [vmem:[#allocation41_spill] sm:$0xff] %v6203_v5  ;;  %v6207_v36 = vpack.c.b16 %v2274_v62, %v2274_v62  ;;  %v6223_v62 = vld [vmem:[#allocation2 + $0xb4] sm:$0xf0] }
 0x199   : > { %7063 = vst [vmem:[#allocation43_spill] sm:$0xff] %v6223_v62  ;;  %v2131_v62 = vld [vmem:[#allocation2 + $0x74] sm:$0x1]  ;;  %v1464_v45 = vrot.slane %v1462_v27, 1 }
 0x19a   : > { %v2391_v50 = vshll.u32 %v6207_v36, 16 }
 0x19b   : > { %v1833_v41 = vpop.f32.mrf.mxu1  ;;  %3990 = vmatpush.bf16.msra.mxu0 %v5055_v38  ;;  %v5251_v38 = vld [vmem:[#allocation2] sm:$0xf0] }
 0x19c   : > { %v1917_v55 = vpop.f32.mrf.mxu2 }
 0x19d   : > { %v6205_v56 = vadd.f32 %v1917_v55, %v1828_v32  ;;  %v1261_v32 = vunpack.c.l.b16 %v1117_v33  ;;  %v5252_v55 = vld [vmem:[#allocation2] sm:$0xe] }
 0x19e   : > { %v5253_v5 = vor.u32 %v5252_v55, %v5251_v38  ;;  %v2275_v38 = vunpack.c.l.b16 %v2131_v62 }
 0x19f   : > { %7062 = vst [vmem:[#allocation42_spill] sm:$0xff] %v6205_v56  ;;  %3991 = vmatpush.bf16.msra.mxu0 %v5054_v47  ;;  %v6230_v17 = vpack.c.b16 %v1261_v32, %v1261_v32  ;;  %v6234_v56 = vpop.f32.mrf.mxu0  ;;  %v1460_v47 = vshrl.u32 %v6186_v48, 16 }
 0x1a0   : > { %7066 = vst [vmem:[#allocation46_spill] sm:$0xff] %v6234_v56  ;;  %v1536_v32 = vrot.slane %v5253_v5, 1  ;;  %v6249_v56 = vpack.c.b16 %v2275_v38, %v2275_v38  ;;  %v5451_v5 = vld [vmem:[#allocation2 + $0x84] sm:$0xf0] }
 0x1a1   : > { %1959 = vmatmul.bf16.gmra.mxu2 %v1458_v4  ;;  %7064 = vst [vmem:[#allocation44_spill] sm:$0xff] %v6230_v17  ;;  %v2393_v4 = vrot.slane %v2391_v50, 1  ;;  %v1467_v60 = vshll.u32 %v6230_v17, 16  ;;  %v1537_v50 = vrot.slane %v5634_v49, 1  ;;  %v3217_v49 = vld [vmem:[#allocation2 + $0x8c] sm:$0x1] }
 0x1a3   : > { %v1836_v43 = vpop.f32.mrf.mxu1  ;;  %3992 = vmatpush.bf16.msra.mxu0 %v5053_v21  ;;  %v1469_v21 = vrot.slane %v1467_v60, 1  ;;  %v1538_v17 = vsel %vm1535_vm9, %v1536_v32, %v1537_v50  ;;  %v2396_v60 = vshrl.u32 %v5979_v25, 16 }
 0x1a4   : > { %v1920_v33 = vpop.f32.mrf.mxu2 }
 0x1a5   : > { %v6232_v63 = vadd.f32 %v1920_v33, %v1831_v3  ;;  %v2394_v3 = vsel %vm1278_vm0, %v5975_v19, %v2393_v4  ;;  %v2398_v33 = vshll.u32 %v5979_v25, 16  ;;  %v6251_v19 = vld [vmem:[#allocation2 + $0x84] sm:$0xff]   ;;  %v3361_v4 = vunpack.c.l.b16 %v3217_v49 }
 0x1a6   : > { %1875 = vmatmul.bf16.gmra.mxu3 %v6186_v48  ;;  %2944 = vmatmul.bf16.gmra.mxu1 %v2394_v3  ;;  %v1465_v48 = vor.u32 %v1464_v45, %v1460_v47  ;;  %7068 = vst [vmem:[#allocation48_spill] sm:$0xff] %v6251_v19 }
 0x1a7   : > { %7065 = vst [vmem:[#allocation45_spill] sm:$0xff] %v6232_v63  ;;  %3993 = vmatpush.bf16.msra.mxu0 %v5052_v14  ;;  %v5452_v63 = vld [vmem:[#allocation2 + $0x84] sm:$0xe]  ;;  %v6253_v3 = vpop.f32.mrf.mxu0  ;;  %v2400_v45 = vrot.slane %v2398_v33, 1  ;;  %v6258_v47 = vpack.c.b16 %v3361_v4, %v3361_v4 }
 0x1a8   : > { %2890 = vmatmul.bf16.gmra.mxu0 %v6221_v8  ;;  %7069 = vst [vmem:[#allocation49_spill] sm:$0xff] %v6253_v3  ;;  %v1470_v14 = vsel %vm1278_vm0, %v1465_v48, %v1469_v21  ;;  %v5453_v32 = vor.u32 %v5452_v63, %v5451_v5  ;;  %v2132_v48 = vld [vmem:[#allocation2 + $0x80] sm:$0x1] }
 0x1a9   : > { %7070 = vst [vmem:[#allocation50_spill] sm:$0xff] %v6258_v47  ;;  %v2401_v49 = vor.u32 %v2400_v45, %v2396_v60  ;;  %v3208_v21 = vld [vmem:[#allocation2 + $0x20] sm:$0x1]  ;;  %v3668_v25 = vrot.slane %v6258_v47, 1  ;;  %v2276_v5 = vunpack.c.l.b16 %v2132_v48  ;;  %v5255_v47 = vld [vmem:[#allocation2 + $0x18] sm:$0xe] }
 0x1aa   : > { %v6268_v4 = vld [vmem:[#allocation2 + $0xc0] sm:$0xff]  }
 0x1ab   : > { %v1838_v62 = vpop.f32.mrf.mxu1 }
 0x1ac   : > { %v1922_v55 = vpop.f32.mrf.mxu2 }
 0x1ad   : > { %v6246_v27 = vadd.f32 %v1922_v55, %v1833_v41  ;;  %v2403_v41 = vshll.u32 %v6249_v56, 16  ;;  %v3667_v55 = vrot.slane %v5453_v32, 1  ;;  %v5133_v32 = vld [vmem:[#allocation2 + $0x18] sm:$0xff]  }
 0x1af   : > { %7067 = vst [vmem:[#allocation47_spill] sm:$0xff] %v6246_v27  ;;  %v2405_v19 = vrot.slane %v2403_v41, 1  ;;  %v6271_v63 = vsel %vm1535_vm9, %v3667_v55, %v3668_v25  ;;  %v6274_v60 = vpop.f32.mrf.mxu0 }
 0x1b0   : > { %7072 = vst [vmem:[#allocation52_spill] sm:$0xff] %v6271_v63  ;;  %v3385_v63 = vshrl.u32 %v5133_v32, 16 }
 0x1b1   : > { %1964 = vmatmul.bf16.gmra.mxu2 %v1470_v14  ;;  %v3352_v14 = vunpack.c.l.b16 %v3208_v21  ;;  %7073 = vst [vmem:[#allocation53_spill] sm:$0xff] %v6274_v60  ;;  %v5254_v60 = vld [vmem:[#allocation2 + $0x18] sm:$0xf0] }
 0x1b3   : > { %v6266_v33 = vpop.f32.mrf.mxu1 }
 0x1b4   : > { %v1925_v38 = vpop.f32.mrf.mxu2 }
 0x1b5   : > { %v6260_v27 = vadd.f32 %v1925_v38, %v1836_v43  ;;  %v2406_v43 = vsel %vm1278_vm0, %v2401_v49, %v2405_v19  ;;  %v5066_v19 = vld [vmem:[%s6995_s3 + $0x230] sm:$0xff]  ;;  %v3387_v49 = vshll.u32 %v5133_v32, 16 }
 0x1b6   : > { %1978 = vmatmul.bf16.vlgmr.msrb.gmra.mxu3 %v1538_v17  ;;  %v5050_v17 = vld [vmem:[%s6995_s3 + $0x1b0] sm:$0xff]  ;;  %2949 = vmatmul.bf16.gmra.mxu1 %v2406_v43 }
 0x1b7   : > { %7071 = vst [vmem:[#allocation51_spill] sm:$0xff] %v6260_v27  ;;  %3898 = vmatpush.bf16.msra.mxu3 %v5050_v17  ;;  %v6279_v27 = vpack.c.b16 %v2276_v5, %v2276_v5  ;;  %v6281_v17 = vpack.c.b16 %v3352_v14, %v3352_v14  ;;  %4076 = vmatpush.bf16.msra.mxu1 %v5066_v19  ;;  %v3389_v25 = vrot.slane %v3387_v49, 1  ;;  %v6292_v43 = vpop.f32.mrf.mxu0  ;;  %v2133_v19 = vld [vmem:[#allocation2 + $0x8c] sm:$0x1] }
 0x1b8   : > { %2895 = vmatmul.bf16.gmra.mxu0 %v6268_v4  ;;  %7077 = vst [vmem:[#allocation57_spill] sm:$0xff] %v6292_v43  ;;  %v5256_v43 = vor.u32 %v5255_v47, %v5254_v60  ;;  %v2277_v57 = vunpack.c.l.b16 %v2133_v19  ;;  %v6309_v47 = vld [vmem:[#allocation2 + $0x9c] sm:$0xff]  }
 0x1b9   : > { %v1841_v50 = vpop.f32.mrf.mxu3  ;;  %7075 = vst [vmem:[#allocation55_spill] sm:$0xff] %v6279_v27  ;;  %v2415_v48 = vshll.u32 %v6279_v27, 16 }
 0x1ba   : > { %7080 = vst [vmem:[#allocation60_spill] sm:$0xff] %v6309_v47 }
 0x1bb   : > { %v6286_v55 = vpop.f32.mrf.mxu1 }
 0x1bc   : > { %v1927_v41 = vpop.f32.mrf.mxu2  ;;  %7076 = vst [vmem:[#allocation56_spill] sm:$0xff] %v6286_v55  ;;  %v5284_v55 = vld [vmem:[#allocation2 + $0x18] sm:$0xe] }
 0x1bd   : > { %v6277_v38 = vadd.f32 %v1927_v41, %v1838_v62  ;;  %v3392_v62 = vshll.u32 %v6281_v17, 16  ;;  %v2417_v41 = vrot.slane %v2415_v48, 1  ;;  %v1543_v48 = vrot.slane %v5757_v20, 1 }
 0x1bf   : > { %7074 = vst [vmem:[#allocation54_spill] sm:$0xff] %v6277_v38  ;;  %v3394_v38 = vrot.slane %v3392_v62, 1  ;;  %v2418_v27 = vsel %vm1278_vm0, %v6037_v16, %v2417_v41  ;;  %v1542_v16 = vrot.slane %v5256_v43, 1  ;;  %v6311_v60 = vpop.f32.mrf.mxu0  ;;  %v3219_v41 = vld [vmem:[#allocation2 + $0xa4] sm:$0x1] }
 0x1c0   : > { %7081 = vst [vmem:[#allocation61_spill] sm:$0xff] %v6311_v60  ;;  %v3363_v19 = vunpack.c.l.b16 %v3219_v41 }
 0x1c1   : > { %v1843_v45 = vpop.f32.mrf.mxu3  ;;  %2998 = vmatmul.bf16.vlgmr.msra.gmra.mxu2 %v5779_v6  ;;  %v5283_v6 = vld [vmem:[#allocation2 + $0x18] sm:$0xf0] }
 0x1c3   : > { %v6296_v3 = vpop.f32.mrf.mxu1 }
 0x1c4   : > { %v1930_v5 = vpop.f32.mrf.mxu2 }
 0x1c5   : > { %v6294_v14 = vadd.f32 %v1930_v5, %v1841_v50  ;;  %v5285_v50 = vor.u32 %v5284_v55, %v5283_v6  ;;  %v2559_v5 = vrot.slane %v5971_v15, 1  ;;  %v1544_v15 = vsel %vm1535_vm9, %v1542_v16, %v1543_v48  ;;  %v5403_v16 = vld [vmem:[#allocation2 + $0x24] sm:$0xe] }
 0x1c6   : > { %1983 = vmatmul.bf16.gmra.mxu3 %v5820_v44  ;;  %v3390_v44 = vor.u32 %v3389_v25, %v3385_v63  ;;  %2954 = vmatmul.bf16.gmra.mxu1 %v2418_v27  ;;  %v3399_v63 = vshll.u32 %v5999_v30, 16  ;;  %v2422_v25 = vshll.u32 %v6057_v23, 16  ;;  %v5454_v27 = vld [vmem:[#allocation2 + $0x9c] sm:$0xf0]  ;;  %v3404_v48 = vshll.u32 %v6005_v40, 16 }
 0x1c7   : > { %7078 = vst [vmem:[#allocation58_spill] sm:$0xff] %v6294_v14  ;;  %v2558_v55 = vrot.slane %v5285_v50, 1  ;;  %v3397_v50 = vshrl.u32 %v5999_v30, 16  ;;  %v3210_v30 = vld [vmem:[#allocation2 + $0x38] sm:$0x1] }
 0x1c8   : > { %v3395_v49 = vsel %vm1278_vm0, %v3390_v44, %v3394_v38  ;;  %v6307_v38 = vpack.c.b16 %v2277_v57, %v2277_v57  ;;  %v5455_v44 = vld [vmem:[#allocation2 + $0x9c] sm:$0xe]  ;;  %v2420_v57 = vshrl.u32 %v6057_v23, 16  ;;  %v2424_v43 = vrot.slane %v2422_v25, 1  ;;  %v5049_v25 = vld [vmem:[%s6995_s3 + $0x1a8] sm:$0xff] }
 0x1c9   : > { %v1846_v21 = vpop.f32.mrf.mxu3  ;;  %3994 = vmatmul.bf16.vlgmr.msra.gmra.mxu0 %v3395_v49  ;;  %v2560_v6 = vsel %vm1535_vm9, %v2558_v55, %v2559_v5  ;;  %v5456_v60 = vor.u32 %v5455_v44, %v5454_v27  ;;  %v3406_v44 = vrot.slane %v3404_v48, 1  ;;  %3899 = vmatpush.bf16.msra.mxu3 %v5049_v25 }
 0x1ca   : > { %v2427_v49 = vshll.u32 %v6307_v38, 16 }
 0x1cb   : > { %v6313_v20 = vpop.f32.mrf.mxu1  ;;  %v3673_v55 = vrot.slane %v5456_v60, 1 }
 0x1cc   : > { %v1932_v62 = vpop.f32.mrf.mxu2  ;;  %v2429_v23 = vrot.slane %v2427_v49, 1 }
 0x1cd   : > { %v6305_v14 = vadd.f32 %v1932_v62, %v1843_v45  ;;  %v3401_v45 = vrot.slane %v3399_v63, 1  ;;  %v5400_v62 = vld [vmem:[#allocation2 + $0x24] sm:$0xe] }
 0x1ce   : > { %v5401_v40 = vor.u32 %v5400_v62, %v5783_v11  ;;  %v1546_v11 = vrot.slane %v5797_v37, 1 }
 0x1cf   : > { %7079 = vst [vmem:[#allocation59_spill] sm:$0xff] %v6305_v14  ;;  %v6319_v14 = vpack.c.b16 %v3363_v19, %v3363_v19  ;;  %v3402_v5 = vor.u32 %v3401_v45, %v3397_v50  ;;  %v5404_v45 = vor.u32 %v5403_v16, %v5787_v13  ;;  %v3354_v50 = vunpack.c.l.b16 %v3210_v30  ;;  %v5065_v30 = vld [vmem:[%s6995_s3 + $0x228] sm:$0xff] }
 0x1d0   : > { %v1545_v48 = vrot.slane %v5401_v40, 1  ;;  %4077 = vmatpush.bf16.msra.mxu1 %v5065_v30  ;;  %v5258_v30 = vld [vmem:[#allocation2 + $0x30] sm:$0xe] }
 0x1d1   : > { %v1848_v32 = vpop.f32.mrf.mxu3  ;;  %3003 = vmatmul.bf16.gmra.mxu2 %v2560_v6  ;;  %v3674_v19 = vrot.slane %v6319_v14, 1  ;;  %v2134_v6 = vld [vmem:[#allocation2 + $0x98] sm:$0x1]  ;;  %v2561_v25 = vrot.slane %v5404_v45, 1  ;;  %v6346_v16 = vpack.c.b16 %v3354_v50, %v3354_v50 }
 0x1d2   : > { %v2278_v49 = vunpack.c.l.b16 %v2134_v6 }
 0x1d3   : > { %v6329_v27 = vpop.f32.mrf.mxu1  ;;  %v6333_v60 = vsel %vm1535_vm9, %v3673_v55, %v3674_v19  ;;  %v2562_v55 = vrot.slane %v6007_v59, 1  ;;  %v5307_v19 = vld [vmem:[#allocation2 + $0x30] sm:$0xff]  }
 0x1d4   : > { %v1935_v41 = vpop.f32.mrf.mxu2  ;;  %7083 = vst [vmem:[#allocation63_spill] sm:$0xff] %v6333_v60  ;;  %v6344_v13 = vpack.c.b16 %v2278_v49, %v2278_v49  ;;  %v3411_v37 = vshll.u32 %v5307_v19, 16  ;;  %v3409_v49 = vshrl.u32 %v5307_v19, 16 }
 0x1d5   : > { %v6323_v63 = vadd.f32 %v1935_v41, %v1846_v21  ;;  %v6335_v21 = vpop.f32.mrf.mxu0 }
 0x1d6   : > { %1988 = vmatmul.bf16.gmra.mxu3 %v1544_v15  ;;  %v2425_v15 = vor.u32 %v2424_v43, %v2420_v57  ;;  %v3407_v43 = vsel %vm1278_vm0, %v3402_v5, %v3406_v44  ;;  %v2439_v59 = vshll.u32 %v6344_v13, 16  ;;  %v3413_v40 = vrot.slane %v3411_v37, 1 }
 0x1d7   : > { %7082 = vst [vmem:[#allocation62_spill] sm:$0xff] %v6323_v63 }
 0x1d8   : > { %v2430_v57 = vsel %vm1278_vm0, %v2425_v15, %v2429_v23  ;;  %v1547_v15 = vsel %vm1535_vm9, %v1545_v48, %v1546_v11  ;;  %v2563_v23 = vsel %vm1535_vm9, %v2561_v25, %v2562_v55  ;;  %v5257_v48 = vld [vmem:[#allocation2 + $0x30] sm:$0xf0]  ;;  %v2135_v11 = vld [vmem:[#allocation2 + $0xa4] sm:$0x1]  ;;  %v3414_v25 = vor.u32 %v3413_v40, %v3409_v49 }
 0x1d9   : > { %v1851_v47 = vpop.f32.mrf.mxu3  ;;  %2959 = vmatmul.bf16.gmra.mxu1 %v2430_v57  ;;  %3999 = vmatmul.bf16.gmra.mxu0 %v3407_v43  ;;  %v2441_v43 = vrot.slane %v2439_v59, 1  ;;  %v5286_v55 = vld [vmem:[#allocation2 + $0x30] sm:$0xf0]  ;;  %v5259_v37 = vor.u32 %v5258_v30, %v5257_v48  ;;  %v1549_v59 = vrot.slane %v5823_v53, 1  ;;  %v2565_v40 = vrot.slane %v6043_v61, 1 }
 0x1da   : > { %v3423_v49 = vshll.u32 %v6033_v22, 16  ;;  %v5458_v61 = vld [vmem:[#allocation2 + $0xb4] sm:$0xe] }
 0x1db   : > { %v6351_v5 = vpop.f32.mrf.mxu1 }
 0x1dc   : > { %v1937_v62 = vpop.f32.mrf.mxu2 }
 0x1dd   : > { %v6342_v60 = vadd.f32 %v1937_v62, %v1848_v32  ;;  %v3416_v32 = vshll.u32 %v6346_v16, 16  ;;  %v6357_v6 = vpop.f32.mrf.mxu0 }
 0x1de   : > { %7085 = vst [vmem:[#allocation65_spill] sm:$0xff] %v6357_v6  ;;  %v2279_v6 = vunpack.c.l.b16 %v2135_v11  ;;  %v6376_v11 = vld [vmem:[#allocation2 + $0xb4] sm:$0xff]  }
 0x1df   : > { %7084 = vst [vmem:[#allocation64_spill] sm:$0xff] %v6342_v60  ;;  %v3418_v50 = vrot.slane %v3416_v32, 1  ;;  %v5287_v60 = vld [vmem:[#allocation2 + $0x30] sm:$0xe] }
 0x1e0   : > { %v6374_v48 = vpack.c.b16 %v2279_v6, %v2279_v6  ;;  %7089 = vst [vmem:[#allocation69_spill] sm:$0xff] %v6376_v11 }
 0x1e1   : > { %v1853_v41 = vpop.f32.mrf.mxu3  ;;  %3008 = vmatmul.bf16.gmra.mxu2 %v2563_v23  ;;  %v3419_v23 = vsel %vm1278_vm0, %v3414_v25, %v3418_v50  ;;  %v1548_v50 = vrot.slane %v5259_v37, 1 }
 0x1e2   : > { %v2451_v37 = vshll.u32 %v6374_v48, 16 }
 0x1e3   : > { %v6361_v62 = vpop.f32.mrf.mxu1  ;;  %v1550_v30 = vsel %vm1535_vm9, %v1548_v50, %v1549_v59  ;;  %v3428_v59 = vshll.u32 %v6045_v54, 16 }
 0x1e4   : > { %v1940_v45 = vpop.f32.mrf.mxu2 }
 0x1e5   : > { %v6359_v57 = vadd.f32 %v1940_v45, %v1851_v47  ;;  %v5288_v47 = vor.u32 %v5287_v60, %v5286_v55  ;;  %v6367_v32 = vpop.f32.mrf.mxu0  ;;  %v5457_v60 = vld [vmem:[#allocation2 + $0xb4] sm:$0xf0]  ;;  %v3221_v55 = vld [vmem:[#allocation2 + $0xbc] sm:$0x1] }
 0x1e6   : > { %1993 = vmatmul.bf16.gmra.mxu3 %v1547_v15  ;;  %v2442_v15 = vsel %vm1278_vm0, %v6102_v10, %v2441_v43  ;;  %7087 = vst [vmem:[#allocation67_spill] sm:$0xff] %v6367_v32  ;;  %v2446_v10 = vshll.u32 %v6114_v35, 16  ;;  %v5459_v32 = vor.u32 %v5458_v61, %v5457_v60  ;;  %v3212_v60 = vld [vmem:[#allocation2 + $0x50] sm:$0x1]  ;;  %v3430_v61 = vrot.slane %v3428_v59, 1 }
 0x1e7   : > { %7086 = vst [vmem:[#allocation66_spill] sm:$0xff] %v6359_v57  ;;  %v2564_v25 = vrot.slane %v5288_v47, 1  ;;  %v3425_v57 = vrot.slane %v3423_v49, 1  ;;  %v3421_v47 = vshrl.u32 %v6033_v22, 16  ;;  %v1552_v59 = vrot.slane %v5864_v7, 1 }
 0x1e8   : > { %v2448_v6 = vrot.slane %v2446_v10, 1 }
 0x1e9   : > { %v1856_v44 = vpop.f32.mrf.mxu3  ;;  %2964 = vmatmul.bf16.gmra.mxu1 %v2442_v15  ;;  %4004 = vmatmul.bf16.gmra.mxu0 %v3419_v23  ;;  %v3365_v15 = vunpack.c.l.b16 %v3221_v55  ;;  %v2566_v23 = vsel %vm1535_vm9, %v2564_v25, %v2565_v40  ;;  %v3426_v55 = vor.u32 %v3425_v57, %v3421_v47  ;;  %v3679_v40 = vrot.slane %v5459_v32, 1 }
 0x1eb   : > { %v6378_v53 = vpop.f32.mrf.mxu1 }
 0x1ec   : > { %v1942_v45 = vpop.f32.mrf.mxu2 }
 0x1ed   : > { %v6372_v43 = vadd.f32 %v1942_v45, %v1853_v41  ;;  %v2444_v41 = vshrl.u32 %v6114_v35, 16  ;;  %v5406_v45 = vld [vmem:[#allocation2 + $0x3c] sm:$0xe]  ;;  %v5048_v35 = vld [vmem:[%s6995_s3 + $0x1a0] sm:$0xff] }
 0x1ee   : > { %v5407_v54 = vor.u32 %v5406_v45, %v5848_v46  ;;  %3900 = vmatpush.bf16.msra.mxu3 %v5048_v35  ;;  %v5308_v46 = vld [vmem:[#allocation2 + $0x48] sm:$0xff]  }
 0x1ef   : > { %7088 = vst [vmem:[#allocation68_spill] sm:$0xff] %v6372_v43  ;;  %v6384_v43 = vpack.c.b16 %v3365_v15, %v3365_v15  ;;  %v2449_v49 = vor.u32 %v2448_v6, %v2444_v41  ;;  %v6394_v15 = vpop.f32.mrf.mxu0  ;;  %v3431_v41 = vsel %vm1278_vm0, %v3426_v55, %v3430_v61  ;;  %v5064_v55 = vld [vmem:[%s6995_s3 + $0x220] sm:$0xff] }
 0x1f0   : > { %4078 = vmatpush.bf16.msra.mxu1 %v5064_v55  ;;  %v5289_v55 = vld [vmem:[#allocation2 + $0x48] sm:$0xf0] }
 0x1f1   : > { %v1858_v19 = vpop.f32.mrf.mxu3  ;;  %3013 = vmatmul.bf16.gmra.mxu2 %v2566_v23  ;;  %v3680_v10 = vrot.slane %v6384_v43, 1  ;;  %v2136_v23 = vld [vmem:[#allocation2 + $0xb0] sm:$0x1] }
 0x1f2   : > { %v2280_v6 = vunpack.c.l.b16 %v2136_v23 }
 0x1f3   : > { %v6398_v57 = vsel %vm1535_vm9, %v3679_v40, %v3680_v10 }
 0x1f4   : > { %v1945_v50 = vpop.f32.mrf.mxu2  ;;  %7091 = vst [vmem:[#allocation71_spill] sm:$0xff] %v6398_v57  ;;  %v6407_v40 = vpack.c.b16 %v2280_v6, %v2280_v6 }
 0x1f5   : > { %v6388_v25 = vadd.f32 %v1945_v50, %v1856_v44  ;;  %v6400_v44 = vpop.f32.mrf.mxu1  ;;  %v1551_v50 = vrot.slane %v5407_v54, 1  ;;  %v3433_v54 = vshrl.u32 %v5308_v46, 16 }
 0x1f6   : > { %1998 = vmatmul.bf16.gmra.mxu3 %v1550_v30  ;;  %v2453_v30 = vrot.slane %v2451_v37, 1  ;;  %v3356_v37 = vunpack.c.l.b16 %v3212_v60  ;;  %v2463_v7 = vshll.u32 %v6407_v40, 16 }
 0x1f7   : > { %7090 = vst [vmem:[#allocation70_spill] sm:$0xff] %v6388_v25  ;;  %v6415_v10 = vpop.f32.mrf.mxu0 }
 0x1f8   : > { %v2454_v32 = vsel %vm1278_vm0, %v2449_v49, %v2453_v30  ;;  %v6409_v35 = vpack.c.b16 %v3356_v37, %v3356_v37  ;;  %v1553_v49 = vsel %vm1535_vm9, %v1551_v50, %v1552_v59  ;;  %v3435_v30 = vshll.u32 %v5308_v46, 16  ;;  %7093 = vst [vmem:[#allocation73_spill] sm:$0xff] %v6415_v10  ;;  %v5260_v37 = vld [vmem:[#allocation2 + $0x48] sm:$0xf0]  ;;  %v2137_v50 = vld [vmem:[#allocation2 + $0xbc] sm:$0x1] }
 0x1f9   : > { %v1861_v63 = vpop.f32.mrf.mxu3  ;;  %2969 = vmatmul.bf16.gmra.mxu1 %v2454_v32  ;;  %4009 = vmatmul.bf16.gmra.mxu0 %v3431_v41  ;;  %v2465_v41 = vrot.slane %v2463_v7, 1  ;;  %v5290_v10 = vld [vmem:[#allocation2 + $0x48] sm:$0xe]  ;;  %v2281_v22 = vunpack.c.l.b16 %v2137_v50  ;;  %v5063_v46 = vld [vmem:[%s6995_s3 + $0x218] sm:$0xff]  ;;  %v2468_v50 = vshrl.u32 %v6221_v8, 16 }
 0x1fa   : > { %v3437_v60 = vrot.slane %v3435_v30, 1  ;;  %4079 = vmatpush.bf16.msra.mxu1 %v5063_v46 }
 0x1fb   : > { %v2466_v57 = vsel %vm1278_vm0, %v6201_v28, %v2465_v41  ;;  %v2571_v28 = vrot.slane %v6106_v12, 1  ;;  %v2470_v41 = vshll.u32 %v6221_v8, 16  ;;  %v5062_v12 = vld [vmem:[%s6995_s3 + $0x210] sm:$0xff] }
 0x1fc   : > { %v1947_v25 = vpop.f32.mrf.mxu2  ;;  %v3438_v59 = vor.u32 %v3437_v60, %v3433_v54 }
 0x1fd   : > { %v6405_v45 = vadd.f32 %v1947_v25, %v1858_v19  ;;  %v3440_v19 = vshll.u32 %v6409_v35, 16  ;;  %v6420_v25 = vpop.f32.mrf.mxu1 }
 0x1fe   : > { %4080 = vmatpush.bf16.msra.mxu1 %v5062_v12 }
 0x1ff   : > { %7092 = vst [vmem:[#allocation72_spill] sm:$0xff] %v6405_v45  ;;  %v3442_v6 = vrot.slane %v3440_v19, 1  ;;  %v6427_v30 = vpop.f32.mrf.mxu0  ;;  %v1555_v19 = vrot.slane %v5903_v34, 1 }
 0x201   : > { %v1863_v47 = vpop.f32.mrf.mxu3  ;;  %3018 = vmatmul.bf16.gmra.mxu2 %v5992_v51  ;;  %v3443_v45 = vsel %vm1278_vm0, %v3438_v59, %v3442_v6  ;;  %v2472_v59 = vrot.slane %v2470_v41, 1 }
 0x203   : > { %v2473_v8 = vor.u32 %v2472_v59, %v2468_v50 }
 0x204   : > { %v1950_v61 = vpop.f32.mrf.mxu2 }
 0x205   : > { %v6422_v32 = vadd.f32 %v1950_v61, %v1861_v63  ;;  %v5291_v63 = vor.u32 %v5290_v10, %v5289_v55  ;;  %v6433_v60 = vpop.f32.mrf.mxu1  ;;  %v5061_v55 = vld [vmem:[%s6995_s3 + $0x208] sm:$0xff] }
 0x206   : > { %2003 = vmatmul.bf16.gmra.mxu3 %v1553_v49  ;;  %v5261_v49 = vld [vmem:[#allocation2 + $0x48] sm:$0xe]  ;;  %4081 = vmatpush.bf16.msra.mxu1 %v5061_v55 }
 0x207   : > { %v5262_v51 = vor.u32 %v5261_v49, %v5260_v37  ;;  %v2570_v10 = vrot.slane %v5291_v63, 1  ;;  %v3452_v63 = vshll.u32 %v6108_v0, 16  ;;  %v6454_v46 = vpop.f32.mrf.mxu0  ;;  %v5060_v0 = vld [vmem:[%s6995_s3 + $0x200] sm:$0xff] }
 0x209   : > { %v1866_v23 = vpop.f32.mrf.mxu3  ;;  %2974 = vmatmul.bf16.gmra.mxu1 %v2466_v57  ;;  %4014 = vmatmul.bf16.gmra.mxu0 %v3443_v45  ;;  %v1554_v54 = vrot.slane %v5262_v51, 1  ;;  %v6439_v57 = vpack.c.b16 %v2281_v22, %v2281_v22  ;;  %v3447_v45 = vshll.u32 %v6099_v24, 16  ;;  %v2572_v34 = vsel %vm1535_vm9, %v2570_v10, %v2571_v28 }
 0x20a   : > { %v3445_v51 = vshrl.u32 %v6099_v24, 16  ;;  %4082 = vmatpush.bf16.msra.mxu1 %v5060_v0 }
 0x20b   : > { %v1556_v37 = vsel %vm1535_vm9, %v1554_v54, %v1555_v19  ;;  %v3449_v22 = vrot.slane %v3447_v45, 1  ;;  %v5047_v45 = vld [vmem:[%s6995_s3 + $0x198] sm:$0xff] }
 0x20c   : > { %v1952_v61 = vpop.f32.mrf.mxu2  ;;  %3901 = vmatpush.bf16.msra.mxu3 %v5047_v45 }
 0x20d   : > { %v6437_v6 = vadd.f32 %v1952_v61, %v1863_v47  ;;  %v2475_v47 = vshll.u32 %v6439_v57, 16  ;;  %v2138_v61 = vld [vmem:[#allocation2 + $0xc8] sm:$0x1]  ;;  %v3450_v41 = vor.u32 %v3449_v22, %v3445_v51  ;;  %v6461_v10 = vpop.f32.mrf.mxu1 }
 0x20e   : > { %v2282_v12 = vunpack.c.l.b16 %v2138_v61 }
 0x20f   : > { %7094 = vst [vmem:[#allocation74_spill] sm:$0xff] %v6437_v6  ;;  %v2477_v54 = vrot.slane %v2475_v47, 1  ;;  %v2482_v47 = vshll.u32 %v6268_v4, 16  ;;  %v6477_v45 = vpop.f32.mrf.mxu0  ;;  %v5292_v6 = vld [vmem:[#allocation2 + $0x60] sm:$0xf0] }
 0x210   : > { %v6469_v51 = vpack.c.b16 %v2282_v12, %v2282_v12  ;;  %7097 = vst [vmem:[#allocation77_spill] sm:$0xff] %v6477_v45 }
 0x211   : > { %v1868_v7 = vpop.f32.mrf.mxu3  ;;  %3023 = vmatmul.bf16.gmra.mxu2 %v2572_v34  ;;  %v3454_v34 = vrot.slane %v3452_v63, 1  ;;  %v6471_v63 = vld [vmem:[#allocation2 + $0x60] sm:$0xff]  }
 0x213   : > { %v3455_v50 = vsel %vm1278_vm0, %v3450_v41, %v3454_v34  ;;  %v2487_v41 = vshll.u32 %v6469_v51, 16 }
 0x214   : > { %v1955_v19 = vpop.f32.mrf.mxu2 }
 0x215   : > { %v6456_v28 = vadd.f32 %v1955_v19, %v1866_v23  ;;  %v2478_v23 = vsel %vm1278_vm0, %v2473_v8, %v2477_v54  ;;  %v2480_v8 = vshrl.u32 %v6268_v4, 16  ;;  %v2484_v54 = vrot.slane %v2482_v47, 1  ;;  %v6482_v34 = vpop.f32.mrf.mxu1 }
 0x216   : > { %2008 = vmatmul.bf16.gmra.mxu3 %v1556_v37  ;;  %v3214_v37 = vld [vmem:[#allocation2 + $0x68] sm:$0x1]  ;;  %v3457_v4 = vshrl.u32 %v6471_v63, 16 }
 0x217   : > { %7095 = vst [vmem:[#allocation75_spill] sm:$0xff] %v6456_v28  ;;  %v3358_v59 = vunpack.c.l.b16 %v3214_v37  ;;  %v3459_v37 = vshll.u32 %v6471_v63, 16  ;;  %v2485_v12 = vor.u32 %v2484_v54, %v2480_v8  ;;  %v5293_v8 = vld [vmem:[#allocation2 + $0x60] sm:$0xe] }
 0x219   : > { %v1871_v49 = vpop.f32.mrf.mxu3  ;;  %2979 = vmatmul.bf16.gmra.mxu1 %v2478_v23  ;;  %4019 = vmatmul.bf16.gmra.mxu0 %v3455_v50  ;;  %v6475_v61 = vpack.c.b16 %v3358_v59, %v3358_v59  ;;  %v2489_v23 = vrot.slane %v2487_v41, 1  ;;  %v3461_v50 = vrot.slane %v3459_v37, 1 }
 0x21b   : > { %v2490_v28 = vsel %vm1278_vm0, %v2485_v12, %v2489_v23  ;;  %v3462_v24 = vor.u32 %v3461_v50, %v3457_v4  ;;  %v2577_v12 = vrot.slane %v6207_v36, 1  ;;  %v3471_v4 = vshll.u32 %v6148_v31, 16  ;;  %v5412_v36 = vld [vmem:[#allocation2 + $0x6c] sm:$0xe] }
 0x21c   : > { %v1957_v55 = vpop.f32.mrf.mxu2 }
 0x21d   : > { %v6473_v19 = vadd.f32 %v1957_v55, %v1868_v7  ;;  %v3464_v7 = vshll.u32 %v6475_v61, 16  ;;  %v6494_v41 = vpop.f32.mrf.mxu1 }
 0x21f   : > { %7096 = vst [vmem:[#allocation76_spill] sm:$0xff] %v6473_v19  ;;  %v3466_v47 = vrot.slane %v3464_v7, 1  ;;  %v5263_v19 = vld [vmem:[#allocation2 + $0x60] sm:$0xf0]  ;;  %v1561_v7 = vrot.slane %v5960_v42, 1  ;;  %v3473_v42 = vrot.slane %v3471_v4, 1 }
 0x220   : > { %v3216_v4 = vld [vmem:[#allocation2 + $0x80] sm:$0x1] }
 0x221   : > { %v1873_v22 = vpop.f32.mrf.mxu3  ;;  %3028 = vmatmul.bf16.gmra.mxu2 %v6048_v29  ;;  %v5264_v29 = vld [vmem:[#allocation2 + $0x60] sm:$0xe]  ;;  %v3467_v45 = vsel %vm1278_vm0, %v3462_v24, %v3466_v47  ;;  %v3476_v47 = vshll.u32 %v6160_v2, 16 }
 0x222   : > { %v5265_v54 = vor.u32 %v5264_v29, %v5263_v19  ;;  %v5315_v29 = vld [vmem:[#allocation2 + $0x18] sm:$0xe] }
 0x224   : > { %v1960_v59 = vpop.f32.mrf.mxu2  ;;  %v1560_v50 = vrot.slane %v5265_v54, 1 }
 0x225   : > { %v6487_v55 = vadd.f32 %v1960_v59, %v1871_v49  ;;  %v5294_v49 = vor.u32 %v5293_v8, %v5292_v6  ;;  %v3469_v6 = vshrl.u32 %v6148_v31, 16  ;;  %v5046_v31 = vld [vmem:[%s6995_s3 + $0x190] sm:$0xff] }
 0x226   : > { %2013 = vmatmul.bf16.gmra.mxu3 %v6051_v18  ;;  %v6491_v18 = vpop.f32.mrf.mxu0  ;;  %v1562_v24 = vsel %vm1535_vm9, %v1560_v50, %v1561_v7  ;;  %v3478_v50 = vrot.slane %v3476_v47, 1 }
 0x227   : > { %7098 = vst [vmem:[#allocation78_spill] sm:$0xff] %v6487_v55  ;;  %v2576_v55 = vrot.slane %v5294_v49, 1  ;;  %v6507_v49 = vpop.f32.mrf.mxu1  ;;  %3902 = vmatpush.bf16.msra.mxu3 %v5046_v31 }
 0x229   : > { %v1876_v0 = vpop.f32.mrf.mxu3  ;;  %2984 = vmatmul.bf16.gmra.mxu1 %v2490_v28  ;;  %4024 = vmatmul.bf16.gmra.mxu0 %v3467_v45  ;;  %v2578_v19 = vsel %vm1535_vm9, %v2576_v55, %v2577_v12  ;;  %v5314_v28 = vld [vmem:[#allocation2 + $0x18] sm:$0xf0]  ;;  %v5409_v45 = vld [vmem:[#allocation2 + $0x6c] sm:$0xe]  ;;  %v3474_v12 = vor.u32 %v3473_v42, %v3469_v6 }
 0x22a   : > { %v5316_v54 = vor.u32 %v5315_v29, %v5314_v28  ;;  %v5410_v2 = vor.u32 %v5409_v45, %v5965_v1  ;;  %v5413_v28 = vor.u32 %v5412_v36, %v5981_v26  ;;  %v6520_v6 = vld [vmem:[#allocation2 + $0x78] sm:$0xff]   ;;  %v1564_v1 = vrot.slane %v5986_v39, 1 }
 0x22b   : > { %v3479_v29 = vsel %vm1278_vm0, %v3474_v12, %v3478_v50  ;;  %7101 = vst [vmem:[#allocation81_spill] sm:$0xff] %v6520_v6  ;;  %v2580_v26 = vrot.slane %v6249_v56, 1  ;;  %v3483_v31 = vshll.u32 %v6520_v6, 16  ;;  %v3481_v39 = vshrl.u32 %v6520_v6, 16 }
 0x22c   : > { %v1962_v59 = vpop.f32.mrf.mxu2  ;;  %v1563_v42 = vrot.slane %v5410_v2, 1  ;;  %v2911_v56 = vadd.f32 %v6266_v33, %v5994_v52  ;;  %v7104_v33 = vld [vmem:[#allocation9_spill] sm:$0xff] }
 0x22d   : > { %v6498_v23 = vadd.f32 %v1962_v59, %v1873_v22 }
 0x22e   : > { %v6505_v22 = vpop.f32.mrf.mxu0  ;;  %v1565_v12 = vsel %vm1535_vm9, %v1563_v42, %v1564_v1  ;;  %v5295_v1 = vld [vmem:[#allocation2 + $0x78] sm:$0xf0] }
 0x22f   : > { %7099 = vst [vmem:[#allocation79_spill] sm:$0xff] %v6498_v23 }
 0x231   : > { %v1878_v37 = vpop.f32.mrf.mxu3  ;;  %3033 = vmatmul.bf16.gmra.mxu2 %v2578_v19  ;;  %v3640_v19 = vrot.slane %v5316_v54, 1 }
 0x234   : > { %v1965_v7 = vpop.f32.mrf.mxu2 }
 0x235   : > { %v6510_v59 = vadd.f32 %v1965_v7, %v1876_v0  ;;  %v3360_v0 = vunpack.c.l.b16 %v3216_v4  ;;  %v6531_v7 = vpop.f32.mrf.mxu1 }
 0x236   : > { %2018 = vmatmul.bf16.gmra.mxu3 %v1562_v24  ;;  %v3641_v24 = vrot.slane %v6281_v17, 1  ;;  %v6523_v45 = vpop.f32.mrf.mxu0 }
 0x237   : > { %7100 = vst [vmem:[#allocation80_spill] sm:$0xff] %v6510_v59  ;;  %v6528_v54 = vpack.c.b16 %v3360_v0, %v3360_v0 }
 0x239   : > { %v1979_v8 = vpop.f32.mrf.mxu3  ;;  %4029 = vmatmul.bf16.gmra.mxu0 %v3479_v29  ;;  %v3488_v4 = vshll.u32 %v6528_v54, 16  ;;  %v5267_v29 = vld [vmem:[#allocation2 + $0x78] sm:$0xe] }
 0x23a   : > { %v1980_v55 = vadd.f32 %v1979_v8, %v5949_v9  ;;  %v3642_v9 = vsel %vm1535_vm9, %v3640_v19, %v3641_v24  ;;  %v2579_v8 = vrot.slane %v5413_v28, 1  ;;  %v3485_v24 = vrot.slane %v3483_v31, 1  ;;  %v5266_v28 = vld [vmem:[#allocation2 + $0x78] sm:$0xf0] }
 0x23b   : > { %4083 = vmatmul.bf16.vlgmr.msra.gmra.mxu1 %v3642_v9  ;;  %v3490_v42 = vrot.slane %v3488_v4, 1  ;;  %v5268_v31 = vor.u32 %v5267_v29, %v5266_v28  ;;  %v7110_v28 = vld [vmem:[#allocation13_spill] sm:$0xff] }
 0x23c   : > { %v1967_v47 = vpop.f32.mrf.mxu2  ;;  %v2581_v50 = vsel %vm1535_vm9, %v2579_v8, %v2580_v26  ;;  %v3486_v0 = vor.u32 %v3485_v24, %v3481_v39  ;;  %v7107_v39 = vld [vmem:[#allocation7_spill] sm:$0xff]  ;;  %v7108_v24 = vld [vmem:[#allocation56_spill] sm:$0xff] }
 0x23d   : > { %v6526_v36 = vadd.f32 %v1967_v47, %v1878_v37  ;;  %v5296_v47 = vld [vmem:[#allocation2 + $0x78] sm:$0xe]  ;;  %v2913_v4 = vadd.f32 %v7108_v24, %v7107_v39  ;;  %v1566_v6 = vrot.slane %v5268_v31, 1  ;;  %v5415_v39 = vld [vmem:[#allocation2 + $0x84] sm:$0xe] }
 0x23e   : > { %v6540_v8 = vpop.f32.mrf.mxu0  ;;  %v3491_v52 = vsel %vm1278_vm0, %v3486_v0, %v3490_v42 }
 0x23f   : > { %7102 = vst [vmem:[#allocation82_spill] sm:$0xff] %v6526_v36  ;;  %v7109_v36 = vld [vmem:[#allocation8_spill] sm:$0xff] }
 0x241   : > { %v1981_v17 = vpop.f32.mrf.mxu3  ;;  %3038 = vmatmul.bf16.gmra.mxu2 %v2581_v50  ;;  %v5297_v50 = vor.u32 %v5296_v47, %v5295_v1  ;;  %v7111_v1 = vld [vmem:[#allocation55_spill] sm:$0xff] }
 0x242   : > { %v2583_v47 = vrot.slane %v7111_v1, 1 }
 0x244   : > { %v2999_v19 = vpop.f32.mrf.mxu2 }
 0x245   : > { %v3000_v9 = vadd.f32 %v2999_v19, %v2911_v56 }
 0x246   : > { %2023 = vmatmul.bf16.gmra.mxu3 %v1565_v12  ;;  %v6544_v12 = vpop.f32.mrf.mxu1 }
 0x247   : > { %v6542_v26 = vadd.f32 %v3000_v9, %v1980_v55  ;;  %v1567_v55 = vrot.slane %v7109_v36, 1  ;;  %v5317_v36 = vld [vmem:[#allocation2 + $0x30] sm:$0xf0] }
 0x249   : > { %v1984_v37 = vpop.f32.mrf.mxu3  ;;  %7103 = vst [vmem:[#allocation83_spill] sm:$0xff] %v6542_v26  ;;  %4034 = vmatmul.bf16.gmra.mxu0 %v3491_v52  ;;  %v2582_v26 = vrot.slane %v5297_v50, 1  ;;  %v7112_v52 = vld [vmem:[#allocation48_spill] sm:$0xff] }
 0x24a   : > { %v1985_v2 = vadd.f32 %v1984_v37, %v6020_v58  ;;  %v7105_v58 = vld [vmem:[#allocation4_spill] sm:$0xff]  ;;  %v7106_v37 = vld [vmem:[#allocation6_spill] sm:$0xff]  ;;  %v3493_v50 = vshrl.u32 %v7112_v52, 16 }
 0x24b   : > { %4088 = vmatmul.bf16.gmra.mxu1 %v7104_v33  ;;  %v1893_v56 = vadd.f32 %v7106_v37, %v7105_v58  ;;  %v3495_v33 = vshll.u32 %v7112_v52, 16  ;;  %v1568_v58 = vsel %vm1535_vm9, %v1566_v6, %v1567_v55  ;;  %v6559_v37 = vpop.f32.mrf.mxu0  ;;  %v2584_v31 = vsel %vm1535_vm9, %v2582_v26, %v2583_v47  ;;  %v7117_v26 = vld [vmem:[#allocation18_spill] sm:$0xff] }
 0x24c   : > { %v3001_v9 = vpop.f32.mrf.mxu2  ;;  %7114 = vst [vmem:[#allocation4_spill] sm:$0xff] %v6559_v37  ;;  %v3647_v52 = vrot.slane %v6346_v16, 1  ;;  %v7119_v37 = vld [vmem:[#allocation11_spill] sm:$0xff] }
 0x24d   : > { %v1982_v0 = vadd.f32 %v1981_v17, %v1893_v56  ;;  %v3002_v42 = vadd.f32 %v3001_v9, %v2913_v4  ;;  %v3497_v24 = vrot.slane %v3495_v33, 1  ;;  %v5418_v56 = vld [vmem:[#allocation2 + $0x84] sm:$0xe]  ;;  %v5318_v9 = vld [vmem:[#allocation2 + $0x30] sm:$0xe]  ;;  %v5416_v23 = vor.u32 %v5415_v39, %v7119_v37 }
 0x24e   : > { %v6564_v4 = vpop.f32.mrf.mxu1  ;;  %v5319_v1 = vor.u32 %v5318_v9, %v5317_v36  ;;  %v3218_v33 = vld [vmem:[#allocation2 + $0x98] sm:$0x1]  ;;  %v6581_v16 = vld [vmem:[#allocation2 + $0x90] sm:$0xff]  }
 0x24f   : > { %v6556_v59 = vadd.f32 %v3002_v42, %v1982_v0  ;;  %7121 = vst [vmem:[#allocation7_spill] sm:$0xff] %v6581_v16 }
 0x251   : > { %v1986_v19 = vpop.f32.mrf.mxu3  ;;  %7113 = vst [vmem:[#allocation9_spill] sm:$0xff] %v6556_v59  ;;  %3043 = vmatmul.bf16.gmra.mxu2 %v2584_v31 }
 0x252   : > { %v1987_v29 = vadd.f32 %v1986_v19, %v7110_v28  ;;  %v7115_v19 = vld [vmem:[#allocation50_spill] sm:$0xff] }
 0x253   : > { %v3500_v17 = vshll.u32 %v7115_v19, 16  ;;  %v7116_v28 = vld [vmem:[#allocation10_spill] sm:$0xff]  ;;  %v3646_v19 = vrot.slane %v5319_v1, 1 }
 0x254   : > { %v2916_v6 = vadd.f32 %v6296_v3, %v7116_v28  ;;  %v3004_v0 = vpop.f32.mrf.mxu2  ;;  %v5045_v3 = vld [vmem:[%s6995_s3 + $0x188] sm:$0xff]  ;;  %v7120_v28 = vld [vmem:[#allocation15_spill] sm:$0xff] }
 0x255   : > { %v3502_v31 = vrot.slane %v3500_v17, 1  ;;  %v5419_v36 = vor.u32 %v5418_v56, %v7120_v28  ;;  %3903 = vmatpush.bf16.msra.mxu3 %v5045_v3  ;;  %v1569_v17 = vrot.slane %v5416_v23, 1  ;;  %v3505_v28 = vshrl.u32 %v6581_v16, 16 }
 0x256   : > { %2028 = vmatmul.bf16.gmra.mxu3 %v1568_v58  ;;  %v3005_v42 = vadd.f32 %v3004_v0, %v2916_v6  ;;  %v3498_v58 = vor.u32 %v3497_v24, %v3493_v50  ;;  %v3648_v6 = vsel %vm1535_vm9, %v3646_v19, %v3647_v52  ;;  %v3362_v50 = vunpack.c.l.b16 %v3218_v33  ;;  %v6579_v24 = vpop.f32.mrf.mxu0  ;;  %v6586_v56 = vpop.f32.mrf.mxu1 }
 0x257   : > { %v3507_v19 = vshll.u32 %v6581_v16, 16  ;;  %v7129_v16 = vld [vmem:[#allocation21_spill] sm:$0xff] }
 0x258   : > { %v6570_v59 = vadd.f32 %v3005_v42, %v1985_v2  ;;  %v3503_v9 = vsel %vm1278_vm0, %v3498_v58, %v3502_v31  ;;  %v7122_v2 = vld [vmem:[#allocation14_spill] sm:$0xff]  ;;  %v2585_v42 = vrot.slane %v5419_v36, 1  ;;  %v2586_v58 = vrot.slane %v6307_v38, 1 }
 0x259   : > { %v1989_v55 = vpop.f32.mrf.mxu3  ;;  %4039 = vmatmul.bf16.gmra.mxu0 %v3503_v9  ;;  %v2918_v37 = vadd.f32 %v6313_v20, %v7122_v2  ;;  %v6590_v33 = vpack.c.b16 %v3362_v50, %v3362_v50  ;;  %v3509_v9 = vrot.slane %v3507_v19, 1 }
 0x25a   : > { %v1990_v47 = vadd.f32 %v1989_v55, %v7117_v26  ;;  %7118 = vst [vmem:[#allocation6_spill] sm:$0xff] %v6570_v59  ;;  %v7123_v55 = vld [vmem:[#allocation17_spill] sm:$0xff]  ;;  %v7124_v26 = vld [vmem:[#allocation20_spill] sm:$0xff]  ;;  %v2587_v23 = vsel %vm1535_vm9, %v2585_v42, %v2586_v58  ;;  %v5298_v42 = vld [vmem:[#allocation2 + $0x90] sm:$0xf0] }
 0x25b   : > { %4093 = vmatmul.bf16.gmra.mxu1 %v3648_v6  ;;  %v1570_v1 = vrot.slane %v7123_v55, 1  ;;  %v3512_v36 = vshll.u32 %v6590_v33, 16  ;;  %v7126_v6 = vld [vmem:[#allocation19_spill] sm:$0xff] }
 0x25c   : > { %v3006_v0 = vpop.f32.mrf.mxu2  ;;  %v2921_v38 = vadd.f32 %v6329_v27, %v7126_v6  ;;  %v5269_v55 = vld [vmem:[#allocation2 + $0x90] sm:$0xf0]  ;;  %v5299_v58 = vld [vmem:[#allocation2 + $0x90] sm:$0xe]  ;;  %v7128_v6 = vld [vmem:[#allocation16_spill] sm:$0xff] }
 0x25d   : > { %v3007_v31 = vadd.f32 %v3006_v0, %v2918_v37  ;;  %v1571_v20 = vsel %vm1535_vm9, %v1569_v17, %v1570_v1  ;;  %v5270_v17 = vld [vmem:[#allocation2 + $0x90] sm:$0xe]  ;;  %v3510_v0 = vor.u32 %v3509_v9, %v3505_v28  ;;  %v7130_v28 = vld [vmem:[#allocation22_spill] sm:$0xff] }
 0x25e   : > { %v6601_v2 = vpop.f32.mrf.mxu0  ;;  %v1573_v9 = vrot.slane %v7130_v28, 1 }
 0x25f   : > { %v6593_v3 = vadd.f32 %v3007_v31, %v1987_v29  ;;  %v7127_v29 = vld [vmem:[#allocation23_spill] sm:$0xff]  ;;  %v6604_v31 = vpop.f32.mrf.mxu1 }
 0x261   : > { %v1991_v39 = vpop.f32.mrf.mxu3  ;;  %7125 = vst [vmem:[#allocation56_spill] sm:$0xff] %v6593_v3  ;;  %3048 = vmatmul.bf16.gmra.mxu2 %v2587_v23  ;;  %v5300_v23 = vor.u32 %v5299_v58, %v5298_v42  ;;  %v5320_v58 = vld [vmem:[#allocation2 + $0x48] sm:$0xf0] }
 0x262   : > { %v1992_v52 = vadd.f32 %v1991_v39, %v7124_v26  ;;  %v3514_v26 = vrot.slane %v3512_v36, 1 }
 0x263   : > { %v2588_v59 = vrot.slane %v5300_v23, 1 }
 0x264   : > { %v3009_v37 = vpop.f32.mrf.mxu2  ;;  %v3515_v27 = vsel %vm1278_vm0, %v3510_v0, %v3514_v26 }
 0x265   : > { %v3010_v1 = vadd.f32 %v3009_v37, %v2921_v38  ;;  %v7131_v37 = vld [vmem:[#allocation27_spill] sm:$0xff] }
 0x266   : > { %2033 = vmatmul.bf16.gmra.mxu3 %v1571_v20  ;;  %v5271_v20 = vor.u32 %v5270_v17, %v5269_v55  ;;  %v7132_v17 = vld [vmem:[#allocation60_spill] sm:$0xff]  ;;  %v6616_v0 = vpop.f32.mrf.mxu0 }
 0x267   : > { %v6606_v19 = vadd.f32 %v3010_v1, %v1990_v47  ;;  %v2589_v47 = vrot.slane %v6344_v13, 1  ;;  %v3519_v1 = vshll.u32 %v7132_v17, 16  ;;  %v3517_v23 = vshrl.u32 %v7132_v17, 16 }
 0x268   : > { %v1572_v38 = vrot.slane %v5271_v20, 1  ;;  %v5421_v20 = vld [vmem:[#allocation2 + $0x9c] sm:$0xe] }
 0x269   : > { %v1994_v50 = vpop.f32.mrf.mxu3  ;;  %4044 = vmatmul.bf16.gmra.mxu0 %v3515_v27  ;;  %v3521_v13 = vrot.slane %v3519_v1, 1  ;;  %v3524_v27 = vshll.u32 %v6319_v14, 16  ;;  %v7137_v14 = vld [vmem:[#allocation25_spill] sm:$0xff] }
 0x26a   : > { %v1995_v39 = vadd.f32 %v1994_v50, %v7127_v29  ;;  %v2923_v50 = vadd.f32 %v6351_v5, %v7129_v16  ;;  %v1574_v42 = vsel %vm1535_vm9, %v1572_v38, %v1573_v9  ;;  %v6621_v5 = vpop.f32.mrf.mxu1  ;;  %v2590_v16 = vsel %vm1535_vm9, %v2588_v59, %v2589_v47 }
 0x26b   : > { %4098 = vmatmul.bf16.gmra.mxu1 %v7128_v6  ;;  %v5424_v6 = vld [vmem:[#allocation2 + $0x9c] sm:$0xe]  ;;  %v3522_v47 = vor.u32 %v3521_v13, %v3517_v23 }
 0x26c   : > { %v3011_v36 = vpop.f32.mrf.mxu2 }
 0x26d   : > { %v3012_v55 = vadd.f32 %v3011_v36, %v2923_v50  ;;  %v5321_v50 = vld [vmem:[#allocation2 + $0x48] sm:$0xe]  ;;  %v7135_v36 = vld [vmem:[#allocation32_spill] sm:$0xff] }
 0x26e   : > { %v5322_v38 = vor.u32 %v5321_v50, %v5320_v58  ;;  %v7138_v58 = vld [vmem:[#allocation29_spill] sm:$0xff] }
 0x26f   : > { %v6618_v26 = vadd.f32 %v3012_v55, %v1992_v52  ;;  %v3526_v55 = vrot.slane %v3524_v27, 1  ;;  %v5425_v50 = vor.u32 %v5424_v6, %v7138_v58 }
 0x270   : > { %v3652_v1 = vrot.slane %v5322_v38, 1 }
 0x271   : > { %v1996_v29 = vpop.f32.mrf.mxu3  ;;  %7133 = vst [vmem:[#allocation8_spill] sm:$0xff] %v6618_v26  ;;  %3053 = vmatmul.bf16.gmra.mxu2 %v2590_v16  ;;  %v3220_v16 = vld [vmem:[#allocation2 + $0xb0] sm:$0x1]  ;;  %v5422_v26 = vor.u32 %v5421_v20, %v7137_v14  ;;  %v7140_v20 = vld [vmem:[#allocation28_spill] sm:$0xff] }
 0x272   : > { %v1997_v3 = vadd.f32 %v1996_v29, %v7131_v37  ;;  %v7134_v29 = vld [vmem:[#allocation24_spill] sm:$0xff]  ;;  %v3364_v13 = vunpack.c.l.b16 %v3220_v16  ;;  %v2928_v27 = vadd.f32 %v6378_v53, %v7140_v20 }
 0x273   : > { %v2926_v52 = vadd.f32 %v6361_v62, %v7134_v29  ;;  %v5044_v62 = vld [vmem:[%s6995_s3 + $0x180] sm:$0xff]  ;;  %v6636_v29 = vpop.f32.mrf.mxu0  ;;  %v1575_v38 = vrot.slane %v5422_v26, 1 }
 0x274   : > { %v3014_v9 = vpop.f32.mrf.mxu2  ;;  %3904 = vmatpush.bf16.msra.mxu3 %v5044_v62 }
 0x275   : > { %v3015_v59 = vadd.f32 %v3014_v9, %v2926_v52  ;;  %v3527_v52 = vsel %vm1278_vm0, %v3522_v47, %v3526_v55  ;;  %v7141_v9 = vld [vmem:[#allocation31_spill] sm:$0xff]  ;;  %v2591_v55 = vrot.slane %v5425_v50, 1 }
 0x276   : > { %2038 = vmatmul.bf16.gmra.mxu3 %v1574_v42  ;;  %v3653_v42 = vrot.slane %v6409_v35, 1  ;;  %v6641_v35 = vpop.f32.mrf.mxu1 }
 0x277   : > { %v6630_v17 = vadd.f32 %v3015_v59, %v1995_v39  ;;  %v6643_v39 = vld [vmem:[#allocation2 + $0xa8] sm:$0xff]   ;;  %v7142_v59 = vld [vmem:[#allocation35_spill] sm:$0xff] }
 0x278   : > { %v3654_v23 = vsel %vm1535_vm9, %v3652_v1, %v3653_v42  ;;  %7139 = vst [vmem:[#allocation55_spill] sm:$0xff] %v6643_v39  ;;  %v2592_v42 = vrot.slane %v6374_v48, 1  ;;  %v6650_v1 = vpack.c.b16 %v3364_v13, %v3364_v13  ;;  %v3531_v14 = vshll.u32 %v6643_v39, 16  ;;  %v7144_v48 = vld [vmem:[#allocation33_spill] sm:$0xff] }
 0x279   : > { %v1999_v28 = vpop.f32.mrf.mxu3  ;;  %7136 = vst [vmem:[#allocation13_spill] sm:$0xff] %v6630_v17  ;;  %4049 = vmatmul.bf16.gmra.mxu0 %v3527_v52  ;;  %v3529_v26 = vshrl.u32 %v6643_v39, 16  ;;  %v2931_v13 = vadd.f32 %v6400_v44, %v7144_v48  ;;  %v7147_v44 = vld [vmem:[#allocation30_spill] sm:$0xff]  ;;  %v7148_v48 = vld [vmem:[#allocation36_spill] sm:$0xff]  ;;  %v7149_v17 = vld [vmem:[#allocation37_spill] sm:$0xff] }
 0x27a   : > { %v2000_v37 = vadd.f32 %v1999_v28, %v7135_v36  ;;  %v1576_v36 = vrot.slane %v7141_v9, 1  ;;  %v2593_v53 = vsel %vm1535_vm9, %v2591_v55, %v2592_v42  ;;  %v3533_v52 = vrot.slane %v3531_v14, 1  ;;  %v5272_v9 = vld [vmem:[#allocation2 + $0xa8] sm:$0xf0] }
 0x27b   : > { %4103 = vmatmul.bf16.gmra.mxu1 %v3654_v23  ;;  %v3536_v50 = vshll.u32 %v6650_v1, 16  ;;  %v6659_v23 = vpop.f32.mrf.mxu0  ;;  %v5301_v42 = vld [vmem:[#allocation2 + $0xa8] sm:$0xf0] }
 0x27c   : > { %v3016_v6 = vpop.f32.mrf.mxu2  ;;  %v1577_v58 = vsel %vm1535_vm9, %v1575_v38, %v1576_v36  ;;  %v5273_v36 = vld [vmem:[#allocation2 + $0xa8] sm:$0xe] }
 0x27d   : > { %v3017_v16 = vadd.f32 %v3016_v6, %v2928_v27  ;;  %v3538_v55 = vrot.slane %v3536_v50, 1  ;;  %v7150_v50 = vld [vmem:[#allocation42_spill] sm:$0xff] }
 0x27e   : > { %v6663_v27 = vpop.f32.mrf.mxu1 }
 0x27f   : > { %v6653_v62 = vadd.f32 %v3017_v16, %v1997_v3  ;;  %v5302_v16 = vld [vmem:[#allocation2 + $0xa8] sm:$0xe] }
 0x281   : > { %v2001_v28 = vpop.f32.mrf.mxu3  ;;  %7143 = vst [vmem:[#allocation50_spill] sm:$0xff] %v6653_v62  ;;  %3058 = vmatmul.bf16.gmra.mxu2 %v2593_v53  ;;  %v5303_v53 = vor.u32 %v5302_v16, %v5301_v42  ;;  %v2933_v62 = vadd.f32 %v6420_v25, %v7148_v48  ;;  %v5427_v42 = vld [vmem:[#allocation2 + $0xb4] sm:$0xe]  ;;  %v3541_v16 = vshrl.u32 %v6376_v11, 16 }
 0x282   : > { %v2002_v47 = vadd.f32 %v2001_v28, %v7142_v59  ;;  %v7145_v28 = vld [vmem:[#allocation38_spill] sm:$0xff]  ;;  %v3534_v59 = vor.u32 %v3533_v52, %v3529_v26 }
 0x283   : > { %v6673_v26 = vpop.f32.mrf.mxu0 }
 0x284   : > { %v3019_v3 = vpop.f32.mrf.mxu2  ;;  %v3539_v39 = vsel %vm1278_vm0, %v3534_v59, %v3538_v55 }
 0x285   : > { %v3020_v6 = vadd.f32 %v3019_v3, %v2931_v13  ;;  %v1579_v13 = vrot.slane %v7149_v17, 1  ;;  %v2594_v3 = vrot.slane %v5303_v53, 1  ;;  %v5323_v17 = vld [vmem:[#allocation2 + $0x60] sm:$0xf0]  ;;  %v5324_v53 = vld [vmem:[#allocation2 + $0x60] sm:$0xe] }
 0x286   : > { %2043 = vmatmul.bf16.gmra.mxu3 %v1577_v58  ;;  %v5274_v58 = vor.u32 %v5273_v36, %v5272_v9  ;;  %v2595_v9 = vrot.slane %v6407_v40, 1  ;;  %v3548_v40 = vshll.u32 %v6384_v43, 16 }
 0x287   : > { %v6666_v14 = vadd.f32 %v3020_v6, %v2000_v37  ;;  %v6678_v6 = vpop.f32.mrf.mxu1 }
 0x288   : > { %v2596_v55 = vsel %vm1535_vm9, %v2594_v3, %v2595_v9  ;;  %v3550_v9 = vrot.slane %v3548_v40, 1 }
 0x289   : > { %v2004_v20 = vpop.f32.mrf.mxu3  ;;  %7146 = vst [vmem:[#allocation10_spill] sm:$0xff] %v6666_v14  ;;  %4054 = vmatmul.bf16.gmra.mxu0 %v3539_v39  ;;  %v3543_v39 = vshll.u32 %v6376_v11, 16  ;;  %v7154_v11 = vld [vmem:[#allocation40_spill] sm:$0xff] }
 0x28a   : > { %v2005_v38 = vadd.f32 %v2004_v20, %v7145_v28  ;;  %v1578_v28 = vrot.slane %v5274_v58, 1 }
 0x28b   : > { %4108 = vmatmul.bf16.gmra.mxu1 %v7147_v44  ;;  %v3545_v58 = vrot.slane %v3543_v39, 1  ;;  %v7152_v44 = vld [vmem:[#allocation41_spill] sm:$0xff]  ;;  %v3222_v39 = vld [vmem:[#allocation2 + $0xc8] sm:$0x1] }
 0x28c   : > { %v3021_v52 = vpop.f32.mrf.mxu2  ;;  %v1580_v25 = vsel %vm1535_vm9, %v1578_v28, %v1579_v13  ;;  %v2936_v48 = vadd.f32 %v6433_v60, %v7152_v44  ;;  %v7153_v28 = vld [vmem:[#allocation45_spill] sm:$0xff]  ;;  %v7155_v60 = vld [vmem:[#allocation43_spill] sm:$0xff] }
 0x28d   : > { %v3022_v36 = vadd.f32 %v3021_v52, %v2933_v62  ;;  %v5430_v62 = vld [vmem:[#allocation2 + $0xb4] sm:$0xe]  ;;  %v3546_v3 = vor.u32 %v3545_v58, %v3541_v16  ;;  %v3366_v16 = vunpack.c.l.b16 %v3222_v39  ;;  %v7156_v58 = vld [vmem:[#allocation46_spill] sm:$0xff] }
 0x28f   : > { %v6680_v59 = vadd.f32 %v3022_v36, %v2002_v47  ;;  %v3659_v36 = vrot.slane %v6475_v61, 1  ;;  %v6695_v14 = vpop.f32.mrf.mxu1  ;;  %v6700_v61 = vld [vmem:[#allocation2 + $0xc0] sm:$0xff]  }
 0x291   : > { %v2006_v20 = vpop.f32.mrf.mxu3  ;;  %7151 = vst [vmem:[#allocation18_spill] sm:$0xff] %v6680_v59  ;;  %3063 = vmatmul.bf16.gmra.mxu2 %v2596_v55  ;;  %v5428_v59 = vor.u32 %v5427_v42, %v7154_v11 }
 0x292   : > { %v2007_v37 = vadd.f32 %v2006_v20, %v7150_v50  ;;  %v5325_v20 = vor.u32 %v5324_v53, %v5323_v17  ;;  %v5431_v17 = vor.u32 %v5430_v62, %v7155_v60  ;;  %v3551_v53 = vsel %vm1278_vm0, %v3546_v3, %v3550_v9 }
 0x293   : > { %v6707_v3 = vpack.c.b16 %v3366_v16, %v3366_v16  ;;  %v3555_v9 = vshll.u32 %v6700_v61, 16 }
 0x294   : > { %v3024_v52 = vpop.f32.mrf.mxu2  ;;  %v3658_v43 = vrot.slane %v5325_v20, 1  ;;  %v7158_v20 = vld [vmem:[#allocation47_spill] sm:$0xff]  ;;  %v2597_v62 = vrot.slane %v5431_v17, 1 }
 0x295   : > { %v3025_v50 = vadd.f32 %v3024_v52, %v2936_v48  ;;  %v1581_v48 = vrot.slane %v5428_v59, 1  ;;  %v3557_v60 = vrot.slane %v3555_v9, 1  ;;  %v7161_v9 = vld [vmem:[#allocation39_spill] sm:$0xff] }
 0x296   : > { %2048 = vmatmul.bf16.gmra.mxu3 %v1580_v25  ;;  %v6690_v25 = vpop.f32.mrf.mxu0  ;;  %v3660_v44 = vsel %vm1535_vm9, %v3658_v43, %v3659_v36  ;;  %v3553_v43 = vshrl.u32 %v6700_v61, 16 }
 0x297   : > { %v6692_v55 = vadd.f32 %v3025_v50, %v2005_v38  ;;  %v2938_v38 = vadd.f32 %v6461_v10, %v7156_v58  ;;  %v6718_v17 = vpop.f32.mrf.mxu1  ;;  %v7160_v58 = vld [vmem:[#allocation51_spill] sm:$0xff] }
 0x299   : > { %v2009_v47 = vpop.f32.mrf.mxu3  ;;  %4059 = vmatmul.bf16.gmra.mxu0 %v3551_v53  ;;  %v7159_v53 = vld [vmem:[#allocation49_spill] sm:$0xff] }
 0x29a   : > { %v2010_v13 = vadd.f32 %v2009_v47, %v7153_v28  ;;  %v7157_v47 = vld [vmem:[#allocation44_spill] sm:$0xff]  ;;  %v2598_v28 = vrot.slane %v6439_v57, 1  ;;  %v3560_v57 = vshll.u32 %v6707_v3, 16 }
 0x29b   : > { %4113 = vmatmul.bf16.gmra.mxu1 %v3660_v44  ;;  %v1582_v11 = vrot.slane %v7157_v47, 1  ;;  %v2941_v44 = vadd.f32 %v6482_v34, %v7159_v53  ;;  %v7162_v34 = vld [vmem:[#allocation53_spill] sm:$0xff] }
 0x29c   : > { %v3026_v42 = vpop.f32.mrf.mxu2  ;;  %v2599_v59 = vsel %vm1535_vm9, %v2597_v62, %v2598_v28  ;;  %v3562_v47 = vrot.slane %v3560_v57, 1 }
 0x29d   : > { %v3027_v50 = vadd.f32 %v3026_v42, %v2938_v38  ;;  %v1583_v39 = vsel %vm1535_vm9, %v1581_v48, %v1582_v11  ;;  %v3558_v48 = vor.u32 %v3557_v60, %v3553_v43  ;;  %v5304_v11 = vld [vmem:[#allocation2 + $0xc0] sm:$0xf0]  ;;  %v5305_v42 = vld [vmem:[#allocation2 + $0xc0] sm:$0xe]  ;;  %v7163_v60 = vld [vmem:[#allocation54_spill] sm:$0xff] }
 0x29e   : > { %v6713_v10 = vpop.f32.mrf.mxu0  ;;  %v5306_v62 = vor.u32 %v5305_v42, %v5304_v11  ;;  %v7164_v11 = vld [vmem:[#allocation57_spill] sm:$0xff] }
 0x29f   : > { %v6710_v36 = vadd.f32 %v3027_v50, %v2007_v37  ;;  %v3563_v28 = vsel %vm1278_vm0, %v3558_v48, %v3562_v47  ;;  %v6731_v53 = vpop.f32.mrf.mxu1  ;;  %v5381_v47 = vld [vmem:[#allocation2 + $0x18] sm:$0xff]   ;;  %v2946_v42 = vadd.f32 %v6507_v49, %v7164_v11 }
 0x2a1   : > { %v2011_v40 = vpop.f32.mrf.mxu3  ;;  %3068 = vmatmul.bf16.gmra.mxu2 %v2599_v59 }
 0x2a2   : > { %v2012_v52 = vadd.f32 %v2011_v40, %v7158_v20 }
 0x2a4   : > { %v3029_v16 = vpop.f32.mrf.mxu2 }
 0x2a5   : > { %v3030_v40 = vadd.f32 %v3029_v16, %v2941_v44  ;;  %v2600_v44 = vrot.slane %v5306_v62, 1  ;;  %v5326_v16 = vld [vmem:[#allocation2 + $0x78] sm:$0xf0] }
 0x2a6   : > { %2053 = vmatmul.bf16.gmra.mxu3 %v1583_v39  ;;  %v6726_v50 = vpop.f32.mrf.mxu0  ;;  %v2943_v39 = vadd.f32 %v6494_v41, %v7162_v34  ;;  %v7165_v34 = vld [vmem:[#allocation58_spill] sm:$0xff] }
 0x2a7   : > { %v6723_v20 = vadd.f32 %v3030_v40, %v2010_v13  ;;  %v2601_v13 = vrot.slane %v6469_v51, 1 }
 0x2a9   : > { %v2014_v37 = vpop.f32.mrf.mxu3  ;;  %4064 = vmatmul.bf16.gmra.mxu0 %v3563_v28  ;;  %v2602_v48 = vsel %vm1535_vm9, %v2600_v44, %v2601_v13  ;;  %v7166_v44 = vld [vmem:[#allocation61_spill] sm:$0xff] }
 0x2aa   : > { %v2015_v38 = vadd.f32 %v2014_v37, %v7160_v58  ;;  %v5327_v58 = vld [vmem:[#allocation2 + $0x78] sm:$0xe]  ;;  %v2948_v13 = vadd.f32 %v6531_v7, %v7166_v44 }
 0x2ab   : > { %4118 = vmatmul.bf16.gmra.mxu1 %v7161_v9  ;;  %v5328_v41 = vor.u32 %v5327_v58, %v5326_v16  ;;  %v7167_v16 = vld [vmem:[#allocation59_spill] sm:$0xff] }
 0x2ac   : > { %v3031_v43 = vpop.f32.mrf.mxu2 }
 0x2ad   : > { %v3032_v37 = vadd.f32 %v3031_v43, %v2943_v39  ;;  %v3664_v51 = vrot.slane %v5328_v41, 1  ;;  %v3665_v39 = vrot.slane %v6528_v54, 1  ;;  %v6742_v43 = vpop.f32.mrf.mxu1  ;;  %v7168_v54 = vld [vmem:[#allocation5_spill] sm:$0xff] }
 0x2af   : > { %v6735_v40 = vadd.f32 %v3032_v37, %v2012_v52 }
 0x2b1   : > { %v2016_v59 = vpop.f32.mrf.mxu3  ;;  %3073 = vmatmul.bf16.gmra.mxu2 %v2602_v48 }
 0x2b2   : > { %v2017_v57 = vadd.f32 %v2016_v59, %v7163_v60  ;;  %v3666_v60 = vsel %vm1535_vm9, %v3664_v51, %v3665_v39  ;;  %v7170_v51 = vld [vmem:[#allocation52_spill] sm:$0xff] }
 0x2b4   : > { %v3034_v9 = vpop.f32.mrf.mxu2 }
 0x2b5   : > { %v3035_v59 = vadd.f32 %v3034_v9, %v2946_v42  ;;  %v6752_v41 = vpop.f32.mrf.mxu1 }
 0x2b6   : > { %3905 = vmatmul.bf16.vlgmr.msra.gmra.mxu3 %v5381_v47 }
 0x2b7   : > { %v6744_v52 = vadd.f32 %v3035_v59, %v2015_v38  ;;  %v2951_v38 = vadd.f32 %v6544_v12, %v6335_v21  ;;  %v5329_v21 = vld [vmem:[#allocation2 + $0x90] sm:$0xf0]  ;;  %v5330_v12 = vld [vmem:[#allocation2 + $0x90] sm:$0xe] }
 0x2b9   : > { %v2019_v28 = vpop.f32.mrf.mxu3 }
 0x2ba   : > { %v2020_v62 = vadd.f32 %v2019_v28, %v7165_v34  ;;  %v7169_v28 = vld [vmem:[#allocation62_spill] sm:$0xff] }
 0x2bb   : > { %4123 = vmatmul.bf16.gmra.mxu1 %v3666_v60 }
 0x2bc   : > { %v3036_v49 = vpop.f32.mrf.mxu2 }
 0x2bd   : > { %v3037_v48 = vadd.f32 %v3036_v49, %v2948_v13  ;;  %v6760_v59 = vpop.f32.mrf.mxu1  ;;  %v7172_v13 = vld [vmem:[#allocation64_spill] sm:$0xff] }
 0x2bf   : > { %v6750_v47 = vadd.f32 %v3037_v48, %v2017_v57  ;;  %v7171_v57 = vld [vmem:[#allocation65_spill] sm:$0xff]  ;;  %v5382_v48 = vld [vmem:[#allocation2 + $0x30] sm:$0xff]  }
 0x2c0   : > { %v2953_v39 = vadd.f32 %v6564_v4, %v7171_v57  ;;  %v7174_v4 = vld [vmem:[#allocation66_spill] sm:$0xff] }
 0x2c1   : > { %v2021_v37 = vpop.f32.mrf.mxu3 }
 0x2c2   : > { %v2022_v58 = vadd.f32 %v2021_v37, %v7167_v16 }
 0x2c4   : > { %v3039_v42 = vpop.f32.mrf.mxu2 }
 0x2c5   : > { %v3040_v34 = vadd.f32 %v3039_v42, %v2951_v38  ;;  %v6770_v42 = vpop.f32.mrf.mxu1 }
 0x2c6   : > { %3910 = vmatmul.bf16.gmra.mxu3 %v7168_v54  ;;  %v7173_v54 = vld [vmem:[#allocation67_spill] sm:$0xff] }
 0x2c7   : > { %v6758_v7 = vadd.f32 %v3040_v34, %v2020_v62  ;;  %v5331_v62 = vor.u32 %v5330_v12, %v5329_v21  ;;  %v2956_v38 = vadd.f32 %v6586_v56, %v7173_v54 }
 0x2c9   : > { %v2024_v11 = vpop.f32.mrf.mxu3  ;;  %v3670_v57 = vrot.slane %v5331_v62, 1  ;;  %v7176_v62 = vld [vmem:[#allocation12_spill] sm:$0xff] }
 0x2ca   : > { %v2025_v9 = vadd.f32 %v2024_v11, %v7169_v28 }
 0x2cb   : > { %4128 = vmatmul.bf16.gmra.mxu1 %v7170_v51 }
 0x2cc   : > { %v3041_v44 = vpop.f32.mrf.mxu2 }
 0x2cd   : > { %v3042_v49 = vadd.f32 %v3041_v44, %v2953_v39  ;;  %v3671_v39 = vrot.slane %v6590_v33, 1  ;;  %v2958_v44 = vadd.f32 %v6604_v31, %v6394_v15  ;;  %v7177_v33 = vld [vmem:[#allocation73_spill] sm:$0xff] }
 0x2cf   : > { %v6766_v16 = vadd.f32 %v3042_v49, %v2022_v58  ;;  %v3672_v58 = vsel %vm1535_vm9, %v3670_v57, %v3671_v39  ;;  %v7175_v49 = vld [vmem:[#allocation68_spill] sm:$0xff]  ;;  %v7179_v57 = vld [vmem:[#allocation63_spill] sm:$0xff] }
 0x2d1   : > { %v2026_v60 = vpop.f32.mrf.mxu3 }
 0x2d2   : > { %v2027_v37 = vadd.f32 %v2026_v60, %v7172_v13 }
 0x2d4   : > { %v3044_v28 = vpop.f32.mrf.mxu2 }
 0x2d5   : > { %v3045_v51 = vadd.f32 %v3044_v28, %v2956_v38  ;;  %v7178_v28 = vld [vmem:[#allocation70_spill] sm:$0xff] }
 0x2d6   : > { %3915 = vmatmul.bf16.gmra.mxu3 %v5382_v48  ;;  %v6780_v48 = vpop.f32.mrf.mxu1 }
 0x2d7   : > { %v6774_v60 = vadd.f32 %v3045_v51, %v2025_v9  ;;  %v2961_v9 = vadd.f32 %v6621_v5, %v7177_v33  ;;  %v5332_v5 = vld [vmem:[#allocation2 + $0xa8] sm:$0xf0] }
 0x2d9   : > { %v2029_v11 = vpop.f32.mrf.mxu3 }
 0x2da   : > { %v2030_v34 = vadd.f32 %v2029_v11, %v7174_v4 }
 0x2db   : > { %4133 = vmatmul.bf16.gmra.mxu1 %v3672_v58 }
 0x2dc   : > { %v3046_v56 = vpop.f32.mrf.mxu2 }
 0x2dd   : > { %v3047_v12 = vadd.f32 %v3046_v56, %v2958_v44  ;;  %v7180_v44 = vld [vmem:[#allocation72_spill] sm:$0xff] }
 0x2de   : > { %v6790_v31 = vpop.f32.mrf.mxu1 }
 0x2df   : > { %v6782_v54 = vadd.f32 %v3047_v12, %v2027_v37  ;;  %v2963_v37 = vadd.f32 %v6641_v35, %v6427_v30 }
 0x2e1   : > { %v2031_v13 = vpop.f32.mrf.mxu3 }
 0x2e2   : > { %v2032_v21 = vadd.f32 %v2031_v13, %v7175_v49  ;;  %v5333_v49 = vld [vmem:[#allocation2 + $0xa8] sm:$0xe] }
 0x2e4   : > { %v3049_v11 = vpop.f32.mrf.mxu2 }
 0x2e5   : > { %v3050_v51 = vadd.f32 %v3049_v11, %v2961_v9  ;;  %v2966_v9 = vadd.f32 %v6663_v27, %v6454_v46  ;;  %v7182_v27 = vld [vmem:[#allocation74_spill] sm:$0xff] }
 0x2e6   : > { %3920 = vmatmul.bf16.gmra.mxu3 %v7176_v62  ;;  %v5383_v62 = vld [vmem:[#allocation2 + $0x48] sm:$0xff]   ;;  %v6798_v33 = vpop.f32.mrf.mxu1 }
 0x2e7   : > { %v6788_v15 = vadd.f32 %v3050_v51, %v2030_v34  ;;  %v5334_v34 = vor.u32 %v5333_v49, %v5332_v5  ;;  %v3677_v51 = vrot.slane %v6650_v1, 1  ;;  %v7183_v49 = vld [vmem:[#allocation26_spill] sm:$0xff]  ;;  %v2971_v1 = vadd.f32 %v6695_v14, %v6491_v18  ;;  %v5335_v18 = vld [vmem:[#allocation2 + $0xc0] sm:$0xf0]  ;;  %v5336_v14 = vld [vmem:[#allocation2 + $0xc0] sm:$0xe] }
 0x2e9   : > { %v2034_v38 = vpop.f32.mrf.mxu3 }
 0x2ea   : > { %v2035_v4 = vadd.f32 %v2034_v38, %v7178_v28  ;;  %v3676_v28 = vrot.slane %v5334_v34, 1  ;;  %v7184_v34 = vld [vmem:[#allocation75_spill] sm:$0xff] }
 0x2eb   : > { %4138 = vmatmul.bf16.gmra.mxu1 %v7179_v57 }
 0x2ec   : > { %v3051_v58 = vpop.f32.mrf.mxu2 }
 0x2ed   : > { %v3052_v56 = vadd.f32 %v3051_v58, %v2963_v37  ;;  %v7181_v37 = vld [vmem:[#allocation77_spill] sm:$0xff] }
 0x2ef   : > { %v6796_v12 = vadd.f32 %v3052_v56, %v2032_v21  ;;  %v3678_v21 = vsel %vm1535_vm9, %v3676_v28, %v3677_v51 }
 0x2f1   : > { %v2036_v39 = vpop.f32.mrf.mxu3 }
 0x2f2   : > { %v2037_v13 = vadd.f32 %v2036_v39, %v7180_v44  ;;  %v2968_v39 = vadd.f32 %v6678_v6, %v7181_v37  ;;  %v6809_v44 = vpop.f32.mrf.mxu1 }
 0x2f4   : > { %v3054_v11 = vpop.f32.mrf.mxu2 }
 0x2f5   : > { %v3055_v35 = vadd.f32 %v3054_v11, %v2966_v9 }
 0x2f6   : > { %3925 = vmatmul.bf16.gmra.mxu3 %v5383_v62 }
 0x2f7   : > { %v6804_v57 = vadd.f32 %v3055_v35, %v2035_v4  ;;  %v7185_v35 = vld [vmem:[#allocation71_spill] sm:$0xff] }
 0x2f9   : > { %v2039_v38 = vpop.f32.mrf.mxu3 }
 0x2fa   : > { %v2040_v30 = vadd.f32 %v2039_v38, %v6422_v32  ;;  %v6818_v6 = vpop.f32.mrf.mxu1 }
 0x2fb   : > { %4143 = vmatmul.bf16.gmra.mxu1 %v3678_v21  ;;  %v7186_v21 = vld [vmem:[#allocation76_spill] sm:$0xff] }
 0x2fc   : > { %v3056_v46 = vpop.f32.mrf.mxu2 }
 0x2fd   : > { %v3057_v5 = vadd.f32 %v3056_v46, %v2968_v39 }
 0x2ff   : > { %v6812_v32 = vadd.f32 %v3057_v5, %v2037_v13  ;;  %v2973_v13 = vadd.f32 %v6718_v17, %v6505_v22  ;;  %v7187_v22 = vld [vmem:[#allocation78_spill] sm:$0xff] }
 0x301   : > { %v2041_v58 = vpop.f32.mrf.mxu3 }
 0x302   : > { %v2042_v56 = vadd.f32 %v2041_v58, %v7182_v27  ;;  %v6828_v46 = vpop.f32.mrf.mxu1  ;;  %v2976_v27 = vadd.f32 %v6731_v53, %v6523_v45  ;;  %v7188_v53 = vld [vmem:[#allocation79_spill] sm:$0xff] }
 0x304   : > { %v3059_v62 = vpop.f32.mrf.mxu2 }
 0x305   : > { %v3060_v38 = vadd.f32 %v3059_v62, %v2971_v1  ;;  %v3683_v62 = vrot.slane %v6707_v3, 1  ;;  %v7190_v3 = vld [vmem:[#allocation4_spill] sm:$0xff] }
 0x306   : > { %3930 = vmatmul.bf16.gmra.mxu3 %v7183_v49 }
 0x307   : > { %v6820_v11 = vadd.f32 %v3060_v38, %v2040_v30  ;;  %v5337_v30 = vor.u32 %v5336_v14, %v5335_v18  ;;  %v7191_v14 = vld [vmem:[#allocation80_spill] sm:$0xff] }
 0x309   : > { %v2044_v4 = vpop.f32.mrf.mxu3 }
 0x30a   : > { %v2045_v9 = vadd.f32 %v2044_v4, %v7184_v34  ;;  %v3682_v4 = vrot.slane %v5337_v30, 1  ;;  %v6838_v38 = vpop.f32.mrf.mxu1 }
 0x30b   : > { %4148 = vmatmul.bf16.gmra.mxu1 %v7185_v35 }
 0x30c   : > { %v3061_v51 = vpop.f32.mrf.mxu2 }
 0x30d   : > { %v3062_v39 = vadd.f32 %v3061_v51, %v2973_v13 }
 0x30f   : > { %v6826_v58 = vadd.f32 %v3062_v39, %v2042_v56  ;;  %v3684_v56 = vsel %vm1535_vm9, %v3682_v4, %v3683_v62  ;;  %v7193_v62 = vld [vmem:[#allocation81_spill] sm:$0xff] }
 0x311   : > { %v2046_v28 = vpop.f32.mrf.mxu3 }
 0x312   : > { %v2047_v37 = vadd.f32 %v2046_v28, %v7186_v21  ;;  %v7189_v21 = vld [vmem:[#allocation34_spill] sm:$0xff] }
 0x314   : > { %v3064_v49 = vpop.f32.mrf.mxu2 }
 0x315   : > { %v3065_v1 = vadd.f32 %v3064_v49, %v2976_v27 }
 0x316   : > { %3935 = vmatmul.bf16.gmra.mxu3 %v6471_v63  ;;  %v2978_v63 = vadd.f32 %v6742_v43, %v6540_v8  ;;  %v2983_v8 = vadd.f32 %v6760_v59, %v6579_v24 }
 0x317   : > { %v6835_v34 = vadd.f32 %v3065_v1, %v2045_v9  ;;  %v2981_v9 = vadd.f32 %v6752_v41, %v7190_v3  ;;  %v6857_v41 = vpop.f32.mrf.mxu0 }
 0x319   : > { %v2049_v5 = vpop.f32.mrf.mxu3 }
 0x31a   : > { %v2050_v17 = vadd.f32 %v2049_v5, %v7187_v22  ;;  %v7192_v22 = vld [vmem:[#allocation82_spill] sm:$0xff] }
 0x31b   : > { %4153 = vmatmul.bf16.gmra.mxu1 %v3684_v56  ;;  %v2986_v56 = vadd.f32 %v6770_v42, %v6601_v2  ;;  %v6873_v2 = vld [vmem:[%s6996_s4] ss:$0 sm:$0xff] }
 0x31c   : > { %v3066_v45 = vpop.f32.mrf.mxu2 }
 0x31d   : > { %v3067_v28 = vadd.f32 %v3066_v45, %v2978_v63  ;;  %v6862_v45 = vpop.f32.mrf.mxu1 }
 0x31f   : > { %v6843_v51 = vadd.f32 %v3067_v28, %v2047_v37 }
 0x321   : > { %v2051_v35 = vpop.f32.mrf.mxu3 }
 0x322   : > { %v2052_v13 = vadd.f32 %v2051_v35, %v7188_v53 }
 0x324   : > { %v3069_v18 = vpop.f32.mrf.mxu2 }
 0x325   : > { %v3070_v27 = vadd.f32 %v3069_v18, %v2981_v9  ;;  %v4012_v9 = vpop.f32.mrf.mxu0 }
 0x326   : > { %3940 = vmatmul.bf16.gmra.mxu3 %v7189_v21  ;;  %v7194_v21 = vld [vmem:[#allocation83_spill] sm:$0xff] }
 0x327   : > { %v6849_v5 = vadd.f32 %v3070_v27, %v2050_v17  ;;  %v7196_v27 = vld [vmem:[#allocation48_spill] sm:$0xff] }
 0x329   : > { %v2054_v39 = vpop.f32.mrf.mxu3 }
 0x32a   : > { %v2055_v30 = vadd.f32 %v2054_v39, %v7191_v14 }
 0x32c   : > { %v3071_v49 = vpop.f32.mrf.mxu2 }
 0x32d   : > { %v3072_v1 = vadd.f32 %v3071_v49, %v2983_v8 }
 0x32f   : > { %v6854_v4 = vadd.f32 %v3072_v1, %v2052_v13  ;;  %v2988_v13 = vadd.f32 %v6780_v48, %v6616_v0  ;;  %v7195_v48 = vld [vmem:[#allocation9_spill] sm:$0xff] }
 0x331   : > { %v2056_v43 = vpop.f32.mrf.mxu3 }
 0x332   : > { %v2057_v37 = vadd.f32 %v2056_v43, %v7192_v22 }
 0x334   : > { %v3074_v17 = vpop.f32.mrf.mxu2 }
 0x335   : > { %v3075_v24 = vadd.f32 %v3074_v17, %v2986_v56 }
 0x336   : > { %3945 = vmatmul.bf16.gmra.mxu3 %v7193_v62 }
 0x337   : > { %v6864_v59 = vadd.f32 %v3075_v24, %v2055_v30 }
 0x339   : > { %v3906_v63 = vpop.f32.mrf.mxu3 }
 0x33a   : > { %v3996_v35 = vadd.f32 %v6636_v29, %v3906_v63  ;;  %v7197_v63 = vld [vmem:[#allocation6_spill] sm:$0xff] }
 0x33c   : > { %v4085_v53 = vadd.f32 %v6790_v31, %v3996_v35  ;;  %v3076_v29 = vpop.f32.mrf.mxu2  ;;  %v4101_v31 = vpop.f32.mrf.mxu1 }
 0x33d   : > { %v3077_v39 = vadd.f32 %v3076_v29, %v2988_v13 }
 0x33e   : > { %v4196_v3 = vadd.f32 %v4085_v53, %v7194_v21  ;;  %v7198_v53 = vld [vmem:[#allocation56_spill] sm:$0xff] }
 0x33f   : > { %v6877_v14 = vadd.f32 %v3077_v39, %v2057_v37  ;;  %v4015_v37 = vpop.f32.mrf.mxu0 }
 0x340   : > { %v4296_v0 = vadd.f32 %v6873_v2, %v4196_v3 }
 0x341   : > { %v3908_v28 = vpop.f32.mrf.mxu3 }
 0x342   : > { %v3998_v42 = vadd.f32 %v6659_v23, %v3908_v28  ;;  %v4328_v49 = vmax.f32 %v4296_v0, 0.0  ;;  %v7199_v28 = vld [vmem:[#allocation7_spill] sm:$0xff] }
 0x344   : > { %v4087_v18 = vadd.f32 %v6798_v33, %v3998_v42  ;;  %v4104_v62 = vpop.f32.mrf.mxu1 }
 0x346   : > { %v4197_v30 = vadd.f32 %v4087_v18, %v7195_v48  ;;  %3950 = vmatmul.bf16.gmra.mxu3 %v7196_v27 }
 0x347   : > { %v4017_v21 = vpop.f32.mrf.mxu0 }
 0x348   : > { %v4297_v8 = vadd.f32 %v6873_v2, %v4197_v30 }
 0x349   : > { %v3911_v43 = vpop.f32.mrf.mxu3 }
 0x34a   : > { %v4329_v22 = vmax.f32 %v4297_v8, 0.0  ;;  %v4001_v23 = vadd.f32 %v6673_v26, %v3911_v43 }
 0x34c   : > { %v5167_v33 = vpack.c.bf16 %v4329_v22, %v4328_v49  ;;  %v4090_v1 = vadd.f32 %v6809_v44, %v4001_v23  ;;  %v4106_v29 = vpop.f32.mrf.mxu1  ;;  %v7200_v22 = vld [vmem:[#allocation8_spill] sm:$0xff] }
 0x34e   : > { %5168 = vst [vmem:[%s6889_s13] sm:$0xff] %v5167_v33   ;;  %v4198_v17 = vadd.f32 %v4090_v1, %v7197_v63  ;;  %v7201_v33 = vld [vmem:[#allocation60_spill] sm:$0xff] }
 0x350   : > { %v4298_v24 = vadd.f32 %v6873_v2, %v4198_v17 }
 0x351   : > { %v3913_v56 = vpop.f32.mrf.mxu3 }
 0x352   : > { %v4003_v35 = vadd.f32 %v6690_v25, %v3913_v56  ;;  %v4330_v42 = vmax.f32 %v4298_v24, 0.0 }
 0x354   : > { %v4092_v26 = vadd.f32 %v6818_v6, %v4003_v35  ;;  %v4020_v6 = vpop.f32.mrf.mxu0  ;;  %v4109_v8 = vpop.f32.mrf.mxu1 }
 0x356   : > { %v4199_v13 = vadd.f32 %v4092_v26, %v7198_v53  ;;  %3955 = vmatmul.bf16.gmra.mxu3 %v7199_v28  ;;  %v7202_v26 = vld [vmem:[#allocation13_spill] sm:$0xff] }
 0x358   : > { %v4299_v3 = vadd.f32 %v6873_v2, %v4199_v13 }
 0x359   : > { %v3916_v44 = vpop.f32.mrf.mxu3 }
 0x35a   : > { %v4331_v39 = vmax.f32 %v4299_v3, 0.0  ;;  %v4006_v18 = vadd.f32 %v6713_v10, %v3916_v44  ;;  %v7203_v44 = vld [vmem:[#allocation50_spill] sm:$0xff] }
 0x35c   : > { %v5172_v0 = vpack.c.bf16 %v4331_v39, %v4330_v42  ;;  %v4095_v25 = vadd.f32 %v6828_v46, %v4006_v18  ;;  %v4022_v17 = vpop.f32.mrf.mxu0  ;;  %v4111_v35 = vpop.f32.mrf.mxu1  ;;  %v7204_v39 = vld [vmem:[#allocation55_spill] sm:$0xff] }
 0x35e   : > { %5338 = vst [vmem:[%s6889_s13 + $0x8] sm:$0xff] %v5172_v0   ;;  %v4200_v30 = vadd.f32 %v4095_v25, %v6606_v19 }
 0x360   : > { %v4300_v49 = vadd.f32 %v6873_v2, %v4200_v30 }
 0x361   : > { %v3918_v48 = vpop.f32.mrf.mxu3 }
 0x362   : > { %v4008_v27 = vadd.f32 %v6726_v50, %v3918_v48  ;;  %v4332_v46 = vmax.f32 %v4300_v49, 0.0  ;;  %v7205_v49 = vld [vmem:[#allocation10_spill] sm:$0xff] }
 0x364   : > { %v4097_v43 = vadd.f32 %v6838_v38, %v4008_v27  ;;  %v6914_v28 = vpop.f32.mrf.mxu0 }
 0x366   : > { %v4201_v23 = vadd.f32 %v4097_v43, %v7200_v22  ;;  %3960 = vmatmul.bf16.gmra.mxu3 %v7201_v33 }
 0x368   : > { %v4301_v10 = vadd.f32 %v6873_v2, %v4201_v23 }
 0x369   : > { %v3921_v1 = vpop.f32.mrf.mxu3 }
 0x36a   : > { %v4333_v56 = vmax.f32 %v4301_v10, 0.0  ;;  %v4011_v63 = vadd.f32 %v6857_v41, %v3921_v1  ;;  %v6919_v41 = vpop.f32.mrf.mxu1  ;;  %v7206_v1 = vld [vmem:[#allocation18_spill] sm:$0xff] }
 0x36c   : > { %v5177_v19 = vpack.c.bf16 %v4333_v56, %v4332_v46  ;;  %v4100_v50 = vadd.f32 %v6862_v45, %v4011_v63  ;;  %v7207_v56 = vld [vmem:[#allocation69_spill] sm:$0xff] }
 0x36e   : > { %5339 = vst [vmem:[%s6889_s13 + $0x10] sm:$0xff] %v5177_v19   ;;  %v4202_v24 = vadd.f32 %v4100_v50, %v7202_v26 }
 0x370   : > { %v4302_v3 = vadd.f32 %v6873_v2, %v4202_v24 }
 0x371   : > { %v3923_v38 = vpop.f32.mrf.mxu3 }
 0x372   : > { %v4013_v53 = vadd.f32 %v4012_v9, %v3923_v38  ;;  %v4334_v45 = vmax.f32 %v4302_v3, 0.0  ;;  %v4116_v27 = vpop.f32.mrf.mxu1  ;;  %v5433_v3 = vld [vmem:[#allocation2 + $0xcc] sm:$0xe] }
 0x374   : > { %v4102_v13 = vadd.f32 %v4101_v31, %v4013_v53  ;;  %v4027_v31 = vpop.f32.mrf.mxu0 }
 0x376   : > { %v4203_v42 = vadd.f32 %v4102_v13, %v7203_v44  ;;  %3965 = vmatmul.bf16.gmra.mxu3 %v7204_v39  ;;  %v3206_v13 = vld [vmem:[#allocation2 + $0xcc] sm:$0xff]  }
 0x378   : > { %v4303_v18 = vadd.f32 %v6873_v2, %v4203_v42 }
 0x379   : > { %v3926_v0 = vpop.f32.mrf.mxu3 }
 0x37a   : > { %v4335_v25 = vmax.f32 %v4303_v18, 0.0  ;;  %v4016_v48 = vadd.f32 %v4015_v37, %v3926_v0  ;;  %v4119_v26 = vpop.f32.mrf.mxu1 }
 0x37c   : > { %v5182_v30 = vpack.c.bf16 %v4335_v25, %v4334_v45  ;;  %v4105_v9 = vadd.f32 %v4104_v62, %v4016_v48  ;;  %v4030_v37 = vpop.f32.mrf.mxu0  ;;  %v3565_v48 = vshrl.u32 %v3206_v13, 16 }
 0x37e   : > { %5340 = vst [vmem:[%s6889_s13 + $0x18] sm:$0xff] %v5182_v30   ;;  %v4204_v22 = vadd.f32 %v4105_v9, %v7205_v49  ;;  %v3567_v30 = vshll.u32 %v3206_v13, 16 }
 0x380   : > { %v4304_v10 = vadd.f32 %v6873_v2, %v4204_v22 }
 0x381   : > { %v3928_v43 = vpop.f32.mrf.mxu3 }
 0x382   : > { %v4018_v23 = vadd.f32 %v4017_v21, %v3928_v43  ;;  %v4336_v50 = vmax.f32 %v4304_v10, 0.0  ;;  %v5432_v21 = vld [vmem:[#allocation2 + $0xcc] sm:$0xf0]  ;;  %v4121_v22 = vpop.f32.mrf.mxu1 }
 0x383   : > { %v5434_v18 = vor.u32 %v5433_v3, %v5432_v21 }
 0x384   : > { %v4107_v33 = vadd.f32 %v4106_v29, %v4018_v23  ;;  %v3223_v29 = vld [vmem:[#allocation2 + $0xd4] sm:$0x1]  ;;  %v4032_v25 = vpop.f32.mrf.mxu0 }
 0x385   : > { %v3367_v44 = vunpack.c.l.b16 %v3223_v29 }
 0x386   : > { %v4205_v46 = vadd.f32 %v4107_v33, %v7206_v1  ;;  %3970 = vmatmul.bf16.gmra.mxu3 %v7207_v56 }
 0x387   : > { %v3383_v39 = vpack.c.b16 %v3367_v44, %v3367_v44 }
 0x388   : > { %v4305_v63 = vadd.f32 %v6873_v2, %v4205_v46 }
 0x389   : > { %v3931_v19 = vpop.f32.mrf.mxu3  ;;  %v3572_v9 = vshll.u32 %v3383_v39, 16  ;;  %v3686_v49 = vrot.slane %v3383_v39, 1 }
 0x38a   : > { %v4337_v62 = vmax.f32 %v4305_v63, 0.0  ;;  %v4021_v38 = vadd.f32 %v4020_v6, %v3931_v19  ;;  %v3685_v6 = vrot.slane %v5434_v18, 1 }
 0x38b   : > { %v3574_v23 = vrot.slane %v3572_v9, 1 }
 0x38c   : > { %v5187_v24 = vpack.c.bf16 %v4337_v62, %v4336_v50  ;;  %v4110_v53 = vadd.f32 %v4109_v8, %v4021_v38  ;;  %v3569_v8 = vrot.slane %v3567_v30, 1  ;;  %v4035_v62 = vpop.f32.mrf.mxu0 }
 0x38e   : > { %5341 = vst [vmem:[%s6889_s13 + $0x20] sm:$0xff] %v5187_v24   ;;  %v4206_v0 = vadd.f32 %v4110_v53, %v6692_v55  ;;  %v3687_v55 = vsel %vm1535_vm9, %v3685_v6, %v3686_v49 }
 0x38f   : > { %4158 = vmatmul.bf16.gmra.mxu1 %v3687_v55 }
 0x390   : > { %v4306_v33 = vadd.f32 %v6873_v2, %v4206_v0 }
 0x391   : > { %v3933_v42 = vpop.f32.mrf.mxu3 }
 0x392   : > { %v4023_v45 = vadd.f32 %v4022_v17, %v3933_v42  ;;  %v3570_v17 = vor.u32 %v3569_v8, %v3565_v48  ;;  %v4338_v56 = vmax.f32 %v4306_v33, 0.0 }
 0x394   : > { %v4112_v43 = vadd.f32 %v4111_v35, %v4023_v45  ;;  %v3575_v35 = vsel %vm1278_vm0, %v3570_v17, %v3574_v23  ;;  %v4037_v44 = vpop.f32.mrf.mxu0 }
 0x395   : > { %4069 = vmatmul.bf16.gmra.mxu0 %v3575_v35 }
 0x396   : > { %v4207_v10 = vadd.f32 %v4112_v43, %v6710_v36  ;;  %3975 = vmatmul.bf16.gmra.mxu3 %v6700_v61  ;;  %v4124_v61 = vpop.f32.mrf.mxu1 }
 0x398   : > { %v4307_v1 = vadd.f32 %v6873_v2, %v4207_v10 }
 0x399   : > { %v3936_v46 = vpop.f32.mrf.mxu3 }
 0x39a   : > { %v4339_v63 = vmax.f32 %v4307_v1, 0.0  ;;  %v4026_v19 = vadd.f32 %v6914_v28, %v3936_v46 }
 0x39c   : > { %v5192_v50 = vpack.c.bf16 %v4339_v63, %v4338_v56  ;;  %v4115_v36 = vadd.f32 %v6919_v41, %v4026_v19  ;;  %v4040_v30 = vpop.f32.mrf.mxu0 }
 0x39e   : > { %5342 = vst [vmem:[%s6889_s13 + $0x28] sm:$0xff] %v5192_v50   ;;  %v4208_v24 = vadd.f32 %v4115_v36, %v6723_v20  ;;  %v4126_v42 = vpop.f32.mrf.mxu1 }
 0x3a0   : > { %v4308_v29 = vadd.f32 %v6873_v2, %v4208_v24 }
 0x3a1   : > { %v3938_v38 = vpop.f32.mrf.mxu3 }
 0x3a2   : > { %v4028_v53 = vadd.f32 %v4027_v31, %v3938_v38  ;;  %v4340_v18 = vmax.f32 %v4308_v29, 0.0 }
 0x3a4   : > { %v4117_v21 = vadd.f32 %v4116_v27, %v4028_v53  ;;  %v4042_v33 = vpop.f32.mrf.mxu0 }
 0x3a6   : > { %v4209_v3 = vadd.f32 %v4117_v21, %v6735_v40  ;;  %3980 = vmatmul.bf16.gmra.mxu3 %v3206_v13  ;;  %v4129_v9 = vpop.f32.mrf.mxu1 }
 0x3a8   : > { %v4309_v28 = vadd.f32 %v6873_v2, %v4209_v3 }
 0x3a9   : > { %v3941_v39 = vpop.f32.mrf.mxu3 }
 0x3aa   : > { %v4341_v0 = vmax.f32 %v4309_v28, 0.0  ;;  %v4031_v41 = vadd.f32 %v4030_v37, %v3941_v39 }
 0x3ac   : > { %v5197_v45 = vpack.c.bf16 %v4341_v0, %v4340_v18  ;;  %v4120_v48 = vadd.f32 %v4119_v26, %v4031_v41  ;;  %v4045_v1 = vpop.f32.mrf.mxu0 }
 0x3ae   : > { %5343 = vst [vmem:[%s6889_s13 + $0x30] sm:$0xff] %v5197_v45   ;;  %v4210_v31 = vadd.f32 %v4120_v48, %v6744_v52  ;;  %v4131_v10 = vpop.f32.mrf.mxu1 }
 0x3b0   : > { %v4310_v13 = vadd.f32 %v6873_v2, %v4210_v31 }
 0x3b1   : > { %v3943_v20 = vpop.f32.mrf.mxu3 }
 0x3b2   : > { %v4033_v27 = vadd.f32 %v4032_v25, %v3943_v20  ;;  %v4342_v8 = vmax.f32 %v4310_v13, 0.0 }
 0x3b4   : > { %v4122_v40 = vadd.f32 %v4121_v22, %v4033_v27  ;;  %v4047_v38 = vpop.f32.mrf.mxu0 }
 0x3b6   : > { %v4211_v6 = vadd.f32 %v4122_v40, %v6750_v47  ;;  %v4134_v35 = vpop.f32.mrf.mxu1 }
 0x3b8   : > { %v4311_v43 = vadd.f32 %v6873_v2, %v4211_v6 }
 0x3b9   : > { %v3946_v49 = vpop.f32.mrf.mxu3 }
 0x3ba   : > { %v4343_v37 = vmax.f32 %v4311_v43, 0.0  ;;  %v4036_v23 = vadd.f32 %v4035_v62, %v3946_v49 }
 0x3bc   : > { %v5202_v26 = vpack.c.bf16 %v4343_v37, %v4342_v8  ;;  %v4125_v55 = vadd.f32 %v4124_v61, %v4036_v23  ;;  %v4050_v28 = vpop.f32.mrf.mxu0 }
 0x3be   : > { %5344 = vst [vmem:[%s6889_s13 + $0x38] sm:$0xff] %v5202_v26   ;;  %v4212_v25 = vadd.f32 %v4125_v55, %v6758_v7  ;;  %v4136_v7 = vpop.f32.mrf.mxu1 }
 0x3c0   : > { %v4312_v47 = vadd.f32 %v6873_v2, %v4212_v25 }
 0x3c1   : > { %v3948_v52 = vpop.f32.mrf.mxu3 }
 0x3c2   : > { %v4038_v22 = vadd.f32 %v4037_v44, %v3948_v52  ;;  %v4344_v19 = vmax.f32 %v4312_v47, 0.0 }
 0x3c4   : > { %v4127_v17 = vadd.f32 %v4126_v42, %v4038_v22  ;;  %v4052_v31 = vpop.f32.mrf.mxu0 }
 0x3c6   : > { %v4213_v46 = vadd.f32 %v4127_v17, %v6766_v16  ;;  %v4139_v41 = vpop.f32.mrf.mxu1 }
 0x3c8   : > { %v4313_v56 = vadd.f32 %v6873_v2, %v4213_v46 }
 0x3c9   : > { %v3951_v63 = vpop.f32.mrf.mxu3 }
 0x3ca   : > { %v4345_v50 = vmax.f32 %v4313_v56, 0.0  ;;  %v4041_v62 = vadd.f32 %v4040_v30, %v3951_v63 }
 0x3cc   : > { %v5207_v36 = vpack.c.bf16 %v4345_v50, %v4344_v19  ;;  %v4130_v61 = vadd.f32 %v4129_v9, %v4041_v62  ;;  %v4055_v23 = vpop.f32.mrf.mxu0 }
 0x3ce   : > { %5345 = vst [vmem:[%s6889_s13 + $0x40] sm:$0xff] %v5207_v36   ;;  %v4214_v53 = vadd.f32 %v4130_v61, %v6774_v60  ;;  %v4141_v9 = vpop.f32.mrf.mxu1 }
 0x3d0   : > { %v4314_v16 = vadd.f32 %v6873_v2, %v4214_v53 }
 0x3d1   : > { %v3953_v24 = vpop.f32.mrf.mxu3 }
 0x3d2   : > { %v4043_v21 = vadd.f32 %v4042_v33, %v3953_v24  ;;  %v4346_v39 = vmax.f32 %v4314_v16, 0.0 }
 0x3d4   : > { %v4132_v29 = vadd.f32 %v4131_v10, %v4043_v21  ;;  %v4057_v22 = vpop.f32.mrf.mxu0 }
 0x3d6   : > { %v4215_v3 = vadd.f32 %v4132_v29, %v6782_v54 }
 0x3d8   : > { %v4315_v44 = vadd.f32 %v6873_v2, %v4215_v3 }
 0x3d9   : > { %v3956_v42 = vpop.f32.mrf.mxu3 }
 0x3da   : > { %v4347_v18 = vmax.f32 %v4315_v44, 0.0  ;;  %v4046_v0 = vadd.f32 %v4045_v1, %v3956_v42 }
 0x3dc   : > { %v5212_v45 = vpack.c.bf16 %v4347_v18, %v4346_v39  ;;  %v4135_v48 = vadd.f32 %v4134_v35, %v4046_v0  ;;  %v4060_v50 = vpop.f32.mrf.mxu0 }
 0x3de   : > { %5346 = vst [vmem:[%s6889_s13 + $0x48] sm:$0xff] %v5212_v45   ;;  %v4216_v60 = vadd.f32 %v4135_v48, %v6788_v15  ;;  %v4144_v15 = vpop.f32.mrf.mxu1 }
 0x3e0   : > { %v4316_v54 = vadd.f32 %v6873_v2, %v4216_v60 }
 0x3e1   : > { %v3958_v30 = vpop.f32.mrf.mxu3 }
 0x3e2   : > { %v4048_v20 = vadd.f32 %v4047_v38, %v3958_v30  ;;  %v4348_v43 = vmax.f32 %v4316_v54, 0.0 }
 0x3e4   : > { %v4137_v27 = vadd.f32 %v4136_v7, %v4048_v20  ;;  %v4062_v3 = vpop.f32.mrf.mxu0 }
 0x3e6   : > { %v4217_v40 = vadd.f32 %v4137_v27, %v6796_v12  ;;  %v4146_v1 = vpop.f32.mrf.mxu1 }
 0x3e8   : > { %v4317_v13 = vadd.f32 %v6873_v2, %v4217_v40 }
 0x3e9   : > { %v3961_v6 = vpop.f32.mrf.mxu3 }
 0x3ea   : > { %v4349_v49 = vmax.f32 %v4317_v13, 0.0  ;;  %v4051_v8 = vadd.f32 %v4050_v28, %v3961_v6 }
 0x3ec   : > { %v5217_v37 = vpack.c.bf16 %v4349_v49, %v4348_v43  ;;  %v4140_v33 = vadd.f32 %v4139_v41, %v4051_v8  ;;  %v4065_v41 = vpop.f32.mrf.mxu0 }
 0x3ee   : > { %5347 = vst [vmem:[%s6889_s13 + $0x50] sm:$0xff] %v5217_v37   ;;  %v4218_v10 = vadd.f32 %v4140_v33, %v6804_v57  ;;  %v4149_v61 = vpop.f32.mrf.mxu1 }
 0x3f0   : > { %v4318_v25 = vadd.f32 %v6873_v2, %v4218_v10 }
 0x3f1   : > { %v3963_v26 = vpop.f32.mrf.mxu3 }
 0x3f2   : > { %v4053_v55 = vadd.f32 %v4052_v31, %v3963_v26  ;;  %v4350_v46 = vmax.f32 %v4318_v25, 0.0 }
 0x3f4   : > { %v4142_v52 = vadd.f32 %v4141_v9, %v4053_v55  ;;  %v4067_v40 = vpop.f32.mrf.mxu0 }
 0x3f6   : > { %v4219_v12 = vadd.f32 %v4142_v52, %v6812_v32  ;;  %v4151_v28 = vpop.f32.mrf.mxu1 }
 0x3f8   : > { %v4319_v17 = vadd.f32 %v6873_v2, %v4219_v12 }
 0x3f9   : > { %v3966_v47 = vpop.f32.mrf.mxu3 }
 0x3fa   : > { %v4351_v35 = vmax.f32 %v4319_v17, 0.0  ;;  %v4056_v56 = vadd.f32 %v4055_v23, %v3966_v47 }
 0x3fc   : > { %v5222_v63 = vpack.c.bf16 %v4351_v35, %v4350_v46  ;;  %v4145_v19 = vadd.f32 %v4144_v15, %v4056_v56 }
 0x3fe   : > { %5348 = vst [vmem:[%s6889_s13 + $0x58] sm:$0xff] %v5222_v63   ;;  %v4220_v62 = vadd.f32 %v4145_v19, %v6820_v11  ;;  %v4154_v48 = vpop.f32.mrf.mxu1 }
 0x400   : > { %v4320_v32 = vadd.f32 %v6873_v2, %v4220_v62 }
 0x401   : > { %v3968_v57 = vpop.f32.mrf.mxu3 }
 0x402   : > { %v4058_v36 = vadd.f32 %v4057_v22, %v3968_v57  ;;  %v4352_v21 = vmax.f32 %v4320_v32, 0.0 }
 0x404   : > { %v4147_v38 = vadd.f32 %v4146_v1, %v4058_v36 }
 0x406   : > { %v4221_v7 = vadd.f32 %v4147_v38, %v6826_v58 }
 0x408   : > { %v4321_v24 = vadd.f32 %v6873_v2, %v4221_v7 }
 0x409   : > { %v3971_v53 = vpop.f32.mrf.mxu3 }
 0x40a   : > { %v4353_v29 = vmax.f32 %v4321_v24, 0.0  ;;  %v4061_v16 = vadd.f32 %v4060_v50, %v3971_v53 }
 0x40c   : > { %v5227_v44 = vpack.c.bf16 %v4353_v29, %v4352_v21  ;;  %v4150_v42 = vadd.f32 %v4149_v61, %v4061_v16 }
 0x40e   : > { %5349 = vst [vmem:[%s6889_s13 + $0x60] sm:$0xff] %v5227_v44   ;;  %v4222_v39 = vadd.f32 %v4150_v42, %v6835_v34  ;;  %v4156_v34 = vpop.f32.mrf.mxu1 }
 0x410   : > { %v4322_v58 = vadd.f32 %v6873_v2, %v4222_v39 }
 0x411   : > { %v3973_v11 = vpop.f32.mrf.mxu3 }
 0x412   : > { %v4063_v18 = vadd.f32 %v4062_v3, %v3973_v11  ;;  %v4354_v20 = vmax.f32 %v4322_v58, 0.0  ;;  %v4070_v37 = vpop.f32.mrf.mxu0 }
 0x414   : > { %v4152_v0 = vadd.f32 %v4151_v28, %v4063_v18 }
 0x416   : > { %v4223_v45 = vadd.f32 %v4152_v0, %v6843_v51  ;;  %v4159_v33 = vpop.f32.mrf.mxu1 }
 0x418   : > { %v4323_v30 = vadd.f32 %v6873_v2, %v4223_v45 }
 0x419   : > { %v3976_v60 = vpop.f32.mrf.mxu3 }
 0x41a   : > { %v4355_v31 = vmax.f32 %v4323_v30, 0.0  ;;  %v4066_v27 = vadd.f32 %v4065_v41, %v3976_v60  ;;  %v4072_v12 = vpop.f32.mrf.mxu0 }
 0x41c   : > { %v5232_v9 = vpack.c.bf16 %v4355_v31, %v4354_v20  ;;  %v4155_v54 = vadd.f32 %v4154_v48, %v4066_v27 }
 0x41e   : > { %5350 = vst [vmem:[%s6889_s13 + $0x68] sm:$0xff] %v5232_v9   ;;  %v4224_v6 = vadd.f32 %v4155_v54, %v6849_v5  ;;  %v4161_v1 = vpop.f32.mrf.mxu1 }
 0x420   : > { %v4324_v51 = vadd.f32 %v6873_v2, %v4224_v6 }
 0x421   : > { %v3978_v13 = vpop.f32.mrf.mxu3 }
 0x422   : > { %v4068_v43 = vadd.f32 %v4067_v40, %v3978_v13  ;;  %v4356_v26 = vmax.f32 %v4324_v51, 0.0 }
 0x424   : > { %v4157_v49 = vadd.f32 %v4156_v34, %v4068_v43 }
 0x426   : > { %v4225_v8 = vadd.f32 %v4157_v49, %v6854_v4 }
 0x428   : > { %v4325_v23 = vadd.f32 %v6873_v2, %v4225_v8 }
 0x429   : > { %v3981_v15 = vpop.f32.mrf.mxu3 }
 0x42a   : > { %v4357_v10 = vmax.f32 %v4325_v23, 0.0  ;;  %v4071_v55 = vadd.f32 %v4070_v37, %v3981_v15 }
 0x42c   : > { %v5237_v52 = vpack.c.bf16 %v4357_v10, %v4356_v26  ;;  %v4160_v25 = vadd.f32 %v4159_v33, %v4071_v55 }
 0x42e   : > { %5351 = vst [vmem:[%s6889_s13 + $0x70] sm:$0xff] %v5237_v52   ;;  %v4226_v22 = vadd.f32 %v4160_v25, %v6864_v59 }
 0x430   : > { %v4326_v4 = vadd.f32 %v6873_v2, %v4226_v22 }
 0x431   : > { %v3983_v5 = vpop.f32.mrf.mxu3 }
 0x432   : > { %v4073_v17 = vadd.f32 %v4072_v12, %v3983_v5  ;;  %v4358_v56 = vmax.f32 %v4326_v4, 0.0 }
 0x434   : > { %v4162_v47 = vadd.f32 %v4161_v1, %v4073_v17 }
 0x436   : > { %v4227_v46 = vadd.f32 %v4162_v47, %v6877_v14 }
 0x438   : > { %v4327_v35 = vadd.f32 %v6873_v2, %v4227_v46 }
 0x43a   : > { %v4359_v63 = vmax.f32 %v4327_v35, 0.0 }
 0x43c   : > { %v5242_v19 = vpack.c.bf16 %v4359_v63, %v4358_v56 }
 0x43e   : > { %5352 = vst [vmem:[%s6889_s13 + $0x78] sm:$0xff] %v5242_v19  }
 0x43f PF: > { %s15_s18 = sadd.s32 1, %s5462_s18  }
 0x440   : > { %p12_p4 = scmp.ge.s32.totalorder %s15_s18, 4  }
 0x442   :  { %14 = sbr.rel (!%p12_p4) target bundleno = 1 (0x1), region = 74 }

</bundles_post_ra>
